<compile_context>
chip_gen: v6e
topology: v6e:2x2x1
jax: 0.10.0
libtpu: 0.0.40
codegen_flags: <defaults>
</compile_context>

<pallas_src>
import math

import jax
import jax.numpy as jnp
from jax.experimental import pallas as pl
from jax.experimental.pallas import tpu as pltpu

# ----------------------- small, module-consistent sizes -----------------------
B = 2             # batch
Lc = 16           # video clip length (module constant Lc=16)
Lq = 16           # question length (module constant Lq=41, shrunk for the demo)
CTX_DIM = 64      # video feature dim (original 2048)
CTX_DIM_M = 32    # projected video dim (original 512)
D = CTX_DIM_M     # model dim; trilinear attention requires D == ctx_dim_m
DWORD = 32        # word / glove dim == dim_embed
DIM_EMBED = DWORD
BERT_DIM = 64     # BERT feature dim (original 768)
NH = 4            # self-attention heads
DH = D // NH
CONV_NUM_EMB = 4  # emb_enc = EncoderBlock(conv_num=4, ch_num=D, k=7)
K_EMB = 7
PAD = K_EMB // 2
NEG_INF = -1e30
LN_EPS = 1e-5


# --------------------------- in-kernel helper math -----------------------------
def _mm(a, b):
    return jnp.dot(a, b, preferred_element_type=jnp.float32)


def _layer_norm(x, g, b):
    mu = jnp.mean(x, axis=-1, keepdims=True)
    var = jnp.mean((x - mu) ** 2, axis=-1, keepdims=True)
    return (x - mu) * jax.lax.rsqrt(var + LN_EPS) * g + b


def _masked_softmax(logits, mask, axis):
    """softmax(mask_logits(logits, mask)) with a hard {0,1} mask (or None)."""
    if mask is not None:
        logits = jnp.where(mask > 0.0, logits, NEG_INF)
    logits = logits - jnp.max(logits, axis=axis, keepdims=True)
    e = jnp.exp(logits)
    return e * pl.reciprocal(jnp.sum(e, axis=axis, keepdims=True), approx=True)


# ------------------------------- the fused kernel -------------------------------
def _psac_qns_fused_kernel(
    # activations
    qns_ref, vid_ref, mask_ref, pos_ref,
    # embedding + conv1d + highway
    emb_w_ref, emb_b_ref, conv1d_w_ref, hw_w_ref, hw_b_ref,
    # emb_enc EncoderBlock(conv_num=4, k=7)
    ln_cg_ref, ln_cb_ref, dw_ref, pw_w_ref, pw_b_ref,
    ln1_g_ref, ln1_b_ref, ln2_g_ref, ln2_b_ref,
    att_w_ref, ffn1_w_ref, ffn1_b_ref, ffn2_w_ref, ffn2_b_ref,
    # VQAttention_counter3a + vq_resizer
    w4v_ref, w4q_ref, w4mlu_ref, vq_bias_ref,
    w_trans_ref, trans_b_ref, resize_w_ref,
    # outputs
    out_ref, outc_ref, qenc_ref):
    """Whole EncoderQns_PSAC_counter3a forward (eval mode) in one kernel."""
    mask = mask_ref[...]                                   # (B, Lq) hard {0,1}

    # ---- embedding Linear(768->Dword) + Initialized_Conv1d(Dword->D, no bias)
    x = _mm(qns_ref[...], emb_w_ref[...]) + emb_b_ref[...]     # (B*Lq, Dword)
    x = _mm(x, conv1d_w_ref[...])                              # (B*Lq, D)

    # ---- Highway(2): fused [linear | gate] projection per layer
    hw_w = hw_w_ref[...]                                   # (2*D, 2*D)
    hw_b = hw_b_ref[...]                                   # (2, 2*D)
    for i in range(2):
        proj = _mm(x, hw_w[i * D:(i + 1) * D, :]) + hw_b[i:i + 1, :]
        lin = proj[:, :D]
        gate = jax.nn.sigmoid(proj[:, D:])
        x = gate * lin + (1.0 - gate) * x

    # ---- emb_enc = EncoderBlock(conv_num=4, ch_num=D, k=7), eval mode
    x = x + pos_ref[...]                                   # PosEncoder (precomputed)

    ln_cg = ln_cg_ref[...]
    ln_cb = ln_cb_ref[...]
    dw = dw_ref[...]                                       # (CONV_NUM*K, D)
    pw_w = pw_w_ref[...]                                   # (CONV_NUM*D, D)
    pw_b = pw_b_ref[...]                                   # (CONV_NUM, D)
    zpad = jnp.zeros((PAD, D), jnp.float32)

    for i in range(CONV_NUM_EMB):
        res = x
        h = _layer_norm(x, ln_cg[i:i + 1, :], ln_cb[i:i + 1, :])
        # depthwise 'same' conv1d (k=7, no bias) over length, per batch element
        conv_rows = []
        for b in range(B):
            hb = h[b * Lq:(b + 1) * Lq, :]
            hp = jnp.concatenate([zpad, hb, zpad], axis=0)     # (Lq+2*PAD, D)
            acc = jnp.zeros((Lq, D), jnp.float32)
            for t in range(K_EMB):
                tap = dw[i * K_EMB + t: i * K_EMB + t + 1, :]  # (1, D)
                acc = acc + hp[t:t + Lq, :] * tap
            conv_rows.append(acc)
        h = jnp.concatenate(conv_rows, axis=0)                 # (B*Lq, D)
        # pointwise 1x1 conv + bias + relu
        h = jnp.maximum(_mm(h, pw_w[i * D:(i + 1) * D, :]) + pw_b[i:i + 1, :], 0.0)
        x = h + res                                            # layer_dropout @ eval

    # ---- multi-head self-attention sub-block
    res = x
    h = _layer_norm(x, ln1_g_ref[...], ln1_b_ref[...])
    proj = _mm(h, att_w_ref[...])                          # (B*Lq, 3*D) = [Q|K|V]
    scale = DH ** -0.5
    att_rows = []
    for b in range(B):
        r0 = b * Lq
        qb = proj[r0:r0 + Lq, 0:D] * scale
        kb = proj[r0:r0 + Lq, D:2 * D]
        vb = proj[r0:r0 + Lq, 2 * D:3 * D]
        key_mask = mask[b:b + 1, :]                        # (1, Lq)
        heads = []
        for hh in range(NH):
            c0 = hh * DH
            logits = jnp.einsum('qd,kd->qk', qb[:, c0:c0 + DH], kb[:, c0:c0 + DH],
                                preferred_element_type=jnp.float32)
            w = _masked_softmax(logits, key_mask, axis=-1)
            heads.append(_mm(w, vb[:, c0:c0 + DH]))
        att_rows.append(jnp.concatenate(heads, axis=-1))
    x = jnp.concatenate(att_rows, axis=0) + res

    # ---- feed-forward sub-block
    res = x
    h = _layer_norm(x, ln2_g_ref[...], ln2_b_ref[...])
    h = jnp.maximum(_mm(h, ffn1_w_ref[...]) + ffn1_b_ref[...], 0.0)
    h = _mm(h, ffn2_w_ref[...]) + ffn2_b_ref[...]
    q_enc = h + res                                        # (B*Lq, D) channel-last

    for b in range(B):                                     # qns_embed_enc output
        qenc_ref[b] = q_enc[b * Lq:(b + 1) * Lq, :]

    # ---- VQAttention_counter3a + vq_resizer + mean(-1)  (mean/resize commute)
    Vt = _mm(vid_ref[...], w_trans_ref[...]) + trans_b_ref[...]   # (B*Lc, Dm)
    w4v = w4v_ref[...]                                     # (1, Dm)
    w4q = w4q_ref[...]                                     # (1, D)
    w4mlu = w4mlu_ref[...]                                 # (1, Dm)
    vq_bias = vq_bias_ref[...]                             # (1, 1)

    S_list, V_list, Q_list = [], [], []
    for b in range(B):
        Vb = Vt[b * Lc:(b + 1) * Lc, :]                    # (Lc, Dm)
        Qb = q_enc[b * Lq:(b + 1) * Lq, :]                 # (Lq, D)
        sub0 = jnp.sum(Vb * w4v, axis=-1, keepdims=True)                  # (Lc, 1)
        sub1 = jnp.einsum('od,qd->oq', w4q, Qb,
                          preferred_element_type=jnp.float32)             # (1, Lq)
        sub2 = jnp.einsum('vd,qd->vq', Vb * w4mlu, Qb,
                          preferred_element_type=jnp.float32)             # (Lc, Lq)
        S_list.append(sub0 + sub1 + sub2 + vq_bias)
        V_list.append(Vb)
        Q_list.append(Qb)

    # S_avg[i] = mean over the batch of S (same matrix for every batch element)
    S_avg = S_list[0]
    for b in range(1, B):
        S_avg = S_avg + S_list[b]
    S_avg = S_avg * (1.0 / B)

    feat_rows, featc_rows = [], []
    for b in range(B):
        Sb, Vb, Qb = S_list[b], V_list[b], Q_list[b]
        qmask_b = mask[b:b + 1, :]                         # (1, Lq); maskV == 1
        S1 = _masked_softmax(Sb, qmask_b, axis=-1)         # softmax over Lq
        S2 = _masked_softmax(Sb, None, axis=0)             # softmax over Lc
        A = _mm(S1, Qb)                                    # (Lc, D)
        Bm = _mm(jnp.einsum('vq,wq->vw', S1, S2,
                            preferred_element_type=jnp.float32), Vb)      # (Lc, Dm)
        S1c = _masked_softmax(S_avg, qmask_b, axis=-1)
        S2c = _masked_softmax(S_avg, None, axis=0)
        Ac = _mm(S1c, Qb)
        Bc = _mm(jnp.einsum('vq,wq->vw', S1c, S2c,
                            preferred_element_type=jnp.float32), Vb)
        dA = A - Ac
        dB = Bm - Bc
        feat = jnp.concatenate([Vb, A, Vb * A, Vb * Bm], axis=-1)         # (Lc, 4D)
        featc = jnp.concatenate([Vb, dA, Vb * dA, Vb * dB], axis=-1)      # (Lc, 4D)
        feat_rows.append(jnp.mean(feat, axis=0, keepdims=True))           # (1, 4D)
        featc_rows.append(jnp.mean(featc, axis=0, keepdims=True))

    # vq_resizer (1x1 conv 4D->D, no bias) after the Lc-mean; one K=4D=128 matmul
    stacked = jnp.concatenate(feat_rows + featc_rows, axis=0)             # (2B, 4D)
    resized = _mm(stacked, resize_w_ref[...])                             # (2B, D)
    out_ref[...] = resized[0:B, :]
    outc_ref[...] = resized[B:2 * B, :]


# ------------------------------- host-side wrapper -------------------------------
def _vmem_spec():
    return pl.BlockSpec(memory_space=pltpu.MemorySpace.VMEM)


def encoder_qns_psac_counter3a_forward(params, vid_enc, qns):
    """Eval-mode forward; returns (out, out_counter, vid_enc, qns_embed_enc)."""
    bn = qns.shape[0]
    assert bn == B and qns.shape[1] == Lq and vid_enc.shape[1] == Lc
    # hard {0,1} per-token question mask (dense BERT features -> all ones)
    mask = jnp.any(qns != 0, axis=-1).astype(jnp.float32)                 # (B, Lq)

    args = (
        qns.reshape(bn * Lq, BERT_DIM).astype(jnp.float32),
        vid_enc.reshape(bn * Lc, CTX_DIM).astype(jnp.float32),
        mask,
        params['pos2d'],
        params['emb_w'], params['emb_b'], params['conv1d_w'],
        params['hw_w'], params['hw_b'],
        params['ln_cg'], params['ln_cb'], params['dw'],
        params['pw_w'], params['pw_b'],
        params['ln1_g'], params['ln1_b'], params['ln2_g'], params['ln2_b'],
        params['att_w'], params['ffn1_w'], params['ffn1_b'],
        params['ffn2_w'], params['ffn2_b'],
        params['w4v'], params['w4q'], params['w4mlu'], params['vq_bias'],
        params['w_trans'], params['trans_b'], params['resize_w'],
    )

    out, out_counter, qenc = pl.pallas_call(
        _psac_qns_fused_kernel,
        in_specs=[_vmem_spec() for _ in args],
        out_specs=(_vmem_spec(), _vmem_spec(), _vmem_spec()),
        out_shape=(
            jax.ShapeDtypeStruct((bn, D), jnp.float32),
            jax.ShapeDtypeStruct((bn, D), jnp.float32),
            jax.ShapeDtypeStruct((bn, Lq, D), jnp.float32),
        ),
    )(*args)

    qns_embed_enc = jnp.transpose(qenc, (0, 2, 1))         # (B, D, Lq) channel-first
    return out, out_counter, vid_enc, qns_embed_enc


# --------------------------- deterministic parameters ----------------------------
def pos_encoding(length, channels, min_timescale=1.0, max_timescale=1.0e4):
    position = jnp.arange(length, dtype=jnp.float32)
    num_timescales = channels // 2
    log_inc = math.log(float(max_timescale) / float(min_timescale)) / max(num_timescales - 1, 1)
    inv_ts = min_timescale * jnp.exp(
        jnp.arange(num_timescales, dtype=jnp.float32) * -log_inc)
    scaled = position[:, None] * inv_ts[None, :]
    return jnp.concatenate([jnp.sin(scaled), jnp.cos(scaled)], axis=1)     # (L, C)


def init_params(key):
    ks = jax.random.split(key, 16)
    it = iter(ks)

    def nrm(shape, scale=0.05):
        return scale * jax.random.normal(next(it), shape, jnp.float32)

    p = {}
    # embedding = nn.Linear(768 -> dim_embed); conv1d = Initialized_Conv1d(Dword, D, no bias)
    p['emb_w'] = nrm((BERT_DIM, DIM_EMBED))
    p['emb_b'] = jnp.zeros((1, DIM_EMBED), jnp.float32)
    p['conv1d_w'] = nrm((DWORD, D))
    # Highway(2): per layer rows [i*D:(i+1)*D]; cols [0:D]=linear, [D:2D]=gate
    p['hw_w'] = nrm((2 * D, 2 * D))
    p['hw_b'] = jnp.zeros((2, 2 * D), jnp.float32)
    # emb_enc EncoderBlock(conv_num=4, k=7)
    p['ln_cg'] = jnp.ones((CONV_NUM_EMB, D), jnp.float32)
    p['ln_cb'] = jnp.zeros((CONV_NUM_EMB, D), jnp.float32)
    p['dw'] = nrm((CONV_NUM_EMB * K_EMB, D))            # depthwise taps (no bias)
    p['pw_w'] = nrm((CONV_NUM_EMB * D, D))              # pointwise 1x1 convs
    p['pw_b'] = jnp.zeros((CONV_NUM_EMB, D), jnp.float32)
    p['ln1_g'] = jnp.ones((1, D), jnp.float32)
    p['ln1_b'] = jnp.zeros((1, D), jnp.float32)
    p['ln2_g'] = jnp.ones((1, D), jnp.float32)
    p['ln2_b'] = jnp.zeros((1, D), jnp.float32)
    # self-attention projections fused: [query | key | value], bias-free
    p['att_w'] = nrm((D, 3 * D))
    p['ffn1_w'] = nrm((D, D)); p['ffn1_b'] = jnp.zeros((1, D), jnp.float32)
    p['ffn2_w'] = nrm((D, D)); p['ffn2_b'] = jnp.zeros((1, D), jnp.float32)
    # VQAttention_counter3a
    p['w4v'] = nrm((1, CTX_DIM_M))
    p['w4q'] = nrm((1, D))
    p['w4mlu'] = nrm((1, CTX_DIM_M))
    p['vq_bias'] = jnp.zeros((1, 1), jnp.float32)
    # weight_norm(nn.Linear(ctx_dim, ctx_dim_m)): fold g*v/||v|| once (input-independent)
    trans_v = nrm((CTX_DIM_M, CTX_DIM))
    trans_g = jnp.ones((CTX_DIM_M, 1), jnp.float32)
    w_eff = trans_g * trans_v / jnp.sqrt(jnp.sum(trans_v ** 2, axis=1, keepdims=True))
    p['w_trans'] = w_eff.T                              # (CTX_DIM, CTX_DIM_M)
    p['trans_b'] = jnp.zeros((1, CTX_DIM_M), jnp.float32)
    # vq_resizer = Initialized_Conv1d(4D -> D, bias=False)
    p['resize_w'] = nrm((4 * D, D))
    # positional encoding (input-independent), tiled over the flattened batch
    p['pos2d'] = jnp.tile(pos_encoding(Lq, D), (B, 1))
    return p


# ------------------------------------- main --------------------------------------
if __name__ == "__main__":
    root = jax.random.PRNGKey(0)
    kp, kv, kq = jax.random.split(root, 3)
    params = init_params(kp)
    vid_enc = jax.random.normal(kv, (B, Lc, CTX_DIM), jnp.float32)
    qns = jax.random.normal(kq, (B, Lq, BERT_DIM), jnp.float32)

    fwd = jax.jit(encoder_qns_psac_counter3a_forward)
    out, out_counter, vid_out, qns_embed_enc = fwd(params, vid_enc, qns)
    jax.block_until_ready((out, out_counter, vid_out, qns_embed_enc))

    assert out.shape == (B, D)
    assert out_counter.shape == (B, D)
    assert vid_out.shape == (B, Lc, CTX_DIM)
    assert qns_embed_enc.shape == (B, D, Lq)
    for t in (out, out_counter, qns_embed_enc):
        assert bool(jnp.all(jnp.isfinite(t)))
    print("KERNEL_OK")
</pallas_src>

<mosaic_0001>
module attributes {stable_mosaic.version = 11 : i64} {
  func.func @_psac_qns_fused_kernel(%arg0: memref<32x64xf32, #tpu.memory_space<vmem>>, %arg1: memref<32x64xf32, #tpu.memory_space<vmem>>, %arg2: memref<2x16xf32, #tpu.memory_space<vmem>>, %arg3: memref<32x32xf32, #tpu.memory_space<vmem>>, %arg4: memref<64x32xf32, #tpu.memory_space<vmem>>, %arg5: memref<1x32xf32, #tpu.memory_space<vmem>>, %arg6: memref<32x32xf32, #tpu.memory_space<vmem>>, %arg7: memref<64x64xf32, #tpu.memory_space<vmem>>, %arg8: memref<2x64xf32, #tpu.memory_space<vmem>>, %arg9: memref<4x32xf32, #tpu.memory_space<vmem>>, %arg10: memref<4x32xf32, #tpu.memory_space<vmem>>, %arg11: memref<28x32xf32, #tpu.memory_space<vmem>>, %arg12: memref<128x32xf32, #tpu.memory_space<vmem>>, %arg13: memref<4x32xf32, #tpu.memory_space<vmem>>, %arg14: memref<1x32xf32, #tpu.memory_space<vmem>>, %arg15: memref<1x32xf32, #tpu.memory_space<vmem>>, %arg16: memref<1x32xf32, #tpu.memory_space<vmem>>, %arg17: memref<1x32xf32, #tpu.memory_space<vmem>>, %arg18: memref<32x96xf32, #tpu.memory_space<vmem>>, %arg19: memref<32x32xf32, #tpu.memory_space<vmem>>, %arg20: memref<1x32xf32, #tpu.memory_space<vmem>>, %arg21: memref<32x32xf32, #tpu.memory_space<vmem>>, %arg22: memref<1x32xf32, #tpu.memory_space<vmem>>, %arg23: memref<1x32xf32, #tpu.memory_space<vmem>>, %arg24: memref<1x32xf32, #tpu.memory_space<vmem>>, %arg25: memref<1x32xf32, #tpu.memory_space<vmem>>, %arg26: memref<1x1xf32, #tpu.memory_space<vmem>>, %arg27: memref<64x32xf32, #tpu.memory_space<vmem>>, %arg28: memref<1x32xf32, #tpu.memory_space<vmem>>, %arg29: memref<128x32xf32, #tpu.memory_space<vmem>>, %arg30: memref<2x32xf32, #tpu.memory_space<vmem>>, %arg31: memref<2x32xf32, #tpu.memory_space<vmem>>, %arg32: memref<2x16x32xf32, #tpu.memory_space<vmem>>) attributes {dimension_semantics = [], scalar_prefetch = 0 : i64, scratch_operands = 0 : i64, tpu.core_type = #tpu.core_type<tc>} {
    %c0 = arith.constant 0 : index
    %c0_0 = arith.constant 0 : index
    %0 = vector.load %arg2[%c0, %c0_0] : memref<2x16xf32, #tpu.memory_space<vmem>>, vector<2x16xf32>
    %c0_1 = arith.constant 0 : index
    %c0_2 = arith.constant 0 : index
    %1 = vector.load %arg0[%c0_1, %c0_2] : memref<32x64xf32, #tpu.memory_space<vmem>>, vector<32x64xf32>
    %c0_3 = arith.constant 0 : index
    %c0_4 = arith.constant 0 : index
    %2 = vector.load %arg4[%c0_3, %c0_4] : memref<64x32xf32, #tpu.memory_space<vmem>>, vector<64x32xf32>
    %cst = arith.constant dense<0.000000e+00> : vector<32x32xf32>
    %3 = tpu.matmul %1, %2, %cst {dimension_numbers = #tpu.dot_dimension_numbers<[1], [0], [0], [1], [0, 0, 1, 1], [], []>} : vector<32x64xf32>, vector<64x32xf32>, vector<32x32xf32> -> vector<32x32xf32>
    %c0_5 = arith.constant 0 : index
    %c0_6 = arith.constant 0 : index
    %4 = vector.load %arg5[%c0_5, %c0_6] : memref<1x32xf32, #tpu.memory_space<vmem>>, vector<1x32xf32>
    %5 = vector.broadcast %4 : vector<1x32xf32> to vector<32x32xf32>
    %6 = arith.addf %3, %5 : vector<32x32xf32>
    %c0_7 = arith.constant 0 : index
    %c0_8 = arith.constant 0 : index
    %7 = vector.load %arg6[%c0_7, %c0_8] : memref<32x32xf32, #tpu.memory_space<vmem>>, vector<32x32xf32>
    %cst_9 = arith.constant dense<0.000000e+00> : vector<32x32xf32>
    %8 = tpu.matmul %6, %7, %cst_9 {dimension_numbers = #tpu.dot_dimension_numbers<[1], [0], [0], [1], [0, 0, 1, 1], [], []>} : vector<32x32xf32>, vector<32x32xf32>, vector<32x32xf32> -> vector<32x32xf32>
    %c0_10 = arith.constant 0 : index
    %c0_11 = arith.constant 0 : index
    %9 = vector.load %arg7[%c0_10, %c0_11] : memref<64x64xf32, #tpu.memory_space<vmem>>, vector<64x64xf32>
    %c0_12 = arith.constant 0 : index
    %c0_13 = arith.constant 0 : index
    %10 = vector.load %arg8[%c0_12, %c0_13] : memref<2x64xf32, #tpu.memory_space<vmem>>, vector<2x64xf32>
    %11 = vector.extract_strided_slice %9 {offsets = [0, 0], sizes = [32, 64], strides = [1, 1]} : vector<64x64xf32> to vector<32x64xf32>
    %cst_14 = arith.constant dense<0.000000e+00> : vector<32x64xf32>
    %12 = tpu.matmul %8, %11, %cst_14 {dimension_numbers = #tpu.dot_dimension_numbers<[1], [0], [0], [1], [0, 0, 1, 1], [], []>} : vector<32x32xf32>, vector<32x64xf32>, vector<32x64xf32> -> vector<32x64xf32>
    %13 = vector.extract_strided_slice %10 {offsets = [0, 0], sizes = [1, 64], strides = [1, 1]} : vector<2x64xf32> to vector<1x64xf32>
    %14 = vector.broadcast %13 : vector<1x64xf32> to vector<32x64xf32>
    %15 = arith.addf %12, %14 : vector<32x64xf32>
    %16 = vector.extract_strided_slice %15 {offsets = [0, 0], sizes = [32, 32], strides = [1, 1]} : vector<32x64xf32> to vector<32x32xf32>
    %17 = vector.extract_strided_slice %15 {offsets = [0, 32], sizes = [32, 32], strides = [1, 1]} : vector<32x64xf32> to vector<32x32xf32>
    %18 = arith.negf %17 : vector<32x32xf32>
    %19 = math.exp %18 : vector<32x32xf32>
    %cst_15 = arith.constant 1.000000e+00 : f32
    %20 = vector.broadcast %cst_15 : f32 to vector<32x32xf32>
    %21 = arith.addf %20, %19 : vector<32x32xf32>
    %22 = arith.divf %20, %21 : vector<32x32xf32>
    %23 = arith.mulf %22, %16 : vector<32x32xf32>
    %cst_16 = arith.constant 1.000000e+00 : f32
    %24 = vector.broadcast %cst_16 : f32 to vector<32x32xf32>
    %25 = arith.subf %24, %22 : vector<32x32xf32>
    %26 = arith.mulf %25, %8 : vector<32x32xf32>
    %27 = arith.addf %23, %26 : vector<32x32xf32>
    %28 = vector.extract_strided_slice %9 {offsets = [32, 0], sizes = [32, 64], strides = [1, 1]} : vector<64x64xf32> to vector<32x64xf32>
    %cst_17 = arith.constant dense<0.000000e+00> : vector<32x64xf32>
    %29 = tpu.matmul %27, %28, %cst_17 {dimension_numbers = #tpu.dot_dimension_numbers<[1], [0], [0], [1], [0, 0, 1, 1], [], []>} : vector<32x32xf32>, vector<32x64xf32>, vector<32x64xf32> -> vector<32x64xf32>
    %30 = vector.extract_strided_slice %10 {offsets = [1, 0], sizes = [1, 64], strides = [1, 1]} : vector<2x64xf32> to vector<1x64xf32>
    %31 = vector.broadcast %30 : vector<1x64xf32> to vector<32x64xf32>
    %32 = arith.addf %29, %31 : vector<32x64xf32>
    %33 = vector.extract_strided_slice %32 {offsets = [0, 0], sizes = [32, 32], strides = [1, 1]} : vector<32x64xf32> to vector<32x32xf32>
    %34 = vector.extract_strided_slice %32 {offsets = [0, 32], sizes = [32, 32], strides = [1, 1]} : vector<32x64xf32> to vector<32x32xf32>
    %35 = arith.negf %34 : vector<32x32xf32>
    %36 = math.exp %35 : vector<32x32xf32>
    %cst_18 = arith.constant 1.000000e+00 : f32
    %37 = vector.broadcast %cst_18 : f32 to vector<32x32xf32>
    %38 = arith.addf %37, %36 : vector<32x32xf32>
    %39 = arith.divf %37, %38 : vector<32x32xf32>
    %40 = arith.mulf %39, %33 : vector<32x32xf32>
    %cst_19 = arith.constant 1.000000e+00 : f32
    %41 = vector.broadcast %cst_19 : f32 to vector<32x32xf32>
    %42 = arith.subf %41, %39 : vector<32x32xf32>
    %43 = arith.mulf %42, %27 : vector<32x32xf32>
    %44 = arith.addf %40, %43 : vector<32x32xf32>
    %c0_20 = arith.constant 0 : index
    %c0_21 = arith.constant 0 : index
    %45 = vector.load %arg3[%c0_20, %c0_21] : memref<32x32xf32, #tpu.memory_space<vmem>>, vector<32x32xf32>
    %46 = arith.addf %44, %45 : vector<32x32xf32>
    %c0_22 = arith.constant 0 : index
    %c0_23 = arith.constant 0 : index
    %47 = vector.load %arg9[%c0_22, %c0_23] : memref<4x32xf32, #tpu.memory_space<vmem>>, vector<4x32xf32>
    %c0_24 = arith.constant 0 : index
    %c0_25 = arith.constant 0 : index
    %48 = vector.load %arg10[%c0_24, %c0_25] : memref<4x32xf32, #tpu.memory_space<vmem>>, vector<4x32xf32>
    %c0_26 = arith.constant 0 : index
    %c0_27 = arith.constant 0 : index
    %49 = vector.load %arg11[%c0_26, %c0_27] : memref<28x32xf32, #tpu.memory_space<vmem>>, vector<28x32xf32>
    %c0_28 = arith.constant 0 : index
    %c0_29 = arith.constant 0 : index
    %50 = vector.load %arg12[%c0_28, %c0_29] : memref<128x32xf32, #tpu.memory_space<vmem>>, vector<128x32xf32>
    %c0_30 = arith.constant 0 : index
    %c0_31 = arith.constant 0 : index
    %51 = vector.load %arg13[%c0_30, %c0_31] : memref<4x32xf32, #tpu.memory_space<vmem>>, vector<4x32xf32>
    %cst_32 = arith.constant 0.000000e+00 : f32
    %52 = vector.broadcast %cst_32 : f32 to vector<3x32xf32>
    %53 = vector.extract_strided_slice %47 {offsets = [0, 0], sizes = [1, 32], strides = [1, 1]} : vector<4x32xf32> to vector<1x32xf32>
    %54 = vector.extract_strided_slice %48 {offsets = [0, 0], sizes = [1, 32], strides = [1, 1]} : vector<4x32xf32> to vector<1x32xf32>
    %cst_33 = arith.constant dense<0.000000e+00> : vector<32xf32>
    %55 = vector.multi_reduction <add>, %46, %cst_33 [1] : vector<32x32xf32> to vector<32xf32>
    %56 = vector.shape_cast %55 : vector<32xf32> to vector<32x1xf32>
    %cst_34 = arith.constant 3.200000e+01 : f32
    %57 = vector.broadcast %cst_34 : f32 to vector<32x1xf32>
    %58 = arith.divf %56, %57 : vector<32x1xf32>
    %59 = vector.broadcast %58 : vector<32x1xf32> to vector<32x32xf32>
    %60 = arith.subf %46, %59 : vector<32x32xf32>
    %61 = arith.mulf %60, %60 : vector<32x32xf32>
    %cst_35 = arith.constant dense<0.000000e+00> : vector<32xf32>
    %62 = vector.multi_reduction <add>, %61, %cst_35 [1] : vector<32x32xf32> to vector<32xf32>
    %63 = vector.shape_cast %62 : vector<32xf32> to vector<32x1xf32>
    %cst_36 = arith.constant 3.200000e+01 : f32
    %64 = vector.broadcast %cst_36 : f32 to vector<32x1xf32>
    %65 = arith.divf %63, %64 : vector<32x1xf32>
    %66 = vector.broadcast %58 : vector<32x1xf32> to vector<32x32xf32>
    %67 = arith.subf %46, %66 : vector<32x32xf32>
    %cst_37 = arith.constant 9.99999974E-6 : f32
    %68 = vector.broadcast %cst_37 : f32 to vector<32x1xf32>
    %69 = arith.addf %65, %68 : vector<32x1xf32>
    %70 = math.rsqrt %69 : vector<32x1xf32>
    %71 = vector.broadcast %70 : vector<32x1xf32> to vector<32x32xf32>
    %72 = arith.mulf %67, %71 : vector<32x32xf32>
    %73 = vector.broadcast %53 : vector<1x32xf32> to vector<32x32xf32>
    %74 = arith.mulf %72, %73 : vector<32x32xf32>
    %75 = vector.broadcast %54 : vector<1x32xf32> to vector<32x32xf32>
    %76 = arith.addf %74, %75 : vector<32x32xf32>
    %77 = vector.extract_strided_slice %76 {offsets = [0, 0], sizes = [16, 32], strides = [1, 1]} : vector<32x32xf32> to vector<16x32xf32>
    %78 = tpu.concatenate %52, %77, %52 in 0 : vector<3x32xf32>, vector<16x32xf32>, vector<3x32xf32> -> vector<22x32xf32>
    %cst_38 = arith.constant 0.000000e+00 : f32
    %79 = vector.broadcast %cst_38 : f32 to vector<16x32xf32>
    %80 = vector.extract_strided_slice %49 {offsets = [0, 0], sizes = [1, 32], strides = [1, 1]} : vector<28x32xf32> to vector<1x32xf32>
    %81 = vector.extract_strided_slice %78 {offsets = [0, 0], sizes = [16, 32], strides = [1, 1]} : vector<22x32xf32> to vector<16x32xf32>
    %82 = vector.broadcast %80 : vector<1x32xf32> to vector<16x32xf32>
    %83 = arith.mulf %81, %82 : vector<16x32xf32>
    %84 = arith.addf %79, %83 : vector<16x32xf32>
    %85 = vector.extract_strided_slice %49 {offsets = [1, 0], sizes = [1, 32], strides = [1, 1]} : vector<28x32xf32> to vector<1x32xf32>
    %86 = vector.extract_strided_slice %78 {offsets = [1, 0], sizes = [16, 32], strides = [1, 1]} : vector<22x32xf32> to vector<16x32xf32>
    %87 = vector.broadcast %85 : vector<1x32xf32> to vector<16x32xf32>
    %88 = arith.mulf %86, %87 : vector<16x32xf32>
    %89 = arith.addf %84, %88 : vector<16x32xf32>
    %90 = vector.extract_strided_slice %49 {offsets = [2, 0], sizes = [1, 32], strides = [1, 1]} : vector<28x32xf32> to vector<1x32xf32>
    %91 = vector.extract_strided_slice %78 {offsets = [2, 0], sizes = [16, 32], strides = [1, 1]} : vector<22x32xf32> to vector<16x32xf32>
    %92 = vector.broadcast %90 : vector<1x32xf32> to vector<16x32xf32>
    %93 = arith.mulf %91, %92 : vector<16x32xf32>
    %94 = arith.addf %89, %93 : vector<16x32xf32>
    %95 = vector.extract_strided_slice %49 {offsets = [3, 0], sizes = [1, 32], strides = [1, 1]} : vector<28x32xf32> to vector<1x32xf32>
    %96 = vector.extract_strided_slice %78 {offsets = [3, 0], sizes = [16, 32], strides = [1, 1]} : vector<22x32xf32> to vector<16x32xf32>
    %97 = vector.broadcast %95 : vector<1x32xf32> to vector<16x32xf32>
    %98 = arith.mulf %96, %97 : vector<16x32xf32>
    %99 = arith.addf %94, %98 : vector<16x32xf32>
    %100 = vector.extract_strided_slice %49 {offsets = [4, 0], sizes = [1, 32], strides = [1, 1]} : vector<28x32xf32> to vector<1x32xf32>
    %101 = vector.extract_strided_slice %78 {offsets = [4, 0], sizes = [16, 32], strides = [1, 1]} : vector<22x32xf32> to vector<16x32xf32>
    %102 = vector.broadcast %100 : vector<1x32xf32> to vector<16x32xf32>
    %103 = arith.mulf %101, %102 : vector<16x32xf32>
    %104 = arith.addf %99, %103 : vector<16x32xf32>
    %105 = vector.extract_strided_slice %49 {offsets = [5, 0], sizes = [1, 32], strides = [1, 1]} : vector<28x32xf32> to vector<1x32xf32>
    %106 = vector.extract_strided_slice %78 {offsets = [5, 0], sizes = [16, 32], strides = [1, 1]} : vector<22x32xf32> to vector<16x32xf32>
    %107 = vector.broadcast %105 : vector<1x32xf32> to vector<16x32xf32>
    %108 = arith.mulf %106, %107 : vector<16x32xf32>
    %109 = arith.addf %104, %108 : vector<16x32xf32>
    %110 = vector.extract_strided_slice %49 {offsets = [6, 0], sizes = [1, 32], strides = [1, 1]} : vector<28x32xf32> to vector<1x32xf32>
    %111 = vector.extract_strided_slice %78 {offsets = [6, 0], sizes = [16, 32], strides = [1, 1]} : vector<22x32xf32> to vector<16x32xf32>
    %112 = vector.broadcast %110 : vector<1x32xf32> to vector<16x32xf32>
    %113 = arith.mulf %111, %112 : vector<16x32xf32>
    %114 = arith.addf %109, %113 : vector<16x32xf32>
    %115 = vector.extract_strided_slice %76 {offsets = [16, 0], sizes = [16, 32], strides = [1, 1]} : vector<32x32xf32> to vector<16x32xf32>
    %116 = tpu.concatenate %52, %115, %52 in 0 : vector<3x32xf32>, vector<16x32xf32>, vector<3x32xf32> -> vector<22x32xf32>
    %cst_39 = arith.constant 0.000000e+00 : f32
    %117 = vector.broadcast %cst_39 : f32 to vector<16x32xf32>
    %118 = vector.extract_strided_slice %49 {offsets = [0, 0], sizes = [1, 32], strides = [1, 1]} : vector<28x32xf32> to vector<1x32xf32>
    %119 = vector.extract_strided_slice %116 {offsets = [0, 0], sizes = [16, 32], strides = [1, 1]} : vector<22x32xf32> to vector<16x32xf32>
    %120 = vector.broadcast %118 : vector<1x32xf32> to vector<16x32xf32>
    %121 = arith.mulf %119, %120 : vector<16x32xf32>
    %122 = arith.addf %117, %121 : vector<16x32xf32>
    %123 = vector.extract_strided_slice %49 {offsets = [1, 0], sizes = [1, 32], strides = [1, 1]} : vector<28x32xf32> to vector<1x32xf32>
    %124 = vector.extract_strided_slice %116 {offsets = [1, 0], sizes = [16, 32], strides = [1, 1]} : vector<22x32xf32> to vector<16x32xf32>
    %125 = vector.broadcast %123 : vector<1x32xf32> to vector<16x32xf32>
    %126 = arith.mulf %124, %125 : vector<16x32xf32>
    %127 = arith.addf %122, %126 : vector<16x32xf32>
    %128 = vector.extract_strided_slice %49 {offsets = [2, 0], sizes = [1, 32], strides = [1, 1]} : vector<28x32xf32> to vector<1x32xf32>
    %129 = vector.extract_strided_slice %116 {offsets = [2, 0], sizes = [16, 32], strides = [1, 1]} : vector<22x32xf32> to vector<16x32xf32>
    %130 = vector.broadcast %128 : vector<1x32xf32> to vector<16x32xf32>
    %131 = arith.mulf %129, %130 : vector<16x32xf32>
    %132 = arith.addf %127, %131 : vector<16x32xf32>
    %133 = vector.extract_strided_slice %49 {offsets = [3, 0], sizes = [1, 32], strides = [1, 1]} : vector<28x32xf32> to vector<1x32xf32>
    %134 = vector.extract_strided_slice %116 {offsets = [3, 0], sizes = [16, 32], strides = [1, 1]} : vector<22x32xf32> to vector<16x32xf32>
    %135 = vector.broadcast %133 : vector<1x32xf32> to vector<16x32xf32>
    %136 = arith.mulf %134, %135 : vector<16x32xf32>
    %137 = arith.addf %132, %136 : vector<16x32xf32>
    %138 = vector.extract_strided_slice %49 {offsets = [4, 0], sizes = [1, 32], strides = [1, 1]} : vector<28x32xf32> to vector<1x32xf32>
    %139 = vector.extract_strided_slice %116 {offsets = [4, 0], sizes = [16, 32], strides = [1, 1]} : vector<22x32xf32> to vector<16x32xf32>
    %140 = vector.broadcast %138 : vector<1x32xf32> to vector<16x32xf32>
    %141 = arith.mulf %139, %140 : vector<16x32xf32>
    %142 = arith.addf %137, %141 : vector<16x32xf32>
    %143 = vector.extract_strided_slice %49 {offsets = [5, 0], sizes = [1, 32], strides = [1, 1]} : vector<28x32xf32> to vector<1x32xf32>
    %144 = vector.extract_strided_slice %116 {offsets = [5, 0], sizes = [16, 32], strides = [1, 1]} : vector<22x32xf32> to vector<16x32xf32>
    %145 = vector.broadcast %143 : vector<1x32xf32> to vector<16x32xf32>
    %146 = arith.mulf %144, %145 : vector<16x32xf32>
    %147 = arith.addf %142, %146 : vector<16x32xf32>
    %148 = vector.extract_strided_slice %49 {offsets = [6, 0], sizes = [1, 32], strides = [1, 1]} : vector<28x32xf32> to vector<1x32xf32>
    %149 = vector.extract_strided_slice %116 {offsets = [6, 0], sizes = [16, 32], strides = [1, 1]} : vector<22x32xf32> to vector<16x32xf32>
    %150 = vector.broadcast %148 : vector<1x32xf32> to vector<16x32xf32>
    %151 = arith.mulf %149, %150 : vector<16x32xf32>
    %152 = arith.addf %147, %151 : vector<16x32xf32>
    %153 = tpu.concatenate %114, %152 in 0 : vector<16x32xf32>, vector<16x32xf32> -> vector<32x32xf32>
    %154 = vector.extract_strided_slice %50 {offsets = [0, 0], sizes = [32, 32], strides = [1, 1]} : vector<128x32xf32> to vector<32x32xf32>
    %cst_40 = arith.constant dense<0.000000e+00> : vector<32x32xf32>
    %155 = tpu.matmul %153, %154, %cst_40 {dimension_numbers = #tpu.dot_dimension_numbers<[1], [0], [0], [1], [0, 0, 1, 1], [], []>} : vector<32x32xf32>, vector<32x32xf32>, vector<32x32xf32> -> vector<32x32xf32>
    %156 = vector.extract_strided_slice %51 {offsets = [0, 0], sizes = [1, 32], strides = [1, 1]} : vector<4x32xf32> to vector<1x32xf32>
    %157 = vector.broadcast %156 : vector<1x32xf32> to vector<32x32xf32>
    %158 = arith.addf %155, %157 : vector<32x32xf32>
    %cst_41 = arith.constant 0.000000e+00 : f32
    %159 = vector.broadcast %cst_41 : f32 to vector<32x32xf32>
    %160 = arith.maximumf %158, %159 : vector<32x32xf32>
    %161 = arith.addf %160, %46 : vector<32x32xf32>
    %162 = vector.extract_strided_slice %47 {offsets = [1, 0], sizes = [1, 32], strides = [1, 1]} : vector<4x32xf32> to vector<1x32xf32>
    %163 = vector.extract_strided_slice %48 {offsets = [1, 0], sizes = [1, 32], strides = [1, 1]} : vector<4x32xf32> to vector<1x32xf32>
    %cst_42 = arith.constant dense<0.000000e+00> : vector<32xf32>
    %164 = vector.multi_reduction <add>, %161, %cst_42 [1] : vector<32x32xf32> to vector<32xf32>
    %165 = vector.shape_cast %164 : vector<32xf32> to vector<32x1xf32>
    %cst_43 = arith.constant 3.200000e+01 : f32
    %166 = vector.broadcast %cst_43 : f32 to vector<32x1xf32>
    %167 = arith.divf %165, %166 : vector<32x1xf32>
    %168 = vector.broadcast %167 : vector<32x1xf32> to vector<32x32xf32>
    %169 = arith.subf %161, %168 : vector<32x32xf32>
    %170 = arith.mulf %169, %169 : vector<32x32xf32>
    %cst_44 = arith.constant dense<0.000000e+00> : vector<32xf32>
    %171 = vector.multi_reduction <add>, %170, %cst_44 [1] : vector<32x32xf32> to vector<32xf32>
    %172 = vector.shape_cast %171 : vector<32xf32> to vector<32x1xf32>
    %cst_45 = arith.constant 3.200000e+01 : f32
    %173 = vector.broadcast %cst_45 : f32 to vector<32x1xf32>
    %174 = arith.divf %172, %173 : vector<32x1xf32>
    %175 = vector.broadcast %167 : vector<32x1xf32> to vector<32x32xf32>
    %176 = arith.subf %161, %175 : vector<32x32xf32>
    %cst_46 = arith.constant 9.99999974E-6 : f32
    %177 = vector.broadcast %cst_46 : f32 to vector<32x1xf32>
    %178 = arith.addf %174, %177 : vector<32x1xf32>
    %179 = math.rsqrt %178 : vector<32x1xf32>
    %180 = vector.broadcast %179 : vector<32x1xf32> to vector<32x32xf32>
    %181 = arith.mulf %176, %180 : vector<32x32xf32>
    %182 = vector.broadcast %162 : vector<1x32xf32> to vector<32x32xf32>
    %183 = arith.mulf %181, %182 : vector<32x32xf32>
    %184 = vector.broadcast %163 : vector<1x32xf32> to vector<32x32xf32>
    %185 = arith.addf %183, %184 : vector<32x32xf32>
    %186 = vector.extract_strided_slice %185 {offsets = [0, 0], sizes = [16, 32], strides = [1, 1]} : vector<32x32xf32> to vector<16x32xf32>
    %187 = tpu.concatenate %52, %186, %52 in 0 : vector<3x32xf32>, vector<16x32xf32>, vector<3x32xf32> -> vector<22x32xf32>
    %cst_47 = arith.constant 0.000000e+00 : f32
    %188 = vector.broadcast %cst_47 : f32 to vector<16x32xf32>
    %189 = vector.extract_strided_slice %49 {offsets = [7, 0], sizes = [1, 32], strides = [1, 1]} : vector<28x32xf32> to vector<1x32xf32>
    %190 = vector.extract_strided_slice %187 {offsets = [0, 0], sizes = [16, 32], strides = [1, 1]} : vector<22x32xf32> to vector<16x32xf32>
    %191 = vector.broadcast %189 : vector<1x32xf32> to vector<16x32xf32>
    %192 = arith.mulf %190, %191 : vector<16x32xf32>
    %193 = arith.addf %188, %192 : vector<16x32xf32>
    %194 = vector.extract_strided_slice %49 {offsets = [8, 0], sizes = [1, 32], strides = [1, 1]} : vector<28x32xf32> to vector<1x32xf32>
    %195 = vector.extract_strided_slice %187 {offsets = [1, 0], sizes = [16, 32], strides = [1, 1]} : vector<22x32xf32> to vector<16x32xf32>
    %196 = vector.broadcast %194 : vector<1x32xf32> to vector<16x32xf32>
    %197 = arith.mulf %195, %196 : vector<16x32xf32>
    %198 = arith.addf %193, %197 : vector<16x32xf32>
    %199 = vector.extract_strided_slice %49 {offsets = [9, 0], sizes = [1, 32], strides = [1, 1]} : vector<28x32xf32> to vector<1x32xf32>
    %200 = vector.extract_strided_slice %187 {offsets = [2, 0], sizes = [16, 32], strides = [1, 1]} : vector<22x32xf32> to vector<16x32xf32>
    %201 = vector.broadcast %199 : vector<1x32xf32> to vector<16x32xf32>
    %202 = arith.mulf %200, %201 : vector<16x32xf32>
    %203 = arith.addf %198, %202 : vector<16x32xf32>
    %204 = vector.extract_strided_slice %49 {offsets = [10, 0], sizes = [1, 32], strides = [1, 1]} : vector<28x32xf32> to vector<1x32xf32>
    %205 = vector.extract_strided_slice %187 {offsets = [3, 0], sizes = [16, 32], strides = [1, 1]} : vector<22x32xf32> to vector<16x32xf32>
    %206 = vector.broadcast %204 : vector<1x32xf32> to vector<16x32xf32>
    %207 = arith.mulf %205, %206 : vector<16x32xf32>
    %208 = arith.addf %203, %207 : vector<16x32xf32>
    %209 = vector.extract_strided_slice %49 {offsets = [11, 0], sizes = [1, 32], strides = [1, 1]} : vector<28x32xf32> to vector<1x32xf32>
    %210 = vector.extract_strided_slice %187 {offsets = [4, 0], sizes = [16, 32], strides = [1, 1]} : vector<22x32xf32> to vector<16x32xf32>
    %211 = vector.broadcast %209 : vector<1x32xf32> to vector<16x32xf32>
    %212 = arith.mulf %210, %211 : vector<16x32xf32>
    %213 = arith.addf %208, %212 : vector<16x32xf32>
    %214 = vector.extract_strided_slice %49 {offsets = [12, 0], sizes = [1, 32], strides = [1, 1]} : vector<28x32xf32> to vector<1x32xf32>
    %215 = vector.extract_strided_slice %187 {offsets = [5, 0], sizes = [16, 32], strides = [1, 1]} : vector<22x32xf32> to vector<16x32xf32>
    %216 = vector.broadcast %214 : vector<1x32xf32> to vector<16x32xf32>
    %217 = arith.mulf %215, %216 : vector<16x32xf32>
    %218 = arith.addf %213, %217 : vector<16x32xf32>
    %219 = vector.extract_strided_slice %49 {offsets = [13, 0], sizes = [1, 32], strides = [1, 1]} : vector<28x32xf32> to vector<1x32xf32>
    %220 = vector.extract_strided_slice %187 {offsets = [6, 0], sizes = [16, 32], strides = [1, 1]} : vector<22x32xf32> to vector<16x32xf32>
    %221 = vector.broadcast %219 : vector<1x32xf32> to vector<16x32xf32>
    %222 = arith.mulf %220, %221 : vector<16x32xf32>
    %223 = arith.addf %218, %222 : vector<16x32xf32>
    %224 = vector.extract_strided_slice %185 {offsets = [16, 0], sizes = [16, 32], strides = [1, 1]} : vector<32x32xf32> to vector<16x32xf32>
    %225 = tpu.concatenate %52, %224, %52 in 0 : vector<3x32xf32>, vector<16x32xf32>, vector<3x32xf32> -> vector<22x32xf32>
    %cst_48 = arith.constant 0.000000e+00 : f32
    %226 = vector.broadcast %cst_48 : f32 to vector<16x32xf32>
    %227 = vector.extract_strided_slice %49 {offsets = [7, 0], sizes = [1, 32], strides = [1, 1]} : vector<28x32xf32> to vector<1x32xf32>
    %228 = vector.extract_strided_slice %225 {offsets = [0, 0], sizes = [16, 32], strides = [1, 1]} : vector<22x32xf32> to vector<16x32xf32>
    %229 = vector.broadcast %227 : vector<1x32xf32> to vector<16x32xf32>
    %230 = arith.mulf %228, %229 : vector<16x32xf32>
    %231 = arith.addf %226, %230 : vector<16x32xf32>
    %232 = vector.extract_strided_slice %49 {offsets = [8, 0], sizes = [1, 32], strides = [1, 1]} : vector<28x32xf32> to vector<1x32xf32>
    %233 = vector.extract_strided_slice %225 {offsets = [1, 0], sizes = [16, 32], strides = [1, 1]} : vector<22x32xf32> to vector<16x32xf32>
    %234 = vector.broadcast %232 : vector<1x32xf32> to vector<16x32xf32>
    %235 = arith.mulf %233, %234 : vector<16x32xf32>
    %236 = arith.addf %231, %235 : vector<16x32xf32>
    %237 = vector.extract_strided_slice %49 {offsets = [9, 0], sizes = [1, 32], strides = [1, 1]} : vector<28x32xf32> to vector<1x32xf32>
    %238 = vector.extract_strided_slice %225 {offsets = [2, 0], sizes = [16, 32], strides = [1, 1]} : vector<22x32xf32> to vector<16x32xf32>
    %239 = vector.broadcast %237 : vector<1x32xf32> to vector<16x32xf32>
    %240 = arith.mulf %238, %239 : vector<16x32xf32>
    %241 = arith.addf %236, %240 : vector<16x32xf32>
    %242 = vector.extract_strided_slice %49 {offsets = [10, 0], sizes = [1, 32], strides = [1, 1]} : vector<28x32xf32> to vector<1x32xf32>
    %243 = vector.extract_strided_slice %225 {offsets = [3, 0], sizes = [16, 32], strides = [1, 1]} : vector<22x32xf32> to vector<16x32xf32>
    %244 = vector.broadcast %242 : vector<1x32xf32> to vector<16x32xf32>
    %245 = arith.mulf %243, %244 : vector<16x32xf32>
    %246 = arith.addf %241, %245 : vector<16x32xf32>
    %247 = vector.extract_strided_slice %49 {offsets = [11, 0], sizes = [1, 32], strides = [1, 1]} : vector<28x32xf32> to vector<1x32xf32>
    %248 = vector.extract_strided_slice %225 {offsets = [4, 0], sizes = [16, 32], strides = [1, 1]} : vector<22x32xf32> to vector<16x32xf32>
    %249 = vector.broadcast %247 : vector<1x32xf32> to vector<16x32xf32>
    %250 = arith.mulf %248, %249 : vector<16x32xf32>
    %251 = arith.addf %246, %250 : vector<16x32xf32>
    %252 = vector.extract_strided_slice %49 {offsets = [12, 0], sizes = [1, 32], strides = [1, 1]} : vector<28x32xf32> to vector<1x32xf32>
    %253 = vector.extract_strided_slice %225 {offsets = [5, 0], sizes = [16, 32], strides = [1, 1]} : vector<22x32xf32> to vector<16x32xf32>
    %254 = vector.broadcast %252 : vector<1x32xf32> to vector<16x32xf32>
    %255 = arith.mulf %253, %254 : vector<16x32xf32>
    %256 = arith.addf %251, %255 : vector<16x32xf32>
    %257 = vector.extract_strided_slice %49 {offsets = [13, 0], sizes = [1, 32], strides = [1, 1]} : vector<28x32xf32> to vector<1x32xf32>
    %258 = vector.extract_strided_slice %225 {offsets = [6, 0], sizes = [16, 32], strides = [1, 1]} : vector<22x32xf32> to vector<16x32xf32>
    %259 = vector.broadcast %257 : vector<1x32xf32> to vector<16x32xf32>
    %260 = arith.mulf %258, %259 : vector<16x32xf32>
    %261 = arith.addf %256, %260 : vector<16x32xf32>
    %262 = tpu.concatenate %223, %261 in 0 : vector<16x32xf32>, vector<16x32xf32> -> vector<32x32xf32>
    %263 = vector.extract_strided_slice %50 {offsets = [32, 0], sizes = [32, 32], strides = [1, 1]} : vector<128x32xf32> to vector<32x32xf32>
    %cst_49 = arith.constant dense<0.000000e+00> : vector<32x32xf32>
    %264 = tpu.matmul %262, %263, %cst_49 {dimension_numbers = #tpu.dot_dimension_numbers<[1], [0], [0], [1], [0, 0, 1, 1], [], []>} : vector<32x32xf32>, vector<32x32xf32>, vector<32x32xf32> -> vector<32x32xf32>
    %265 = vector.extract_strided_slice %51 {offsets = [1, 0], sizes = [1, 32], strides = [1, 1]} : vector<4x32xf32> to vector<1x32xf32>
    %266 = vector.broadcast %265 : vector<1x32xf32> to vector<32x32xf32>
    %267 = arith.addf %264, %266 : vector<32x32xf32>
    %cst_50 = arith.constant 0.000000e+00 : f32
    %268 = vector.broadcast %cst_50 : f32 to vector<32x32xf32>
    %269 = arith.maximumf %267, %268 : vector<32x32xf32>
    %270 = arith.addf %269, %161 : vector<32x32xf32>
    %271 = vector.extract_strided_slice %47 {offsets = [2, 0], sizes = [1, 32], strides = [1, 1]} : vector<4x32xf32> to vector<1x32xf32>
    %272 = vector.extract_strided_slice %48 {offsets = [2, 0], sizes = [1, 32], strides = [1, 1]} : vector<4x32xf32> to vector<1x32xf32>
    %cst_51 = arith.constant dense<0.000000e+00> : vector<32xf32>
    %273 = vector.multi_reduction <add>, %270, %cst_51 [1] : vector<32x32xf32> to vector<32xf32>
    %274 = vector.shape_cast %273 : vector<32xf32> to vector<32x1xf32>
    %cst_52 = arith.constant 3.200000e+01 : f32
    %275 = vector.broadcast %cst_52 : f32 to vector<32x1xf32>
    %276 = arith.divf %274, %275 : vector<32x1xf32>
    %277 = vector.broadcast %276 : vector<32x1xf32> to vector<32x32xf32>
    %278 = arith.subf %270, %277 : vector<32x32xf32>
    %279 = arith.mulf %278, %278 : vector<32x32xf32>
    %cst_53 = arith.constant dense<0.000000e+00> : vector<32xf32>
    %280 = vector.multi_reduction <add>, %279, %cst_53 [1] : vector<32x32xf32> to vector<32xf32>
    %281 = vector.shape_cast %280 : vector<32xf32> to vector<32x1xf32>
    %cst_54 = arith.constant 3.200000e+01 : f32
    %282 = vector.broadcast %cst_54 : f32 to vector<32x1xf32>
    %283 = arith.divf %281, %282 : vector<32x1xf32>
    %284 = vector.broadcast %276 : vector<32x1xf32> to vector<32x32xf32>
    %285 = arith.subf %270, %284 : vector<32x32xf32>
    %cst_55 = arith.constant 9.99999974E-6 : f32
    %286 = vector.broadcast %cst_55 : f32 to vector<32x1xf32>
    %287 = arith.addf %283, %286 : vector<32x1xf32>
    %288 = math.rsqrt %287 : vector<32x1xf32>
    %289 = vector.broadcast %288 : vector<32x1xf32> to vector<32x32xf32>
    %290 = arith.mulf %285, %289 : vector<32x32xf32>
    %291 = vector.broadcast %271 : vector<1x32xf32> to vector<32x32xf32>
    %292 = arith.mulf %290, %291 : vector<32x32xf32>
    %293 = vector.broadcast %272 : vector<1x32xf32> to vector<32x32xf32>
    %294 = arith.addf %292, %293 : vector<32x32xf32>
    %295 = vector.extract_strided_slice %294 {offsets = [0, 0], sizes = [16, 32], strides = [1, 1]} : vector<32x32xf32> to vector<16x32xf32>
    %296 = tpu.concatenate %52, %295, %52 in 0 : vector<3x32xf32>, vector<16x32xf32>, vector<3x32xf32> -> vector<22x32xf32>
    %cst_56 = arith.constant 0.000000e+00 : f32
    %297 = vector.broadcast %cst_56 : f32 to vector<16x32xf32>
    %298 = vector.extract_strided_slice %49 {offsets = [14, 0], sizes = [1, 32], strides = [1, 1]} : vector<28x32xf32> to vector<1x32xf32>
    %299 = vector.extract_strided_slice %296 {offsets = [0, 0], sizes = [16, 32], strides = [1, 1]} : vector<22x32xf32> to vector<16x32xf32>
    %300 = vector.broadcast %298 : vector<1x32xf32> to vector<16x32xf32>
    %301 = arith.mulf %299, %300 : vector<16x32xf32>
    %302 = arith.addf %297, %301 : vector<16x32xf32>
    %303 = vector.extract_strided_slice %49 {offsets = [15, 0], sizes = [1, 32], strides = [1, 1]} : vector<28x32xf32> to vector<1x32xf32>
    %304 = vector.extract_strided_slice %296 {offsets = [1, 0], sizes = [16, 32], strides = [1, 1]} : vector<22x32xf32> to vector<16x32xf32>
    %305 = vector.broadcast %303 : vector<1x32xf32> to vector<16x32xf32>
    %306 = arith.mulf %304, %305 : vector<16x32xf32>
    %307 = arith.addf %302, %306 : vector<16x32xf32>
    %308 = vector.extract_strided_slice %49 {offsets = [16, 0], sizes = [1, 32], strides = [1, 1]} : vector<28x32xf32> to vector<1x32xf32>
    %309 = vector.extract_strided_slice %296 {offsets = [2, 0], sizes = [16, 32], strides = [1, 1]} : vector<22x32xf32> to vector<16x32xf32>
    %310 = vector.broadcast %308 : vector<1x32xf32> to vector<16x32xf32>
    %311 = arith.mulf %309, %310 : vector<16x32xf32>
    %312 = arith.addf %307, %311 : vector<16x32xf32>
    %313 = vector.extract_strided_slice %49 {offsets = [17, 0], sizes = [1, 32], strides = [1, 1]} : vector<28x32xf32> to vector<1x32xf32>
    %314 = vector.extract_strided_slice %296 {offsets = [3, 0], sizes = [16, 32], strides = [1, 1]} : vector<22x32xf32> to vector<16x32xf32>
    %315 = vector.broadcast %313 : vector<1x32xf32> to vector<16x32xf32>
    %316 = arith.mulf %314, %315 : vector<16x32xf32>
    %317 = arith.addf %312, %316 : vector<16x32xf32>
    %318 = vector.extract_strided_slice %49 {offsets = [18, 0], sizes = [1, 32], strides = [1, 1]} : vector<28x32xf32> to vector<1x32xf32>
    %319 = vector.extract_strided_slice %296 {offsets = [4, 0], sizes = [16, 32], strides = [1, 1]} : vector<22x32xf32> to vector<16x32xf32>
    %320 = vector.broadcast %318 : vector<1x32xf32> to vector<16x32xf32>
    %321 = arith.mulf %319, %320 : vector<16x32xf32>
    %322 = arith.addf %317, %321 : vector<16x32xf32>
    %323 = vector.extract_strided_slice %49 {offsets = [19, 0], sizes = [1, 32], strides = [1, 1]} : vector<28x32xf32> to vector<1x32xf32>
    %324 = vector.extract_strided_slice %296 {offsets = [5, 0], sizes = [16, 32], strides = [1, 1]} : vector<22x32xf32> to vector<16x32xf32>
    %325 = vector.broadcast %323 : vector<1x32xf32> to vector<16x32xf32>
    %326 = arith.mulf %324, %325 : vector<16x32xf32>
    %327 = arith.addf %322, %326 : vector<16x32xf32>
    %328 = vector.extract_strided_slice %49 {offsets = [20, 0], sizes = [1, 32], strides = [1, 1]} : vector<28x32xf32> to vector<1x32xf32>
    %329 = vector.extract_strided_slice %296 {offsets = [6, 0], sizes = [16, 32], strides = [1, 1]} : vector<22x32xf32> to vector<16x32xf32>
    %330 = vector.broadcast %328 : vector<1x32xf32> to vector<16x32xf32>
    %331 = arith.mulf %329, %330 : vector<16x32xf32>
    %332 = arith.addf %327, %331 : vector<16x32xf32>
    %333 = vector.extract_strided_slice %294 {offsets = [16, 0], sizes = [16, 32], strides = [1, 1]} : vector<32x32xf32> to vector<16x32xf32>
    %334 = tpu.concatenate %52, %333, %52 in 0 : vector<3x32xf32>, vector<16x32xf32>, vector<3x32xf32> -> vector<22x32xf32>
    %cst_57 = arith.constant 0.000000e+00 : f32
    %335 = vector.broadcast %cst_57 : f32 to vector<16x32xf32>
    %336 = vector.extract_strided_slice %49 {offsets = [14, 0], sizes = [1, 32], strides = [1, 1]} : vector<28x32xf32> to vector<1x32xf32>
    %337 = vector.extract_strided_slice %334 {offsets = [0, 0], sizes = [16, 32], strides = [1, 1]} : vector<22x32xf32> to vector<16x32xf32>
    %338 = vector.broadcast %336 : vector<1x32xf32> to vector<16x32xf32>
    %339 = arith.mulf %337, %338 : vector<16x32xf32>
    %340 = arith.addf %335, %339 : vector<16x32xf32>
    %341 = vector.extract_strided_slice %49 {offsets = [15, 0], sizes = [1, 32], strides = [1, 1]} : vector<28x32xf32> to vector<1x32xf32>
    %342 = vector.extract_strided_slice %334 {offsets = [1, 0], sizes = [16, 32], strides = [1, 1]} : vector<22x32xf32> to vector<16x32xf32>
    %343 = vector.broadcast %341 : vector<1x32xf32> to vector<16x32xf32>
    %344 = arith.mulf %342, %343 : vector<16x32xf32>
    %345 = arith.addf %340, %344 : vector<16x32xf32>
    %346 = vector.extract_strided_slice %49 {offsets = [16, 0], sizes = [1, 32], strides = [1, 1]} : vector<28x32xf32> to vector<1x32xf32>
    %347 = vector.extract_strided_slice %334 {offsets = [2, 0], sizes = [16, 32], strides = [1, 1]} : vector<22x32xf32> to vector<16x32xf32>
    %348 = vector.broadcast %346 : vector<1x32xf32> to vector<16x32xf32>
    %349 = arith.mulf %347, %348 : vector<16x32xf32>
    %350 = arith.addf %345, %349 : vector<16x32xf32>
    %351 = vector.extract_strided_slice %49 {offsets = [17, 0], sizes = [1, 32], strides = [1, 1]} : vector<28x32xf32> to vector<1x32xf32>
    %352 = vector.extract_strided_slice %334 {offsets = [3, 0], sizes = [16, 32], strides = [1, 1]} : vector<22x32xf32> to vector<16x32xf32>
    %353 = vector.broadcast %351 : vector<1x32xf32> to vector<16x32xf32>
    %354 = arith.mulf %352, %353 : vector<16x32xf32>
    %355 = arith.addf %350, %354 : vector<16x32xf32>
    %356 = vector.extract_strided_slice %49 {offsets = [18, 0], sizes = [1, 32], strides = [1, 1]} : vector<28x32xf32> to vector<1x32xf32>
    %357 = vector.extract_strided_slice %334 {offsets = [4, 0], sizes = [16, 32], strides = [1, 1]} : vector<22x32xf32> to vector<16x32xf32>
    %358 = vector.broadcast %356 : vector<1x32xf32> to vector<16x32xf32>
    %359 = arith.mulf %357, %358 : vector<16x32xf32>
    %360 = arith.addf %355, %359 : vector<16x32xf32>
    %361 = vector.extract_strided_slice %49 {offsets = [19, 0], sizes = [1, 32], strides = [1, 1]} : vector<28x32xf32> to vector<1x32xf32>
    %362 = vector.extract_strided_slice %334 {offsets = [5, 0], sizes = [16, 32], strides = [1, 1]} : vector<22x32xf32> to vector<16x32xf32>
    %363 = vector.broadcast %361 : vector<1x32xf32> to vector<16x32xf32>
    %364 = arith.mulf %362, %363 : vector<16x32xf32>
    %365 = arith.addf %360, %364 : vector<16x32xf32>
    %366 = vector.extract_strided_slice %49 {offsets = [20, 0], sizes = [1, 32], strides = [1, 1]} : vector<28x32xf32> to vector<1x32xf32>
    %367 = vector.extract_strided_slice %334 {offsets = [6, 0], sizes = [16, 32], strides = [1, 1]} : vector<22x32xf32> to vector<16x32xf32>
    %368 = vector.broadcast %366 : vector<1x32xf32> to vector<16x32xf32>
    %369 = arith.mulf %367, %368 : vector<16x32xf32>
    %370 = arith.addf %365, %369 : vector<16x32xf32>
    %371 = tpu.concatenate %332, %370 in 0 : vector<16x32xf32>, vector<16x32xf32> -> vector<32x32xf32>
    %372 = vector.extract_strided_slice %50 {offsets = [64, 0], sizes = [32, 32], strides = [1, 1]} : vector<128x32xf32> to vector<32x32xf32>
    %cst_58 = arith.constant dense<0.000000e+00> : vector<32x32xf32>
    %373 = tpu.matmul %371, %372, %cst_58 {dimension_numbers = #tpu.dot_dimension_numbers<[1], [0], [0], [1], [0, 0, 1, 1], [], []>} : vector<32x32xf32>, vector<32x32xf32>, vector<32x32xf32> -> vector<32x32xf32>
    %374 = vector.extract_strided_slice %51 {offsets = [2, 0], sizes = [1, 32], strides = [1, 1]} : vector<4x32xf32> to vector<1x32xf32>
    %375 = vector.broadcast %374 : vector<1x32xf32> to vector<32x32xf32>
    %376 = arith.addf %373, %375 : vector<32x32xf32>
    %cst_59 = arith.constant 0.000000e+00 : f32
    %377 = vector.broadcast %cst_59 : f32 to vector<32x32xf32>
    %378 = arith.maximumf %376, %377 : vector<32x32xf32>
    %379 = arith.addf %378, %270 : vector<32x32xf32>
    %380 = vector.extract_strided_slice %47 {offsets = [3, 0], sizes = [1, 32], strides = [1, 1]} : vector<4x32xf32> to vector<1x32xf32>
    %381 = vector.extract_strided_slice %48 {offsets = [3, 0], sizes = [1, 32], strides = [1, 1]} : vector<4x32xf32> to vector<1x32xf32>
    %cst_60 = arith.constant dense<0.000000e+00> : vector<32xf32>
    %382 = vector.multi_reduction <add>, %379, %cst_60 [1] : vector<32x32xf32> to vector<32xf32>
    %383 = vector.shape_cast %382 : vector<32xf32> to vector<32x1xf32>
    %cst_61 = arith.constant 3.200000e+01 : f32
    %384 = vector.broadcast %cst_61 : f32 to vector<32x1xf32>
    %385 = arith.divf %383, %384 : vector<32x1xf32>
    %386 = vector.broadcast %385 : vector<32x1xf32> to vector<32x32xf32>
    %387 = arith.subf %379, %386 : vector<32x32xf32>
    %388 = arith.mulf %387, %387 : vector<32x32xf32>
    %cst_62 = arith.constant dense<0.000000e+00> : vector<32xf32>
    %389 = vector.multi_reduction <add>, %388, %cst_62 [1] : vector<32x32xf32> to vector<32xf32>
    %390 = vector.shape_cast %389 : vector<32xf32> to vector<32x1xf32>
    %cst_63 = arith.constant 3.200000e+01 : f32
    %391 = vector.broadcast %cst_63 : f32 to vector<32x1xf32>
    %392 = arith.divf %390, %391 : vector<32x1xf32>
    %393 = vector.broadcast %385 : vector<32x1xf32> to vector<32x32xf32>
    %394 = arith.subf %379, %393 : vector<32x32xf32>
    %cst_64 = arith.constant 9.99999974E-6 : f32
    %395 = vector.broadcast %cst_64 : f32 to vector<32x1xf32>
    %396 = arith.addf %392, %395 : vector<32x1xf32>
    %397 = math.rsqrt %396 : vector<32x1xf32>
    %398 = vector.broadcast %397 : vector<32x1xf32> to vector<32x32xf32>
    %399 = arith.mulf %394, %398 : vector<32x32xf32>
    %400 = vector.broadcast %380 : vector<1x32xf32> to vector<32x32xf32>
    %401 = arith.mulf %399, %400 : vector<32x32xf32>
    %402 = vector.broadcast %381 : vector<1x32xf32> to vector<32x32xf32>
    %403 = arith.addf %401, %402 : vector<32x32xf32>
    %404 = vector.extract_strided_slice %403 {offsets = [0, 0], sizes = [16, 32], strides = [1, 1]} : vector<32x32xf32> to vector<16x32xf32>
    %405 = tpu.concatenate %52, %404, %52 in 0 : vector<3x32xf32>, vector<16x32xf32>, vector<3x32xf32> -> vector<22x32xf32>
    %cst_65 = arith.constant 0.000000e+00 : f32
    %406 = vector.broadcast %cst_65 : f32 to vector<16x32xf32>
    %407 = vector.extract_strided_slice %49 {offsets = [21, 0], sizes = [1, 32], strides = [1, 1]} : vector<28x32xf32> to vector<1x32xf32>
    %408 = vector.extract_strided_slice %405 {offsets = [0, 0], sizes = [16, 32], strides = [1, 1]} : vector<22x32xf32> to vector<16x32xf32>
    %409 = vector.broadcast %407 : vector<1x32xf32> to vector<16x32xf32>
    %410 = arith.mulf %408, %409 : vector<16x32xf32>
    %411 = arith.addf %406, %410 : vector<16x32xf32>
    %412 = vector.extract_strided_slice %49 {offsets = [22, 0], sizes = [1, 32], strides = [1, 1]} : vector<28x32xf32> to vector<1x32xf32>
    %413 = vector.extract_strided_slice %405 {offsets = [1, 0], sizes = [16, 32], strides = [1, 1]} : vector<22x32xf32> to vector<16x32xf32>
    %414 = vector.broadcast %412 : vector<1x32xf32> to vector<16x32xf32>
    %415 = arith.mulf %413, %414 : vector<16x32xf32>
    %416 = arith.addf %411, %415 : vector<16x32xf32>
    %417 = vector.extract_strided_slice %49 {offsets = [23, 0], sizes = [1, 32], strides = [1, 1]} : vector<28x32xf32> to vector<1x32xf32>
    %418 = vector.extract_strided_slice %405 {offsets = [2, 0], sizes = [16, 32], strides = [1, 1]} : vector<22x32xf32> to vector<16x32xf32>
    %419 = vector.broadcast %417 : vector<1x32xf32> to vector<16x32xf32>
    %420 = arith.mulf %418, %419 : vector<16x32xf32>
    %421 = arith.addf %416, %420 : vector<16x32xf32>
    %422 = vector.extract_strided_slice %49 {offsets = [24, 0], sizes = [1, 32], strides = [1, 1]} : vector<28x32xf32> to vector<1x32xf32>
    %423 = vector.extract_strided_slice %405 {offsets = [3, 0], sizes = [16, 32], strides = [1, 1]} : vector<22x32xf32> to vector<16x32xf32>
    %424 = vector.broadcast %422 : vector<1x32xf32> to vector<16x32xf32>
    %425 = arith.mulf %423, %424 : vector<16x32xf32>
    %426 = arith.addf %421, %425 : vector<16x32xf32>
    %427 = vector.extract_strided_slice %49 {offsets = [25, 0], sizes = [1, 32], strides = [1, 1]} : vector<28x32xf32> to vector<1x32xf32>
    %428 = vector.extract_strided_slice %405 {offsets = [4, 0], sizes = [16, 32], strides = [1, 1]} : vector<22x32xf32> to vector<16x32xf32>
    %429 = vector.broadcast %427 : vector<1x32xf32> to vector<16x32xf32>
    %430 = arith.mulf %428, %429 : vector<16x32xf32>
    %431 = arith.addf %426, %430 : vector<16x32xf32>
    %432 = vector.extract_strided_slice %49 {offsets = [26, 0], sizes = [1, 32], strides = [1, 1]} : vector<28x32xf32> to vector<1x32xf32>
    %433 = vector.extract_strided_slice %405 {offsets = [5, 0], sizes = [16, 32], strides = [1, 1]} : vector<22x32xf32> to vector<16x32xf32>
    %434 = vector.broadcast %432 : vector<1x32xf32> to vector<16x32xf32>
    %435 = arith.mulf %433, %434 : vector<16x32xf32>
    %436 = arith.addf %431, %435 : vector<16x32xf32>
    %437 = vector.extract_strided_slice %49 {offsets = [27, 0], sizes = [1, 32], strides = [1, 1]} : vector<28x32xf32> to vector<1x32xf32>
    %438 = vector.extract_strided_slice %405 {offsets = [6, 0], sizes = [16, 32], strides = [1, 1]} : vector<22x32xf32> to vector<16x32xf32>
    %439 = vector.broadcast %437 : vector<1x32xf32> to vector<16x32xf32>
    %440 = arith.mulf %438, %439 : vector<16x32xf32>
    %441 = arith.addf %436, %440 : vector<16x32xf32>
    %442 = vector.extract_strided_slice %403 {offsets = [16, 0], sizes = [16, 32], strides = [1, 1]} : vector<32x32xf32> to vector<16x32xf32>
    %443 = tpu.concatenate %52, %442, %52 in 0 : vector<3x32xf32>, vector<16x32xf32>, vector<3x32xf32> -> vector<22x32xf32>
    %cst_66 = arith.constant 0.000000e+00 : f32
    %444 = vector.broadcast %cst_66 : f32 to vector<16x32xf32>
    %445 = vector.extract_strided_slice %49 {offsets = [21, 0], sizes = [1, 32], strides = [1, 1]} : vector<28x32xf32> to vector<1x32xf32>
    %446 = vector.extract_strided_slice %443 {offsets = [0, 0], sizes = [16, 32], strides = [1, 1]} : vector<22x32xf32> to vector<16x32xf32>
    %447 = vector.broadcast %445 : vector<1x32xf32> to vector<16x32xf32>
    %448 = arith.mulf %446, %447 : vector<16x32xf32>
    %449 = arith.addf %444, %448 : vector<16x32xf32>
    %450 = vector.extract_strided_slice %49 {offsets = [22, 0], sizes = [1, 32], strides = [1, 1]} : vector<28x32xf32> to vector<1x32xf32>
    %451 = vector.extract_strided_slice %443 {offsets = [1, 0], sizes = [16, 32], strides = [1, 1]} : vector<22x32xf32> to vector<16x32xf32>
    %452 = vector.broadcast %450 : vector<1x32xf32> to vector<16x32xf32>
    %453 = arith.mulf %451, %452 : vector<16x32xf32>
    %454 = arith.addf %449, %453 : vector<16x32xf32>
    %455 = vector.extract_strided_slice %49 {offsets = [23, 0], sizes = [1, 32], strides = [1, 1]} : vector<28x32xf32> to vector<1x32xf32>
    %456 = vector.extract_strided_slice %443 {offsets = [2, 0], sizes = [16, 32], strides = [1, 1]} : vector<22x32xf32> to vector<16x32xf32>
    %457 = vector.broadcast %455 : vector<1x32xf32> to vector<16x32xf32>
    %458 = arith.mulf %456, %457 : vector<16x32xf32>
    %459 = arith.addf %454, %458 : vector<16x32xf32>
    %460 = vector.extract_strided_slice %49 {offsets = [24, 0], sizes = [1, 32], strides = [1, 1]} : vector<28x32xf32> to vector<1x32xf32>
    %461 = vector.extract_strided_slice %443 {offsets = [3, 0], sizes = [16, 32], strides = [1, 1]} : vector<22x32xf32> to vector<16x32xf32>
    %462 = vector.broadcast %460 : vector<1x32xf32> to vector<16x32xf32>
    %463 = arith.mulf %461, %462 : vector<16x32xf32>
    %464 = arith.addf %459, %463 : vector<16x32xf32>
    %465 = vector.extract_strided_slice %49 {offsets = [25, 0], sizes = [1, 32], strides = [1, 1]} : vector<28x32xf32> to vector<1x32xf32>
    %466 = vector.extract_strided_slice %443 {offsets = [4, 0], sizes = [16, 32], strides = [1, 1]} : vector<22x32xf32> to vector<16x32xf32>
    %467 = vector.broadcast %465 : vector<1x32xf32> to vector<16x32xf32>
    %468 = arith.mulf %466, %467 : vector<16x32xf32>
    %469 = arith.addf %464, %468 : vector<16x32xf32>
    %470 = vector.extract_strided_slice %49 {offsets = [26, 0], sizes = [1, 32], strides = [1, 1]} : vector<28x32xf32> to vector<1x32xf32>
    %471 = vector.extract_strided_slice %443 {offsets = [5, 0], sizes = [16, 32], strides = [1, 1]} : vector<22x32xf32> to vector<16x32xf32>
    %472 = vector.broadcast %470 : vector<1x32xf32> to vector<16x32xf32>
    %473 = arith.mulf %471, %472 : vector<16x32xf32>
    %474 = arith.addf %469, %473 : vector<16x32xf32>
    %475 = vector.extract_strided_slice %49 {offsets = [27, 0], sizes = [1, 32], strides = [1, 1]} : vector<28x32xf32> to vector<1x32xf32>
    %476 = vector.extract_strided_slice %443 {offsets = [6, 0], sizes = [16, 32], strides = [1, 1]} : vector<22x32xf32> to vector<16x32xf32>
    %477 = vector.broadcast %475 : vector<1x32xf32> to vector<16x32xf32>
    %478 = arith.mulf %476, %477 : vector<16x32xf32>
    %479 = arith.addf %474, %478 : vector<16x32xf32>
    %480 = tpu.concatenate %441, %479 in 0 : vector<16x32xf32>, vector<16x32xf32> -> vector<32x32xf32>
    %481 = vector.extract_strided_slice %50 {offsets = [96, 0], sizes = [32, 32], strides = [1, 1]} : vector<128x32xf32> to vector<32x32xf32>
    %cst_67 = arith.constant dense<0.000000e+00> : vector<32x32xf32>
    %482 = tpu.matmul %480, %481, %cst_67 {dimension_numbers = #tpu.dot_dimension_numbers<[1], [0], [0], [1], [0, 0, 1, 1], [], []>} : vector<32x32xf32>, vector<32x32xf32>, vector<32x32xf32> -> vector<32x32xf32>
    %483 = vector.extract_strided_slice %51 {offsets = [3, 0], sizes = [1, 32], strides = [1, 1]} : vector<4x32xf32> to vector<1x32xf32>
    %484 = vector.broadcast %483 : vector<1x32xf32> to vector<32x32xf32>
    %485 = arith.addf %482, %484 : vector<32x32xf32>
    %cst_68 = arith.constant 0.000000e+00 : f32
    %486 = vector.broadcast %cst_68 : f32 to vector<32x32xf32>
    %487 = arith.maximumf %485, %486 : vector<32x32xf32>
    %488 = arith.addf %487, %379 : vector<32x32xf32>
    %c0_69 = arith.constant 0 : index
    %c0_70 = arith.constant 0 : index
    %489 = vector.load %arg14[%c0_69, %c0_70] : memref<1x32xf32, #tpu.memory_space<vmem>>, vector<1x32xf32>
    %c0_71 = arith.constant 0 : index
    %c0_72 = arith.constant 0 : index
    %490 = vector.load %arg15[%c0_71, %c0_72] : memref<1x32xf32, #tpu.memory_space<vmem>>, vector<1x32xf32>
    %cst_73 = arith.constant dense<0.000000e+00> : vector<32xf32>
    %491 = vector.multi_reduction <add>, %488, %cst_73 [1] : vector<32x32xf32> to vector<32xf32>
    %492 = vector.shape_cast %491 : vector<32xf32> to vector<32x1xf32>
    %cst_74 = arith.constant 3.200000e+01 : f32
    %493 = vector.broadcast %cst_74 : f32 to vector<32x1xf32>
    %494 = arith.divf %492, %493 : vector<32x1xf32>
    %495 = vector.broadcast %494 : vector<32x1xf32> to vector<32x32xf32>
    %496 = arith.subf %488, %495 : vector<32x32xf32>
    %497 = arith.mulf %496, %496 : vector<32x32xf32>
    %cst_75 = arith.constant dense<0.000000e+00> : vector<32xf32>
    %498 = vector.multi_reduction <add>, %497, %cst_75 [1] : vector<32x32xf32> to vector<32xf32>
    %499 = vector.shape_cast %498 : vector<32xf32> to vector<32x1xf32>
    %cst_76 = arith.constant 3.200000e+01 : f32
    %500 = vector.broadcast %cst_76 : f32 to vector<32x1xf32>
    %501 = arith.divf %499, %500 : vector<32x1xf32>
    %502 = vector.broadcast %494 : vector<32x1xf32> to vector<32x32xf32>
    %503 = arith.subf %488, %502 : vector<32x32xf32>
    %cst_77 = arith.constant 9.99999974E-6 : f32
    %504 = vector.broadcast %cst_77 : f32 to vector<32x1xf32>
    %505 = arith.addf %501, %504 : vector<32x1xf32>
    %506 = math.rsqrt %505 : vector<32x1xf32>
    %507 = vector.broadcast %506 : vector<32x1xf32> to vector<32x32xf32>
    %508 = arith.mulf %503, %507 : vector<32x32xf32>
    %509 = vector.broadcast %489 : vector<1x32xf32> to vector<32x32xf32>
    %510 = arith.mulf %508, %509 : vector<32x32xf32>
    %511 = vector.broadcast %490 : vector<1x32xf32> to vector<32x32xf32>
    %512 = arith.addf %510, %511 : vector<32x32xf32>
    %c0_78 = arith.constant 0 : index
    %c0_79 = arith.constant 0 : index
    %513 = vector.load %arg18[%c0_78, %c0_79] : memref<32x96xf32, #tpu.memory_space<vmem>>, vector<32x96xf32>
    %cst_80 = arith.constant dense<0.000000e+00> : vector<32x96xf32>
    %514 = tpu.matmul %512, %513, %cst_80 {dimension_numbers = #tpu.dot_dimension_numbers<[1], [0], [0], [1], [0, 0, 1, 1], [], []>} : vector<32x32xf32>, vector<32x96xf32>, vector<32x96xf32> -> vector<32x96xf32>
    %515 = vector.extract_strided_slice %514 {offsets = [0, 0], sizes = [16, 32], strides = [1, 1]} : vector<32x96xf32> to vector<16x32xf32>
    %cst_81 = arith.constant 0.353553385 : f32
    %516 = vector.broadcast %cst_81 : f32 to vector<16x32xf32>
    %517 = arith.mulf %515, %516 : vector<16x32xf32>
    %518 = vector.extract_strided_slice %514 {offsets = [0, 32], sizes = [16, 32], strides = [1, 1]} : vector<32x96xf32> to vector<16x32xf32>
    %519 = vector.extract_strided_slice %514 {offsets = [0, 64], sizes = [16, 32], strides = [1, 1]} : vector<32x96xf32> to vector<16x32xf32>
    %520 = vector.extract_strided_slice %0 {offsets = [0, 0], sizes = [1, 16], strides = [1, 1]} : vector<2x16xf32> to vector<1x16xf32>
    %521 = vector.extract_strided_slice %517 {offsets = [0, 0], sizes = [16, 8], strides = [1, 1]} : vector<16x32xf32> to vector<16x8xf32>
    %522 = vector.extract_strided_slice %518 {offsets = [0, 0], sizes = [16, 8], strides = [1, 1]} : vector<16x32xf32> to vector<16x8xf32>
    "tpu.trace_start"() <{level = 10 : i32, message = "qd,kd->qk"}> : () -> ()
    %cst_82 = arith.constant dense<0.000000e+00> : vector<16x16xf32>
    %523 = tpu.matmul %521, %522, %cst_82 {dimension_numbers = #tpu.dot_dimension_numbers<[1], [1], [0], [0], [0, 0, 1, 0], [], []>} : vector<16x8xf32>, vector<16x8xf32>, vector<16x16xf32> -> vector<16x16xf32>
    %cst_83 = arith.constant 0.000000e+00 : f32
    "tpu.trace_stop"() : () -> ()
    %524 = vector.broadcast %cst_83 : f32 to vector<1x16xf32>
    %525 = arith.cmpf ogt, %520, %524 : vector<1x16xf32>
    %cst_84 = arith.constant -1.000000e+30 : f32
    %526 = vector.shape_cast %525 : vector<1x16xi1> to vector<1x16xi1>
    %527 = vector.broadcast %526 : vector<1x16xi1> to vector<16x16xi1>
    %528 = vector.broadcast %cst_84 : f32 to vector<16x16xf32>
    %529 = arith.select %527, %523, %528 : vector<16x16xi1>, vector<16x16xf32>
    %cst_85 = arith.constant dense<0xFF800000> : vector<16xf32>
    %530 = vector.multi_reduction <maximumf>, %529, %cst_85 [1] : vector<16x16xf32> to vector<16xf32>
    %531 = vector.shape_cast %530 : vector<16xf32> to vector<16x1xf32>
    %532 = vector.broadcast %531 : vector<16x1xf32> to vector<16x16xf32>
    %533 = arith.subf %529, %532 : vector<16x16xf32>
    %534 = math.exp %533 : vector<16x16xf32>
    %cst_86 = arith.constant dense<0.000000e+00> : vector<16xf32>
    %535 = vector.multi_reduction <add>, %534, %cst_86 [1] : vector<16x16xf32> to vector<16xf32>
    %536 = vector.shape_cast %535 : vector<16xf32> to vector<16x1xf32>
    %537 = tpu.reciprocal %536 {approx = true} : vector<16x1xf32> -> vector<16x1xf32>
    %538 = vector.broadcast %537 : vector<16x1xf32> to vector<16x16xf32>
    %539 = arith.mulf %534, %538 : vector<16x16xf32>
    %540 = vector.extract_strided_slice %519 {offsets = [0, 0], sizes = [16, 8], strides = [1, 1]} : vector<16x32xf32> to vector<16x8xf32>
    %cst_87 = arith.constant dense<0.000000e+00> : vector<16x8xf32>
    %541 = tpu.matmul %539, %540, %cst_87 {dimension_numbers = #tpu.dot_dimension_numbers<[1], [0], [0], [1], [0, 0, 1, 1], [], []>} : vector<16x16xf32>, vector<16x8xf32>, vector<16x8xf32> -> vector<16x8xf32>
    %542 = vector.extract_strided_slice %517 {offsets = [0, 8], sizes = [16, 8], strides = [1, 1]} : vector<16x32xf32> to vector<16x8xf32>
    %543 = vector.extract_strided_slice %518 {offsets = [0, 8], sizes = [16, 8], strides = [1, 1]} : vector<16x32xf32> to vector<16x8xf32>
    "tpu.trace_start"() <{level = 10 : i32, message = "qd,kd->qk"}> : () -> ()
    %cst_88 = arith.constant dense<0.000000e+00> : vector<16x16xf32>
    %544 = tpu.matmul %542, %543, %cst_88 {dimension_numbers = #tpu.dot_dimension_numbers<[1], [1], [0], [0], [0, 0, 1, 0], [], []>} : vector<16x8xf32>, vector<16x8xf32>, vector<16x16xf32> -> vector<16x16xf32>
    %cst_89 = arith.constant 0.000000e+00 : f32
    "tpu.trace_stop"() : () -> ()
    %545 = vector.broadcast %cst_89 : f32 to vector<1x16xf32>
    %546 = arith.cmpf ogt, %520, %545 : vector<1x16xf32>
    %cst_90 = arith.constant -1.000000e+30 : f32
    %547 = vector.shape_cast %546 : vector<1x16xi1> to vector<1x16xi1>
    %548 = vector.broadcast %547 : vector<1x16xi1> to vector<16x16xi1>
    %549 = vector.broadcast %cst_90 : f32 to vector<16x16xf32>
    %550 = arith.select %548, %544, %549 : vector<16x16xi1>, vector<16x16xf32>
    %cst_91 = arith.constant dense<0xFF800000> : vector<16xf32>
    %551 = vector.multi_reduction <maximumf>, %550, %cst_91 [1] : vector<16x16xf32> to vector<16xf32>
    %552 = vector.shape_cast %551 : vector<16xf32> to vector<16x1xf32>
    %553 = vector.broadcast %552 : vector<16x1xf32> to vector<16x16xf32>
    %554 = arith.subf %550, %553 : vector<16x16xf32>
    %555 = math.exp %554 : vector<16x16xf32>
    %cst_92 = arith.constant dense<0.000000e+00> : vector<16xf32>
    %556 = vector.multi_reduction <add>, %555, %cst_92 [1] : vector<16x16xf32> to vector<16xf32>
    %557 = vector.shape_cast %556 : vector<16xf32> to vector<16x1xf32>
    %558 = tpu.reciprocal %557 {approx = true} : vector<16x1xf32> -> vector<16x1xf32>
    %559 = vector.broadcast %558 : vector<16x1xf32> to vector<16x16xf32>
    %560 = arith.mulf %555, %559 : vector<16x16xf32>
    %561 = vector.extract_strided_slice %519 {offsets = [0, 8], sizes = [16, 8], strides = [1, 1]} : vector<16x32xf32> to vector<16x8xf32>
    %cst_93 = arith.constant dense<0.000000e+00> : vector<16x8xf32>
    %562 = tpu.matmul %560, %561, %cst_93 {dimension_numbers = #tpu.dot_dimension_numbers<[1], [0], [0], [1], [0, 0, 1, 1], [], []>} : vector<16x16xf32>, vector<16x8xf32>, vector<16x8xf32> -> vector<16x8xf32>
    %563 = vector.extract_strided_slice %517 {offsets = [0, 16], sizes = [16, 8], strides = [1, 1]} : vector<16x32xf32> to vector<16x8xf32>
    %564 = vector.extract_strided_slice %518 {offsets = [0, 16], sizes = [16, 8], strides = [1, 1]} : vector<16x32xf32> to vector<16x8xf32>
    "tpu.trace_start"() <{level = 10 : i32, message = "qd,kd->qk"}> : () -> ()
    %cst_94 = arith.constant dense<0.000000e+00> : vector<16x16xf32>
    %565 = tpu.matmul %563, %564, %cst_94 {dimension_numbers = #tpu.dot_dimension_numbers<[1], [1], [0], [0], [0, 0, 1, 0], [], []>} : vector<16x8xf32>, vector<16x8xf32>, vector<16x16xf32> -> vector<16x16xf32>
    %cst_95 = arith.constant 0.000000e+00 : f32
    "tpu.trace_stop"() : () -> ()
    %566 = vector.broadcast %cst_95 : f32 to vector<1x16xf32>
    %567 = arith.cmpf ogt, %520, %566 : vector<1x16xf32>
    %cst_96 = arith.constant -1.000000e+30 : f32
    %568 = vector.shape_cast %567 : vector<1x16xi1> to vector<1x16xi1>
    %569 = vector.broadcast %568 : vector<1x16xi1> to vector<16x16xi1>
    %570 = vector.broadcast %cst_96 : f32 to vector<16x16xf32>
    %571 = arith.select %569, %565, %570 : vector<16x16xi1>, vector<16x16xf32>
    %cst_97 = arith.constant dense<0xFF800000> : vector<16xf32>
    %572 = vector.multi_reduction <maximumf>, %571, %cst_97 [1] : vector<16x16xf32> to vector<16xf32>
    %573 = vector.shape_cast %572 : vector<16xf32> to vector<16x1xf32>
    %574 = vector.broadcast %573 : vector<16x1xf32> to vector<16x16xf32>
    %575 = arith.subf %571, %574 : vector<16x16xf32>
    %576 = math.exp %575 : vector<16x16xf32>
    %cst_98 = arith.constant dense<0.000000e+00> : vector<16xf32>
    %577 = vector.multi_reduction <add>, %576, %cst_98 [1] : vector<16x16xf32> to vector<16xf32>
    %578 = vector.shape_cast %577 : vector<16xf32> to vector<16x1xf32>
    %579 = tpu.reciprocal %578 {approx = true} : vector<16x1xf32> -> vector<16x1xf32>
    %580 = vector.broadcast %579 : vector<16x1xf32> to vector<16x16xf32>
    %581 = arith.mulf %576, %580 : vector<16x16xf32>
    %582 = vector.extract_strided_slice %519 {offsets = [0, 16], sizes = [16, 8], strides = [1, 1]} : vector<16x32xf32> to vector<16x8xf32>
    %cst_99 = arith.constant dense<0.000000e+00> : vector<16x8xf32>
    %583 = tpu.matmul %581, %582, %cst_99 {dimension_numbers = #tpu.dot_dimension_numbers<[1], [0], [0], [1], [0, 0, 1, 1], [], []>} : vector<16x16xf32>, vector<16x8xf32>, vector<16x8xf32> -> vector<16x8xf32>
    %584 = vector.extract_strided_slice %517 {offsets = [0, 24], sizes = [16, 8], strides = [1, 1]} : vector<16x32xf32> to vector<16x8xf32>
    %585 = vector.extract_strided_slice %518 {offsets = [0, 24], sizes = [16, 8], strides = [1, 1]} : vector<16x32xf32> to vector<16x8xf32>
    "tpu.trace_start"() <{level = 10 : i32, message = "qd,kd->qk"}> : () -> ()
    %cst_100 = arith.constant dense<0.000000e+00> : vector<16x16xf32>
    %586 = tpu.matmul %584, %585, %cst_100 {dimension_numbers = #tpu.dot_dimension_numbers<[1], [1], [0], [0], [0, 0, 1, 0], [], []>} : vector<16x8xf32>, vector<16x8xf32>, vector<16x16xf32> -> vector<16x16xf32>
    %cst_101 = arith.constant 0.000000e+00 : f32
    "tpu.trace_stop"() : () -> ()
    %587 = vector.broadcast %cst_101 : f32 to vector<1x16xf32>
    %588 = arith.cmpf ogt, %520, %587 : vector<1x16xf32>
    %cst_102 = arith.constant -1.000000e+30 : f32
    %589 = vector.shape_cast %588 : vector<1x16xi1> to vector<1x16xi1>
    %590 = vector.broadcast %589 : vector<1x16xi1> to vector<16x16xi1>
    %591 = vector.broadcast %cst_102 : f32 to vector<16x16xf32>
    %592 = arith.select %590, %586, %591 : vector<16x16xi1>, vector<16x16xf32>
    %cst_103 = arith.constant dense<0xFF800000> : vector<16xf32>
    %593 = vector.multi_reduction <maximumf>, %592, %cst_103 [1] : vector<16x16xf32> to vector<16xf32>
    %594 = vector.shape_cast %593 : vector<16xf32> to vector<16x1xf32>
    %595 = vector.broadcast %594 : vector<16x1xf32> to vector<16x16xf32>
    %596 = arith.subf %592, %595 : vector<16x16xf32>
    %597 = math.exp %596 : vector<16x16xf32>
    %cst_104 = arith.constant dense<0.000000e+00> : vector<16xf32>
    %598 = vector.multi_reduction <add>, %597, %cst_104 [1] : vector<16x16xf32> to vector<16xf32>
    %599 = vector.shape_cast %598 : vector<16xf32> to vector<16x1xf32>
    %600 = tpu.reciprocal %599 {approx = true} : vector<16x1xf32> -> vector<16x1xf32>
    %601 = vector.broadcast %600 : vector<16x1xf32> to vector<16x16xf32>
    %602 = arith.mulf %597, %601 : vector<16x16xf32>
    %603 = vector.extract_strided_slice %519 {offsets = [0, 24], sizes = [16, 8], strides = [1, 1]} : vector<16x32xf32> to vector<16x8xf32>
    %cst_105 = arith.constant dense<0.000000e+00> : vector<16x8xf32>
    %604 = tpu.matmul %602, %603, %cst_105 {dimension_numbers = #tpu.dot_dimension_numbers<[1], [0], [0], [1], [0, 0, 1, 1], [], []>} : vector<16x16xf32>, vector<16x8xf32>, vector<16x8xf32> -> vector<16x8xf32>
    %605 = tpu.concatenate %541, %562, %583, %604 in 1 : vector<16x8xf32>, vector<16x8xf32>, vector<16x8xf32>, vector<16x8xf32> -> vector<16x32xf32>
    %606 = vector.extract_strided_slice %514 {offsets = [16, 0], sizes = [16, 32], strides = [1, 1]} : vector<32x96xf32> to vector<16x32xf32>
    %cst_106 = arith.constant 0.353553385 : f32
    %607 = vector.broadcast %cst_106 : f32 to vector<16x32xf32>
    %608 = arith.mulf %606, %607 : vector<16x32xf32>
    %609 = vector.extract_strided_slice %514 {offsets = [16, 32], sizes = [16, 32], strides = [1, 1]} : vector<32x96xf32> to vector<16x32xf32>
    %610 = vector.extract_strided_slice %514 {offsets = [16, 64], sizes = [16, 32], strides = [1, 1]} : vector<32x96xf32> to vector<16x32xf32>
    %611 = vector.extract_strided_slice %0 {offsets = [1, 0], sizes = [1, 16], strides = [1, 1]} : vector<2x16xf32> to vector<1x16xf32>
    %612 = vector.extract_strided_slice %608 {offsets = [0, 0], sizes = [16, 8], strides = [1, 1]} : vector<16x32xf32> to vector<16x8xf32>
    %613 = vector.extract_strided_slice %609 {offsets = [0, 0], sizes = [16, 8], strides = [1, 1]} : vector<16x32xf32> to vector<16x8xf32>
    "tpu.trace_start"() <{level = 10 : i32, message = "qd,kd->qk"}> : () -> ()
    %cst_107 = arith.constant dense<0.000000e+00> : vector<16x16xf32>
    %614 = tpu.matmul %612, %613, %cst_107 {dimension_numbers = #tpu.dot_dimension_numbers<[1], [1], [0], [0], [0, 0, 1, 0], [], []>} : vector<16x8xf32>, vector<16x8xf32>, vector<16x16xf32> -> vector<16x16xf32>
    %cst_108 = arith.constant 0.000000e+00 : f32
    "tpu.trace_stop"() : () -> ()
    %615 = vector.broadcast %cst_108 : f32 to vector<1x16xf32>
    %616 = arith.cmpf ogt, %611, %615 : vector<1x16xf32>
    %cst_109 = arith.constant -1.000000e+30 : f32
    %617 = vector.shape_cast %616 : vector<1x16xi1> to vector<1x16xi1>
    %618 = vector.broadcast %617 : vector<1x16xi1> to vector<16x16xi1>
    %619 = vector.broadcast %cst_109 : f32 to vector<16x16xf32>
    %620 = arith.select %618, %614, %619 : vector<16x16xi1>, vector<16x16xf32>
    %cst_110 = arith.constant dense<0xFF800000> : vector<16xf32>
    %621 = vector.multi_reduction <maximumf>, %620, %cst_110 [1] : vector<16x16xf32> to vector<16xf32>
    %622 = vector.shape_cast %621 : vector<16xf32> to vector<16x1xf32>
    %623 = vector.broadcast %622 : vector<16x1xf32> to vector<16x16xf32>
    %624 = arith.subf %620, %623 : vector<16x16xf32>
    %625 = math.exp %624 : vector<16x16xf32>
    %cst_111 = arith.constant dense<0.000000e+00> : vector<16xf32>
    %626 = vector.multi_reduction <add>, %625, %cst_111 [1] : vector<16x16xf32> to vector<16xf32>
    %627 = vector.shape_cast %626 : vector<16xf32> to vector<16x1xf32>
    %628 = tpu.reciprocal %627 {approx = true} : vector<16x1xf32> -> vector<16x1xf32>
    %629 = vector.broadcast %628 : vector<16x1xf32> to vector<16x16xf32>
    %630 = arith.mulf %625, %629 : vector<16x16xf32>
    %631 = vector.extract_strided_slice %610 {offsets = [0, 0], sizes = [16, 8], strides = [1, 1]} : vector<16x32xf32> to vector<16x8xf32>
    %cst_112 = arith.constant dense<0.000000e+00> : vector<16x8xf32>
    %632 = tpu.matmul %630, %631, %cst_112 {dimension_numbers = #tpu.dot_dimension_numbers<[1], [0], [0], [1], [0, 0, 1, 1], [], []>} : vector<16x16xf32>, vector<16x8xf32>, vector<16x8xf32> -> vector<16x8xf32>
    %633 = vector.extract_strided_slice %608 {offsets = [0, 8], sizes = [16, 8], strides = [1, 1]} : vector<16x32xf32> to vector<16x8xf32>
    %634 = vector.extract_strided_slice %609 {offsets = [0, 8], sizes = [16, 8], strides = [1, 1]} : vector<16x32xf32> to vector<16x8xf32>
    "tpu.trace_start"() <{level = 10 : i32, message = "qd,kd->qk"}> : () -> ()
    %cst_113 = arith.constant dense<0.000000e+00> : vector<16x16xf32>
    %635 = tpu.matmul %633, %634, %cst_113 {dimension_numbers = #tpu.dot_dimension_numbers<[1], [1], [0], [0], [0, 0, 1, 0], [], []>} : vector<16x8xf32>, vector<16x8xf32>, vector<16x16xf32> -> vector<16x16xf32>
    %cst_114 = arith.constant 0.000000e+00 : f32
    "tpu.trace_stop"() : () -> ()
    %636 = vector.broadcast %cst_114 : f32 to vector<1x16xf32>
    %637 = arith.cmpf ogt, %611, %636 : vector<1x16xf32>
    %cst_115 = arith.constant -1.000000e+30 : f32
    %638 = vector.shape_cast %637 : vector<1x16xi1> to vector<1x16xi1>
    %639 = vector.broadcast %638 : vector<1x16xi1> to vector<16x16xi1>
    %640 = vector.broadcast %cst_115 : f32 to vector<16x16xf32>
    %641 = arith.select %639, %635, %640 : vector<16x16xi1>, vector<16x16xf32>
    %cst_116 = arith.constant dense<0xFF800000> : vector<16xf32>
    %642 = vector.multi_reduction <maximumf>, %641, %cst_116 [1] : vector<16x16xf32> to vector<16xf32>
    %643 = vector.shape_cast %642 : vector<16xf32> to vector<16x1xf32>
    %644 = vector.broadcast %643 : vector<16x1xf32> to vector<16x16xf32>
    %645 = arith.subf %641, %644 : vector<16x16xf32>
    %646 = math.exp %645 : vector<16x16xf32>
    %cst_117 = arith.constant dense<0.000000e+00> : vector<16xf32>
    %647 = vector.multi_reduction <add>, %646, %cst_117 [1] : vector<16x16xf32> to vector<16xf32>
    %648 = vector.shape_cast %647 : vector<16xf32> to vector<16x1xf32>
    %649 = tpu.reciprocal %648 {approx = true} : vector<16x1xf32> -> vector<16x1xf32>
    %650 = vector.broadcast %649 : vector<16x1xf32> to vector<16x16xf32>
    %651 = arith.mulf %646, %650 : vector<16x16xf32>
    %652 = vector.extract_strided_slice %610 {offsets = [0, 8], sizes = [16, 8], strides = [1, 1]} : vector<16x32xf32> to vector<16x8xf32>
    %cst_118 = arith.constant dense<0.000000e+00> : vector<16x8xf32>
    %653 = tpu.matmul %651, %652, %cst_118 {dimension_numbers = #tpu.dot_dimension_numbers<[1], [0], [0], [1], [0, 0, 1, 1], [], []>} : vector<16x16xf32>, vector<16x8xf32>, vector<16x8xf32> -> vector<16x8xf32>
    %654 = vector.extract_strided_slice %608 {offsets = [0, 16], sizes = [16, 8], strides = [1, 1]} : vector<16x32xf32> to vector<16x8xf32>
    %655 = vector.extract_strided_slice %609 {offsets = [0, 16], sizes = [16, 8], strides = [1, 1]} : vector<16x32xf32> to vector<16x8xf32>
    "tpu.trace_start"() <{level = 10 : i32, message = "qd,kd->qk"}> : () -> ()
    %cst_119 = arith.constant dense<0.000000e+00> : vector<16x16xf32>
    %656 = tpu.matmul %654, %655, %cst_119 {dimension_numbers = #tpu.dot_dimension_numbers<[1], [1], [0], [0], [0, 0, 1, 0], [], []>} : vector<16x8xf32>, vector<16x8xf32>, vector<16x16xf32> -> vector<16x16xf32>
    %cst_120 = arith.constant 0.000000e+00 : f32
    "tpu.trace_stop"() : () -> ()
    %657 = vector.broadcast %cst_120 : f32 to vector<1x16xf32>
    %658 = arith.cmpf ogt, %611, %657 : vector<1x16xf32>
    %cst_121 = arith.constant -1.000000e+30 : f32
    %659 = vector.shape_cast %658 : vector<1x16xi1> to vector<1x16xi1>
    %660 = vector.broadcast %659 : vector<1x16xi1> to vector<16x16xi1>
    %661 = vector.broadcast %cst_121 : f32 to vector<16x16xf32>
    %662 = arith.select %660, %656, %661 : vector<16x16xi1>, vector<16x16xf32>
    %cst_122 = arith.constant dense<0xFF800000> : vector<16xf32>
    %663 = vector.multi_reduction <maximumf>, %662, %cst_122 [1] : vector<16x16xf32> to vector<16xf32>
    %664 = vector.shape_cast %663 : vector<16xf32> to vector<16x1xf32>
    %665 = vector.broadcast %664 : vector<16x1xf32> to vector<16x16xf32>
    %666 = arith.subf %662, %665 : vector<16x16xf32>
    %667 = math.exp %666 : vector<16x16xf32>
    %cst_123 = arith.constant dense<0.000000e+00> : vector<16xf32>
    %668 = vector.multi_reduction <add>, %667, %cst_123 [1] : vector<16x16xf32> to vector<16xf32>
    %669 = vector.shape_cast %668 : vector<16xf32> to vector<16x1xf32>
    %670 = tpu.reciprocal %669 {approx = true} : vector<16x1xf32> -> vector<16x1xf32>
    %671 = vector.broadcast %670 : vector<16x1xf32> to vector<16x16xf32>
    %672 = arith.mulf %667, %671 : vector<16x16xf32>
    %673 = vector.extract_strided_slice %610 {offsets = [0, 16], sizes = [16, 8], strides = [1, 1]} : vector<16x32xf32> to vector<16x8xf32>
    %cst_124 = arith.constant dense<0.000000e+00> : vector<16x8xf32>
    %674 = tpu.matmul %672, %673, %cst_124 {dimension_numbers = #tpu.dot_dimension_numbers<[1], [0], [0], [1], [0, 0, 1, 1], [], []>} : vector<16x16xf32>, vector<16x8xf32>, vector<16x8xf32> -> vector<16x8xf32>
    %675 = vector.extract_strided_slice %608 {offsets = [0, 24], sizes = [16, 8], strides = [1, 1]} : vector<16x32xf32> to vector<16x8xf32>
    %676 = vector.extract_strided_slice %609 {offsets = [0, 24], sizes = [16, 8], strides = [1, 1]} : vector<16x32xf32> to vector<16x8xf32>
    "tpu.trace_start"() <{level = 10 : i32, message = "qd,kd->qk"}> : () -> ()
    %cst_125 = arith.constant dense<0.000000e+00> : vector<16x16xf32>
    %677 = tpu.matmul %675, %676, %cst_125 {dimension_numbers = #tpu.dot_dimension_numbers<[1], [1], [0], [0], [0, 0, 1, 0], [], []>} : vector<16x8xf32>, vector<16x8xf32>, vector<16x16xf32> -> vector<16x16xf32>
    %cst_126 = arith.constant 0.000000e+00 : f32
    "tpu.trace_stop"() : () -> ()
    %678 = vector.broadcast %cst_126 : f32 to vector<1x16xf32>
    %679 = arith.cmpf ogt, %611, %678 : vector<1x16xf32>
    %cst_127 = arith.constant -1.000000e+30 : f32
    %680 = vector.shape_cast %679 : vector<1x16xi1> to vector<1x16xi1>
    %681 = vector.broadcast %680 : vector<1x16xi1> to vector<16x16xi1>
    %682 = vector.broadcast %cst_127 : f32 to vector<16x16xf32>
    %683 = arith.select %681, %677, %682 : vector<16x16xi1>, vector<16x16xf32>
    %cst_128 = arith.constant dense<0xFF800000> : vector<16xf32>
    %684 = vector.multi_reduction <maximumf>, %683, %cst_128 [1] : vector<16x16xf32> to vector<16xf32>
    %685 = vector.shape_cast %684 : vector<16xf32> to vector<16x1xf32>
    %686 = vector.broadcast %685 : vector<16x1xf32> to vector<16x16xf32>
    %687 = arith.subf %683, %686 : vector<16x16xf32>
    %688 = math.exp %687 : vector<16x16xf32>
    %cst_129 = arith.constant dense<0.000000e+00> : vector<16xf32>
    %689 = vector.multi_reduction <add>, %688, %cst_129 [1] : vector<16x16xf32> to vector<16xf32>
    %690 = vector.shape_cast %689 : vector<16xf32> to vector<16x1xf32>
    %691 = tpu.reciprocal %690 {approx = true} : vector<16x1xf32> -> vector<16x1xf32>
    %692 = vector.broadcast %691 : vector<16x1xf32> to vector<16x16xf32>
    %693 = arith.mulf %688, %692 : vector<16x16xf32>
    %694 = vector.extract_strided_slice %610 {offsets = [0, 24], sizes = [16, 8], strides = [1, 1]} : vector<16x32xf32> to vector<16x8xf32>
    %cst_130 = arith.constant dense<0.000000e+00> : vector<16x8xf32>
    %695 = tpu.matmul %693, %694, %cst_130 {dimension_numbers = #tpu.dot_dimension_numbers<[1], [0], [0], [1], [0, 0, 1, 1], [], []>} : vector<16x16xf32>, vector<16x8xf32>, vector<16x8xf32> -> vector<16x8xf32>
    %696 = tpu.concatenate %632, %653, %674, %695 in 1 : vector<16x8xf32>, vector<16x8xf32>, vector<16x8xf32>, vector<16x8xf32> -> vector<16x32xf32>
    %697 = tpu.concatenate %605, %696 in 0 : vector<16x32xf32>, vector<16x32xf32> -> vector<32x32xf32>
    %698 = arith.addf %697, %488 : vector<32x32xf32>
    %c0_131 = arith.constant 0 : index
    %c0_132 = arith.constant 0 : index
    %699 = vector.load %arg16[%c0_131, %c0_132] : memref<1x32xf32, #tpu.memory_space<vmem>>, vector<1x32xf32>
    %c0_133 = arith.constant 0 : index
    %c0_134 = arith.constant 0 : index
    %700 = vector.load %arg17[%c0_133, %c0_134] : memref<1x32xf32, #tpu.memory_space<vmem>>, vector<1x32xf32>
    %cst_135 = arith.constant dense<0.000000e+00> : vector<32xf32>
    %701 = vector.multi_reduction <add>, %698, %cst_135 [1] : vector<32x32xf32> to vector<32xf32>
    %702 = vector.shape_cast %701 : vector<32xf32> to vector<32x1xf32>
    %cst_136 = arith.constant 3.200000e+01 : f32
    %703 = vector.broadcast %cst_136 : f32 to vector<32x1xf32>
    %704 = arith.divf %702, %703 : vector<32x1xf32>
    %705 = vector.broadcast %704 : vector<32x1xf32> to vector<32x32xf32>
    %706 = arith.subf %698, %705 : vector<32x32xf32>
    %707 = arith.mulf %706, %706 : vector<32x32xf32>
    %cst_137 = arith.constant dense<0.000000e+00> : vector<32xf32>
    %708 = vector.multi_reduction <add>, %707, %cst_137 [1] : vector<32x32xf32> to vector<32xf32>
    %709 = vector.shape_cast %708 : vector<32xf32> to vector<32x1xf32>
    %cst_138 = arith.constant 3.200000e+01 : f32
    %710 = vector.broadcast %cst_138 : f32 to vector<32x1xf32>
    %711 = arith.divf %709, %710 : vector<32x1xf32>
    %712 = vector.broadcast %704 : vector<32x1xf32> to vector<32x32xf32>
    %713 = arith.subf %698, %712 : vector<32x32xf32>
    %cst_139 = arith.constant 9.99999974E-6 : f32
    %714 = vector.broadcast %cst_139 : f32 to vector<32x1xf32>
    %715 = arith.addf %711, %714 : vector<32x1xf32>
    %716 = math.rsqrt %715 : vector<32x1xf32>
    %717 = vector.broadcast %716 : vector<32x1xf32> to vector<32x32xf32>
    %718 = arith.mulf %713, %717 : vector<32x32xf32>
    %719 = vector.broadcast %699 : vector<1x32xf32> to vector<32x32xf32>
    %720 = arith.mulf %718, %719 : vector<32x32xf32>
    %721 = vector.broadcast %700 : vector<1x32xf32> to vector<32x32xf32>
    %722 = arith.addf %720, %721 : vector<32x32xf32>
    %c0_140 = arith.constant 0 : index
    %c0_141 = arith.constant 0 : index
    %723 = vector.load %arg19[%c0_140, %c0_141] : memref<32x32xf32, #tpu.memory_space<vmem>>, vector<32x32xf32>
    %cst_142 = arith.constant dense<0.000000e+00> : vector<32x32xf32>
    %724 = tpu.matmul %722, %723, %cst_142 {dimension_numbers = #tpu.dot_dimension_numbers<[1], [0], [0], [1], [0, 0, 1, 1], [], []>} : vector<32x32xf32>, vector<32x32xf32>, vector<32x32xf32> -> vector<32x32xf32>
    %c0_143 = arith.constant 0 : index
    %c0_144 = arith.constant 0 : index
    %725 = vector.load %arg20[%c0_143, %c0_144] : memref<1x32xf32, #tpu.memory_space<vmem>>, vector<1x32xf32>
    %726 = vector.broadcast %725 : vector<1x32xf32> to vector<32x32xf32>
    %727 = arith.addf %724, %726 : vector<32x32xf32>
    %cst_145 = arith.constant 0.000000e+00 : f32
    %728 = vector.broadcast %cst_145 : f32 to vector<32x32xf32>
    %729 = arith.maximumf %727, %728 : vector<32x32xf32>
    %c0_146 = arith.constant 0 : index
    %c0_147 = arith.constant 0 : index
    %730 = vector.load %arg21[%c0_146, %c0_147] : memref<32x32xf32, #tpu.memory_space<vmem>>, vector<32x32xf32>
    %cst_148 = arith.constant dense<0.000000e+00> : vector<32x32xf32>
    %731 = tpu.matmul %729, %730, %cst_148 {dimension_numbers = #tpu.dot_dimension_numbers<[1], [0], [0], [1], [0, 0, 1, 1], [], []>} : vector<32x32xf32>, vector<32x32xf32>, vector<32x32xf32> -> vector<32x32xf32>
    %c0_149 = arith.constant 0 : index
    %c0_150 = arith.constant 0 : index
    %732 = vector.load %arg22[%c0_149, %c0_150] : memref<1x32xf32, #tpu.memory_space<vmem>>, vector<1x32xf32>
    %733 = vector.broadcast %732 : vector<1x32xf32> to vector<32x32xf32>
    %734 = arith.addf %731, %733 : vector<32x32xf32>
    %735 = arith.addf %734, %698 : vector<32x32xf32>
    %736 = vector.extract_strided_slice %735 {offsets = [0, 0], sizes = [16, 32], strides = [1, 1]} : vector<32x32xf32> to vector<16x32xf32>
    %c0_151 = arith.constant 0 : index
    %c0_152 = arith.constant 0 : index
    %c0_153 = arith.constant 0 : index
    %737 = vector.load %arg32[%c0_151, %c0_152, %c0_153] : memref<2x16x32xf32, #tpu.memory_space<vmem>>, vector<1x16x32xf32>
    %738 = vector.shape_cast %737 : vector<1x16x32xf32> to vector<16x32xf32>
    %739 = vector.shape_cast %736 : vector<16x32xf32> to vector<1x16x32xf32>
    tpu.vector_store %arg32[%c0_151, %c0_152, %c0_153], %739 {strides = array<i32>} : memref<2x16x32xf32, #tpu.memory_space<vmem>>, vector<1x16x32xf32>,
    %740 = vector.extract_strided_slice %735 {offsets = [16, 0], sizes = [16, 32], strides = [1, 1]} : vector<32x32xf32> to vector<16x32xf32>
    %c1 = arith.constant 1 : index
    %c0_154 = arith.constant 0 : index
    %c0_155 = arith.constant 0 : index
    %741 = vector.load %arg32[%c1, %c0_154, %c0_155] : memref<2x16x32xf32, #tpu.memory_space<vmem>>, vector<1x16x32xf32>
    %742 = vector.shape_cast %741 : vector<1x16x32xf32> to vector<16x32xf32>
    %743 = vector.shape_cast %740 : vector<16x32xf32> to vector<1x16x32xf32>
    tpu.vector_store %arg32[%c1, %c0_154, %c0_155], %743 {strides = array<i32>} : memref<2x16x32xf32, #tpu.memory_space<vmem>>, vector<1x16x32xf32>,
    %c0_156 = arith.constant 0 : index
    %c0_157 = arith.constant 0 : index
    %744 = vector.load %arg1[%c0_156, %c0_157] : memref<32x64xf32, #tpu.memory_space<vmem>>, vector<32x64xf32>
    %c0_158 = arith.constant 0 : index
    %c0_159 = arith.constant 0 : index
    %745 = vector.load %arg27[%c0_158, %c0_159] : memref<64x32xf32, #tpu.memory_space<vmem>>, vector<64x32xf32>
    %cst_160 = arith.constant dense<0.000000e+00> : vector<32x32xf32>
    %746 = tpu.matmul %744, %745, %cst_160 {dimension_numbers = #tpu.dot_dimension_numbers<[1], [0], [0], [1], [0, 0, 1, 1], [], []>} : vector<32x64xf32>, vector<64x32xf32>, vector<32x32xf32> -> vector<32x32xf32>
    %c0_161 = arith.constant 0 : index
    %c0_162 = arith.constant 0 : index
    %747 = vector.load %arg28[%c0_161, %c0_162] : memref<1x32xf32, #tpu.memory_space<vmem>>, vector<1x32xf32>
    %748 = vector.broadcast %747 : vector<1x32xf32> to vector<32x32xf32>
    %749 = arith.addf %746, %748 : vector<32x32xf32>
    %c0_163 = arith.constant 0 : index
    %c0_164 = arith.constant 0 : index
    %750 = vector.load %arg23[%c0_163, %c0_164] : memref<1x32xf32, #tpu.memory_space<vmem>>, vector<1x32xf32>
    %c0_165 = arith.constant 0 : index
    %c0_166 = arith.constant 0 : index
    %751 = vector.load %arg24[%c0_165, %c0_166] : memref<1x32xf32, #tpu.memory_space<vmem>>, vector<1x32xf32>
    %c0_167 = arith.constant 0 : index
    %c0_168 = arith.constant 0 : index
    %752 = vector.load %arg25[%c0_167, %c0_168] : memref<1x32xf32, #tpu.memory_space<vmem>>, vector<1x32xf32>
    %c0_169 = arith.constant 0 : index
    %c0_170 = arith.constant 0 : index
    %753 = vector.load %arg26[%c0_169, %c0_170] : memref<1x1xf32, #tpu.memory_space<vmem>>, vector<1x1xf32>
    %754 = vector.extract_strided_slice %749 {offsets = [0, 0], sizes = [16, 32], strides = [1, 1]} : vector<32x32xf32> to vector<16x32xf32>
    %755 = vector.extract_strided_slice %735 {offsets = [0, 0], sizes = [16, 32], strides = [1, 1]} : vector<32x32xf32> to vector<16x32xf32>
    %756 = vector.broadcast %750 : vector<1x32xf32> to vector<16x32xf32>
    %757 = arith.mulf %754, %756 : vector<16x32xf32>
    %cst_171 = arith.constant dense<0.000000e+00> : vector<16xf32>
    %758 = vector.multi_reduction <add>, %757, %cst_171 [1] : vector<16x32xf32> to vector<16xf32>
    %759 = vector.shape_cast %758 : vector<16xf32> to vector<16x1xf32>
    "tpu.trace_start"() <{level = 10 : i32, message = "od,qd->oq"}> : () -> ()
    %cst_172 = arith.constant dense<0.000000e+00> : vector<1x16xf32>
    %760 = tpu.matmul %751, %755, %cst_172 {dimension_numbers = #tpu.dot_dimension_numbers<[1], [1], [0], [0], [0, 0, 1, 0], [], []>} : vector<1x32xf32>, vector<16x32xf32>, vector<1x16xf32> -> vector<1x16xf32>
    "tpu.trace_stop"() : () -> ()
    %761 = vector.broadcast %752 : vector<1x32xf32> to vector<16x32xf32>
    %762 = arith.mulf %754, %761 : vector<16x32xf32>
    "tpu.trace_start"() <{level = 10 : i32, message = "vd,qd->vq"}> : () -> ()
    %cst_173 = arith.constant dense<0.000000e+00> : vector<16x16xf32>
    %763 = tpu.matmul %762, %755, %cst_173 {dimension_numbers = #tpu.dot_dimension_numbers<[1], [1], [0], [0], [0, 0, 1, 0], [], []>} : vector<16x32xf32>, vector<16x32xf32>, vector<16x16xf32> -> vector<16x16xf32>
    "tpu.trace_stop"() : () -> ()
    %764 = vector.broadcast %759 : vector<16x1xf32> to vector<16x16xf32>
    %765 = vector.broadcast %760 : vector<1x16xf32> to vector<16x16xf32>
    %766 = arith.addf %764, %765 : vector<16x16xf32>
    %767 = arith.addf %766, %763 : vector<16x16xf32>
    %768 = vector.broadcast %753 : vector<1x1xf32> to vector<16x16xf32>
    %769 = arith.addf %767, %768 : vector<16x16xf32>
    %770 = vector.extract_strided_slice %749 {offsets = [16, 0], sizes = [16, 32], strides = [1, 1]} : vector<32x32xf32> to vector<16x32xf32>
    %771 = vector.extract_strided_slice %735 {offsets = [16, 0], sizes = [16, 32], strides = [1, 1]} : vector<32x32xf32> to vector<16x32xf32>
    %772 = vector.broadcast %750 : vector<1x32xf32> to vector<16x32xf32>
    %773 = arith.mulf %770, %772 : vector<16x32xf32>
    %cst_174 = arith.constant dense<0.000000e+00> : vector<16xf32>
    %774 = vector.multi_reduction <add>, %773, %cst_174 [1] : vector<16x32xf32> to vector<16xf32>
    %775 = vector.shape_cast %774 : vector<16xf32> to vector<16x1xf32>
    "tpu.trace_start"() <{level = 10 : i32, message = "od,qd->oq"}> : () -> ()
    %cst_175 = arith.constant dense<0.000000e+00> : vector<1x16xf32>
    %776 = tpu.matmul %751, %771, %cst_175 {dimension_numbers = #tpu.dot_dimension_numbers<[1], [1], [0], [0], [0, 0, 1, 0], [], []>} : vector<1x32xf32>, vector<16x32xf32>, vector<1x16xf32> -> vector<1x16xf32>
    "tpu.trace_stop"() : () -> ()
    %777 = vector.broadcast %752 : vector<1x32xf32> to vector<16x32xf32>
    %778 = arith.mulf %770, %777 : vector<16x32xf32>
    "tpu.trace_start"() <{level = 10 : i32, message = "vd,qd->vq"}> : () -> ()
    %cst_176 = arith.constant dense<0.000000e+00> : vector<16x16xf32>
    %779 = tpu.matmul %778, %771, %cst_176 {dimension_numbers = #tpu.dot_dimension_numbers<[1], [1], [0], [0], [0, 0, 1, 0], [], []>} : vector<16x32xf32>, vector<16x32xf32>, vector<16x16xf32> -> vector<16x16xf32>
    "tpu.trace_stop"() : () -> ()
    %780 = vector.broadcast %775 : vector<16x1xf32> to vector<16x16xf32>
    %781 = vector.broadcast %776 : vector<1x16xf32> to vector<16x16xf32>
    %782 = arith.addf %780, %781 : vector<16x16xf32>
    %783 = arith.addf %782, %779 : vector<16x16xf32>
    %784 = vector.broadcast %753 : vector<1x1xf32> to vector<16x16xf32>
    %785 = arith.addf %783, %784 : vector<16x16xf32>
    %786 = arith.addf %769, %785 : vector<16x16xf32>
    %cst_177 = arith.constant 5.000000e-01 : f32
    %787 = vector.broadcast %cst_177 : f32 to vector<16x16xf32>
    %788 = arith.mulf %786, %787 : vector<16x16xf32>
    %789 = vector.extract_strided_slice %0 {offsets = [0, 0], sizes = [1, 16], strides = [1, 1]} : vector<2x16xf32> to vector<1x16xf32>
    %cst_178 = arith.constant 0.000000e+00 : f32
    %790 = vector.broadcast %cst_178 : f32 to vector<1x16xf32>
    %791 = arith.cmpf ogt, %789, %790 : vector<1x16xf32>
    %cst_179 = arith.constant -1.000000e+30 : f32
    %792 = vector.shape_cast %791 : vector<1x16xi1> to vector<1x16xi1>
    %793 = vector.broadcast %792 : vector<1x16xi1> to vector<16x16xi1>
    %794 = vector.broadcast %cst_179 : f32 to vector<16x16xf32>
    %795 = arith.select %793, %769, %794 : vector<16x16xi1>, vector<16x16xf32>
    %cst_180 = arith.constant dense<0xFF800000> : vector<16xf32>
    %796 = vector.multi_reduction <maximumf>, %795, %cst_180 [1] : vector<16x16xf32> to vector<16xf32>
    %797 = vector.shape_cast %796 : vector<16xf32> to vector<16x1xf32>
    %798 = vector.broadcast %797 : vector<16x1xf32> to vector<16x16xf32>
    %799 = arith.subf %795, %798 : vector<16x16xf32>
    %800 = math.exp %799 : vector<16x16xf32>
    %cst_181 = arith.constant dense<0.000000e+00> : vector<16xf32>
    %801 = vector.multi_reduction <add>, %800, %cst_181 [1] : vector<16x16xf32> to vector<16xf32>
    %802 = vector.shape_cast %801 : vector<16xf32> to vector<16x1xf32>
    %803 = tpu.reciprocal %802 {approx = true} : vector<16x1xf32> -> vector<16x1xf32>
    %804 = vector.broadcast %803 : vector<16x1xf32> to vector<16x16xf32>
    %805 = arith.mulf %800, %804 : vector<16x16xf32>
    %cst_182 = arith.constant dense<0xFF800000> : vector<16xf32>
    %806 = vector.multi_reduction <maximumf>, %769, %cst_182 [0] : vector<16x16xf32> to vector<16xf32>
    %807 = vector.shape_cast %806 : vector<16xf32> to vector<1x16xf32>
    %808 = vector.broadcast %807 : vector<1x16xf32> to vector<16x16xf32>
    %809 = arith.subf %769, %808 : vector<16x16xf32>
    %810 = math.exp %809 : vector<16x16xf32>
    %cst_183 = arith.constant dense<0.000000e+00> : vector<16xf32>
    %811 = vector.multi_reduction <add>, %810, %cst_183 [0] : vector<16x16xf32> to vector<16xf32>
    %812 = vector.shape_cast %811 : vector<16xf32> to vector<1x16xf32>
    %813 = tpu.reciprocal %812 {approx = true} : vector<1x16xf32> -> vector<1x16xf32>
    %814 = vector.broadcast %813 : vector<1x16xf32> to vector<16x16xf32>
    %815 = arith.mulf %810, %814 : vector<16x16xf32>
    %cst_184 = arith.constant dense<0.000000e+00> : vector<16x32xf32>
    %816 = tpu.matmul %805, %755, %cst_184 {dimension_numbers = #tpu.dot_dimension_numbers<[1], [0], [0], [1], [0, 0, 1, 1], [], []>} : vector<16x16xf32>, vector<16x32xf32>, vector<16x32xf32> -> vector<16x32xf32>
    "tpu.trace_start"() <{level = 10 : i32, message = "vq,wq->vw"}> : () -> ()
    %cst_185 = arith.constant dense<0.000000e+00> : vector<16x16xf32>
    %817 = tpu.matmul %805, %815, %cst_185 {dimension_numbers = #tpu.dot_dimension_numbers<[1], [1], [0], [0], [0, 0, 1, 0], [], []>} : vector<16x16xf32>, vector<16x16xf32>, vector<16x16xf32> -> vector<16x16xf32>
    "tpu.trace_stop"() : () -> ()
    %cst_186 = arith.constant dense<0.000000e+00> : vector<16x32xf32>
    %818 = tpu.matmul %817, %754, %cst_186 {dimension_numbers = #tpu.dot_dimension_numbers<[1], [0], [0], [1], [0, 0, 1, 1], [], []>} : vector<16x16xf32>, vector<16x32xf32>, vector<16x32xf32> -> vector<16x32xf32>
    %cst_187 = arith.constant 0.000000e+00 : f32
    %819 = vector.broadcast %cst_187 : f32 to vector<1x16xf32>
    %820 = arith.cmpf ogt, %789, %819 : vector<1x16xf32>
    %cst_188 = arith.constant -1.000000e+30 : f32
    %821 = vector.shape_cast %820 : vector<1x16xi1> to vector<1x16xi1>
    %822 = vector.broadcast %821 : vector<1x16xi1> to vector<16x16xi1>
    %823 = vector.broadcast %cst_188 : f32 to vector<16x16xf32>
    %824 = arith.select %822, %788, %823 : vector<16x16xi1>, vector<16x16xf32>
    %cst_189 = arith.constant dense<0xFF800000> : vector<16xf32>
    %825 = vector.multi_reduction <maximumf>, %824, %cst_189 [1] : vector<16x16xf32> to vector<16xf32>
    %826 = vector.shape_cast %825 : vector<16xf32> to vector<16x1xf32>
    %827 = vector.broadcast %826 : vector<16x1xf32> to vector<16x16xf32>
    %828 = arith.subf %824, %827 : vector<16x16xf32>
    %829 = math.exp %828 : vector<16x16xf32>
    %cst_190 = arith.constant dense<0.000000e+00> : vector<16xf32>
    %830 = vector.multi_reduction <add>, %829, %cst_190 [1] : vector<16x16xf32> to vector<16xf32>
    %831 = vector.shape_cast %830 : vector<16xf32> to vector<16x1xf32>
    %832 = tpu.reciprocal %831 {approx = true} : vector<16x1xf32> -> vector<16x1xf32>
    %833 = vector.broadcast %832 : vector<16x1xf32> to vector<16x16xf32>
    %834 = arith.mulf %829, %833 : vector<16x16xf32>
    %cst_191 = arith.constant dense<0xFF800000> : vector<16xf32>
    %835 = vector.multi_reduction <maximumf>, %788, %cst_191 [0] : vector<16x16xf32> to vector<16xf32>
    %836 = vector.shape_cast %835 : vector<16xf32> to vector<1x16xf32>
    %837 = vector.broadcast %836 : vector<1x16xf32> to vector<16x16xf32>
    %838 = arith.subf %788, %837 : vector<16x16xf32>
    %839 = math.exp %838 : vector<16x16xf32>
    %cst_192 = arith.constant dense<0.000000e+00> : vector<16xf32>
    %840 = vector.multi_reduction <add>, %839, %cst_192 [0] : vector<16x16xf32> to vector<16xf32>
    %841 = vector.shape_cast %840 : vector<16xf32> to vector<1x16xf32>
    %842 = tpu.reciprocal %841 {approx = true} : vector<1x16xf32> -> vector<1x16xf32>
    %843 = vector.broadcast %842 : vector<1x16xf32> to vector<16x16xf32>
    %844 = arith.mulf %839, %843 : vector<16x16xf32>
    %cst_193 = arith.constant dense<0.000000e+00> : vector<16x32xf32>
    %845 = tpu.matmul %834, %755, %cst_193 {dimension_numbers = #tpu.dot_dimension_numbers<[1], [0], [0], [1], [0, 0, 1, 1], [], []>} : vector<16x16xf32>, vector<16x32xf32>, vector<16x32xf32> -> vector<16x32xf32>
    "tpu.trace_start"() <{level = 10 : i32, message = "vq,wq->vw"}> : () -> ()
    %cst_194 = arith.constant dense<0.000000e+00> : vector<16x16xf32>
    %846 = tpu.matmul %834, %844, %cst_194 {dimension_numbers = #tpu.dot_dimension_numbers<[1], [1], [0], [0], [0, 0, 1, 0], [], []>} : vector<16x16xf32>, vector<16x16xf32>, vector<16x16xf32> -> vector<16x16xf32>
    "tpu.trace_stop"() : () -> ()
    %cst_195 = arith.constant dense<0.000000e+00> : vector<16x32xf32>
    %847 = tpu.matmul %846, %754, %cst_195 {dimension_numbers = #tpu.dot_dimension_numbers<[1], [0], [0], [1], [0, 0, 1, 1], [], []>} : vector<16x16xf32>, vector<16x32xf32>, vector<16x32xf32> -> vector<16x32xf32>
    %848 = arith.subf %816, %845 : vector<16x32xf32>
    %849 = arith.subf %818, %847 : vector<16x32xf32>
    %850 = arith.mulf %754, %816 : vector<16x32xf32>
    %851 = arith.mulf %754, %818 : vector<16x32xf32>
    %852 = tpu.concatenate %754, %816, %850, %851 in 1 : vector<16x32xf32>, vector<16x32xf32>, vector<16x32xf32>, vector<16x32xf32> -> vector<16x128xf32>
    %853 = arith.mulf %754, %848 : vector<16x32xf32>
    %854 = arith.mulf %754, %849 : vector<16x32xf32>
    %855 = tpu.concatenate %754, %848, %853, %854 in 1 : vector<16x32xf32>, vector<16x32xf32>, vector<16x32xf32>, vector<16x32xf32> -> vector<16x128xf32>
    %cst_196 = arith.constant dense<0.000000e+00> : vector<128xf32>
    %856 = vector.multi_reduction <add>, %852, %cst_196 [0] : vector<16x128xf32> to vector<128xf32>
    %857 = vector.shape_cast %856 : vector<128xf32> to vector<1x128xf32>
    %cst_197 = arith.constant 1.600000e+01 : f32
    %858 = vector.broadcast %cst_197 : f32 to vector<1x128xf32>
    %859 = arith.divf %857, %858 : vector<1x128xf32>
    %cst_198 = arith.constant dense<0.000000e+00> : vector<128xf32>
    %860 = vector.multi_reduction <add>, %855, %cst_198 [0] : vector<16x128xf32> to vector<128xf32>
    %861 = vector.shape_cast %860 : vector<128xf32> to vector<1x128xf32>
    %cst_199 = arith.constant 1.600000e+01 : f32
    %862 = vector.broadcast %cst_199 : f32 to vector<1x128xf32>
    %863 = arith.divf %861, %862 : vector<1x128xf32>
    %864 = vector.extract_strided_slice %0 {offsets = [1, 0], sizes = [1, 16], strides = [1, 1]} : vector<2x16xf32> to vector<1x16xf32>
    %cst_200 = arith.constant 0.000000e+00 : f32
    %865 = vector.broadcast %cst_200 : f32 to vector<1x16xf32>
    %866 = arith.cmpf ogt, %864, %865 : vector<1x16xf32>
    %cst_201 = arith.constant -1.000000e+30 : f32
    %867 = vector.shape_cast %866 : vector<1x16xi1> to vector<1x16xi1>
    %868 = vector.broadcast %867 : vector<1x16xi1> to vector<16x16xi1>
    %869 = vector.broadcast %cst_201 : f32 to vector<16x16xf32>
    %870 = arith.select %868, %785, %869 : vector<16x16xi1>, vector<16x16xf32>
    %cst_202 = arith.constant dense<0xFF800000> : vector<16xf32>
    %871 = vector.multi_reduction <maximumf>, %870, %cst_202 [1] : vector<16x16xf32> to vector<16xf32>
    %872 = vector.shape_cast %871 : vector<16xf32> to vector<16x1xf32>
    %873 = vector.broadcast %872 : vector<16x1xf32> to vector<16x16xf32>
    %874 = arith.subf %870, %873 : vector<16x16xf32>
    %875 = math.exp %874 : vector<16x16xf32>
    %cst_203 = arith.constant dense<0.000000e+00> : vector<16xf32>
    %876 = vector.multi_reduction <add>, %875, %cst_203 [1] : vector<16x16xf32> to vector<16xf32>
    %877 = vector.shape_cast %876 : vector<16xf32> to vector<16x1xf32>
    %878 = tpu.reciprocal %877 {approx = true} : vector<16x1xf32> -> vector<16x1xf32>
    %879 = vector.broadcast %878 : vector<16x1xf32> to vector<16x16xf32>
    %880 = arith.mulf %875, %879 : vector<16x16xf32>
    %cst_204 = arith.constant dense<0xFF800000> : vector<16xf32>
    %881 = vector.multi_reduction <maximumf>, %785, %cst_204 [0] : vector<16x16xf32> to vector<16xf32>
    %882 = vector.shape_cast %881 : vector<16xf32> to vector<1x16xf32>
    %883 = vector.broadcast %882 : vector<1x16xf32> to vector<16x16xf32>
    %884 = arith.subf %785, %883 : vector<16x16xf32>
    %885 = math.exp %884 : vector<16x16xf32>
    %cst_205 = arith.constant dense<0.000000e+00> : vector<16xf32>
    %886 = vector.multi_reduction <add>, %885, %cst_205 [0] : vector<16x16xf32> to vector<16xf32>
    %887 = vector.shape_cast %886 : vector<16xf32> to vector<1x16xf32>
    %888 = tpu.reciprocal %887 {approx = true} : vector<1x16xf32> -> vector<1x16xf32>
    %889 = vector.broadcast %888 : vector<1x16xf32> to vector<16x16xf32>
    %890 = arith.mulf %885, %889 : vector<16x16xf32>
    %cst_206 = arith.constant dense<0.000000e+00> : vector<16x32xf32>
    %891 = tpu.matmul %880, %771, %cst_206 {dimension_numbers = #tpu.dot_dimension_numbers<[1], [0], [0], [1], [0, 0, 1, 1], [], []>} : vector<16x16xf32>, vector<16x32xf32>, vector<16x32xf32> -> vector<16x32xf32>
    "tpu.trace_start"() <{level = 10 : i32, message = "vq,wq->vw"}> : () -> ()
    %cst_207 = arith.constant dense<0.000000e+00> : vector<16x16xf32>
    %892 = tpu.matmul %880, %890, %cst_207 {dimension_numbers = #tpu.dot_dimension_numbers<[1], [1], [0], [0], [0, 0, 1, 0], [], []>} : vector<16x16xf32>, vector<16x16xf32>, vector<16x16xf32> -> vector<16x16xf32>
    "tpu.trace_stop"() : () -> ()
    %cst_208 = arith.constant dense<0.000000e+00> : vector<16x32xf32>
    %893 = tpu.matmul %892, %770, %cst_208 {dimension_numbers = #tpu.dot_dimension_numbers<[1], [0], [0], [1], [0, 0, 1, 1], [], []>} : vector<16x16xf32>, vector<16x32xf32>, vector<16x32xf32> -> vector<16x32xf32>
    %cst_209 = arith.constant 0.000000e+00 : f32
    %894 = vector.broadcast %cst_209 : f32 to vector<1x16xf32>
    %895 = arith.cmpf ogt, %864, %894 : vector<1x16xf32>
    %cst_210 = arith.constant -1.000000e+30 : f32
    %896 = vector.shape_cast %895 : vector<1x16xi1> to vector<1x16xi1>
    %897 = vector.broadcast %896 : vector<1x16xi1> to vector<16x16xi1>
    %898 = vector.broadcast %cst_210 : f32 to vector<16x16xf32>
    %899 = arith.select %897, %788, %898 : vector<16x16xi1>, vector<16x16xf32>
    %cst_211 = arith.constant dense<0xFF800000> : vector<16xf32>
    %900 = vector.multi_reduction <maximumf>, %899, %cst_211 [1] : vector<16x16xf32> to vector<16xf32>
    %901 = vector.shape_cast %900 : vector<16xf32> to vector<16x1xf32>
    %902 = vector.broadcast %901 : vector<16x1xf32> to vector<16x16xf32>
    %903 = arith.subf %899, %902 : vector<16x16xf32>
    %904 = math.exp %903 : vector<16x16xf32>
    %cst_212 = arith.constant dense<0.000000e+00> : vector<16xf32>
    %905 = vector.multi_reduction <add>, %904, %cst_212 [1] : vector<16x16xf32> to vector<16xf32>
    %906 = vector.shape_cast %905 : vector<16xf32> to vector<16x1xf32>
    %907 = tpu.reciprocal %906 {approx = true} : vector<16x1xf32> -> vector<16x1xf32>
    %908 = vector.broadcast %907 : vector<16x1xf32> to vector<16x16xf32>
    %909 = arith.mulf %904, %908 : vector<16x16xf32>
    %cst_213 = arith.constant dense<0xFF800000> : vector<16xf32>
    %910 = vector.multi_reduction <maximumf>, %788, %cst_213 [0] : vector<16x16xf32> to vector<16xf32>
    %911 = vector.shape_cast %910 : vector<16xf32> to vector<1x16xf32>
    %912 = vector.broadcast %911 : vector<1x16xf32> to vector<16x16xf32>
    %913 = arith.subf %788, %912 : vector<16x16xf32>
    %914 = math.exp %913 : vector<16x16xf32>
    %cst_214 = arith.constant dense<0.000000e+00> : vector<16xf32>
    %915 = vector.multi_reduction <add>, %914, %cst_214 [0] : vector<16x16xf32> to vector<16xf32>
    %916 = vector.shape_cast %915 : vector<16xf32> to vector<1x16xf32>
    %917 = tpu.reciprocal %916 {approx = true} : vector<1x16xf32> -> vector<1x16xf32>
    %918 = vector.broadcast %917 : vector<1x16xf32> to vector<16x16xf32>
    %919 = arith.mulf %914, %918 : vector<16x16xf32>
    %cst_215 = arith.constant dense<0.000000e+00> : vector<16x32xf32>
    %920 = tpu.matmul %909, %771, %cst_215 {dimension_numbers = #tpu.dot_dimension_numbers<[1], [0], [0], [1], [0, 0, 1, 1], [], []>} : vector<16x16xf32>, vector<16x32xf32>, vector<16x32xf32> -> vector<16x32xf32>
    "tpu.trace_start"() <{level = 10 : i32, message = "vq,wq->vw"}> : () -> ()
    %cst_216 = arith.constant dense<0.000000e+00> : vector<16x16xf32>
    %921 = tpu.matmul %909, %919, %cst_216 {dimension_numbers = #tpu.dot_dimension_numbers<[1], [1], [0], [0], [0, 0, 1, 0], [], []>} : vector<16x16xf32>, vector<16x16xf32>, vector<16x16xf32> -> vector<16x16xf32>
    "tpu.trace_stop"() : () -> ()
    %cst_217 = arith.constant dense<0.000000e+00> : vector<16x32xf32>
    %922 = tpu.matmul %921, %770, %cst_217 {dimension_numbers = #tpu.dot_dimension_numbers<[1], [0], [0], [1], [0, 0, 1, 1], [], []>} : vector<16x16xf32>, vector<16x32xf32>, vector<16x32xf32> -> vector<16x32xf32>
    %923 = arith.subf %891, %920 : vector<16x32xf32>
    %924 = arith.subf %893, %922 : vector<16x32xf32>
    %925 = arith.mulf %770, %891 : vector<16x32xf32>
    %926 = arith.mulf %770, %893 : vector<16x32xf32>
    %927 = tpu.concatenate %770, %891, %925, %926 in 1 : vector<16x32xf32>, vector<16x32xf32>, vector<16x32xf32>, vector<16x32xf32> -> vector<16x128xf32>
    %928 = arith.mulf %770, %923 : vector<16x32xf32>
    %929 = arith.mulf %770, %924 : vector<16x32xf32>
    %930 = tpu.concatenate %770, %923, %928, %929 in 1 : vector<16x32xf32>, vector<16x32xf32>, vector<16x32xf32>, vector<16x32xf32> -> vector<16x128xf32>
    %cst_218 = arith.constant dense<0.000000e+00> : vector<128xf32>
    %931 = vector.multi_reduction <add>, %927, %cst_218 [0] : vector<16x128xf32> to vector<128xf32>
    %932 = vector.shape_cast %931 : vector<128xf32> to vector<1x128xf32>
    %cst_219 = arith.constant 1.600000e+01 : f32
    %933 = vector.broadcast %cst_219 : f32 to vector<1x128xf32>
    %934 = arith.divf %932, %933 : vector<1x128xf32>
    %cst_220 = arith.constant dense<0.000000e+00> : vector<128xf32>
    %935 = vector.multi_reduction <add>, %930, %cst_220 [0] : vector<16x128xf32> to vector<128xf32>
    %936 = vector.shape_cast %935 : vector<128xf32> to vector<1x128xf32>
    %cst_221 = arith.constant 1.600000e+01 : f32
    %937 = vector.broadcast %cst_221 : f32 to vector<1x128xf32>
    %938 = arith.divf %936, %937 : vector<1x128xf32>
    %939 = tpu.concatenate %859, %934, %863, %938 in 0 : vector<1x128xf32>, vector<1x128xf32>, vector<1x128xf32>, vector<1x128xf32> -> vector<4x128xf32>
    %c0_222 = arith.constant 0 : index
    %c0_223 = arith.constant 0 : index
    %940 = vector.load %arg29[%c0_222, %c0_223] : memref<128x32xf32, #tpu.memory_space<vmem>>, vector<128x32xf32>
    %cst_224 = arith.constant dense<0.000000e+00> : vector<4x32xf32>
    %941 = tpu.matmul %939, %940, %cst_224 {dimension_numbers = #tpu.dot_dimension_numbers<[1], [0], [0], [1], [0, 0, 1, 1], [], []>} : vector<4x128xf32>, vector<128x32xf32>, vector<4x32xf32> -> vector<4x32xf32>
    %942 = vector.extract_strided_slice %941 {offsets = [0, 0], sizes = [2, 32], strides = [1, 1]} : vector<4x32xf32> to vector<2x32xf32>
    %c0_225 = arith.constant 0 : index
    %c0_226 = arith.constant 0 : index
    %943 = vector.load %arg30[%c0_225, %c0_226] : memref<2x32xf32, #tpu.memory_space<vmem>>, vector<2x32xf32>
    tpu.vector_store %arg30[%c0_225, %c0_226], %942 {strides = array<i32>} : memref<2x32xf32, #tpu.memory_space<vmem>>, vector<2x32xf32>,
    %944 = vector.extract_strided_slice %941 {offsets = [2, 0], sizes = [2, 32], strides = [1, 1]} : vector<4x32xf32> to vector<2x32xf32>
    %c0_227 = arith.constant 0 : index
    %c0_228 = arith.constant 0 : index
    %945 = vector.load %arg31[%c0_227, %c0_228] : memref<2x32xf32, #tpu.memory_space<vmem>>, vector<2x32xf32>
    tpu.vector_store %arg31[%c0_227, %c0_228], %944 {strides = array<i32>} : memref<2x32xf32, #tpu.memory_space<vmem>>, vector<2x32xf32>,
    return
  }
}

</mosaic_0001>

<bundles_post_ra>
// kernel: encoder_qns_psac_counter3a_forward.1
= control target key start
LH: loop header
LB: loop body
LE: loop exit
PB: predicated region body
PF: predicated region fallthrough
CT: control target
= control target key end

     0   :  { %s7793_s6 = smov 1   ;;  %s7794_s10 = smov 2   ;;  %s9614_s0 = inlined_call_operand.smem [shape: u32[33], index: -1, kind: input, shape index: {}] }
   0x1   :  { %s7855_s5 = sld [smem:[%s9614_s0]]   ;;  %s7795_s14 = smov 3  }
   0x2   :  { %s7860_s9 = sld [smem:[%s9614_s0 + %s7793_s6]]   ;;  %s7796_s18 = smov 4  }
   0x3   :  { %s7865_s13 = sld [smem:[%s9614_s0 + %s7794_s10]]   ;;  %s7797_s22 = smov 5  }
   0x4   :  { %s7870_s17 = sld [smem:[%s9614_s0 + %s7795_s14]]   ;;  %s7798_s26 = smov 6  }
   0x5   :  { %s7875_s21 = sld [smem:[%s9614_s0 + %s7796_s18]]   ;;  %s7799_s30 = smov 7  }
   0x6   :  { %s7880_s25 = sld [smem:[%s9614_s0 + %s7797_s22]]   ;;  %s7800_s4 = smov 8  }
   0x7   :  { %s7885_s29 = sld [smem:[%s9614_s0 + %s7798_s26]]   ;;  %s7801_s10 = smov 9  }
   0x8   :  { %9624 = sst [smem:[#allocation10_spill]] %s7860_s9  ;;  %s7802_s15 = smov 10  }
   0x9   :  { %9625 = sst [smem:[#allocation11_spill]] %s7865_s13  ;;  %s7803_s20 = smov 11  }
   0xa   :  { %s7890_s3 = sld [smem:[%s9614_s0 + %s7799_s30]]   ;;  %s7804_s26 = smov 12  }
   0xb   :  { %s7895_s8 = sld [smem:[%s9614_s0 + %s7800_s4]]   ;;  %s7805_s1 = smov 13  }
   0xc   :  { %s7900_s14 = sld [smem:[%s9614_s0 + %s7801_s10]]   ;;  %s7806_s7 = smov 14  }
   0xd   :  { %s7905_s19 = sld [smem:[%s9614_s0 + %s7802_s15]]   ;;  %s7807_s15 = smov 15  }
   0xe   :  { %s7910_s24 = sld [smem:[%s9614_s0 + %s7803_s20]]   ;;  %s7808_s22 = smov 16  }
   0xf   :  { %s7915_s30 = sld [smem:[%s9614_s0 + %s7804_s26]]   ;;  %s7809_s28 = smov 17  }
  0x10   :  { %s7920_s6 = sld [smem:[%s9614_s0 + %s7805_s1]]   ;;  %s7819_s16 = smov 27  }
  0x11   :  { %s7925_s12 = sld [smem:[%s9614_s0 + %s7806_s7]]   ;;  %s7810_s7 = smov 18  }
  0x12   :  { %s7930_s20 = sld [smem:[%s9614_s0 + %s7807_s15]]   ;;  %s7811_s15 = smov 19  }
  0x13   :  { %s7935_s27 = sld [smem:[%s9614_s0 + %s7808_s22]]   ;;  %s7812_s22 = smov 20  }
  0x14   :  { %s7940_s4 = sld [smem:[%s9614_s0 + %s7809_s28]]   ;;  %s7813_s28 = smov 21  }
  0x15   :  { %s7945_s9 = sld [smem:[%s9614_s0 + %s7810_s7]]   ;;  %s7814_s7 = smov 22  }
  0x16   :  { %s7950_s13 = sld [smem:[%s9614_s0 + %s7811_s15]]   ;;  %s7815_s15 = smov 23  }
  0x17   :  { %9626 = sst [smem:[#allocation12_spill]] %s7925_s12  ;;  %s7820_s23 = smov 28  }
  0x18   :  { %9627 = sst [smem:[#allocation13_spill]] %s7930_s20  ;;  %s7821_s1 = smov 29  }
  0x19   :  { %9628 = sst [smem:[#allocation14_spill]] %s7935_s27  ;;  %s7822_s10 = smov 30  }
  0x1a   :  { %9629 = sst [smem:[#allocation15_spill]] %s7940_s4 }
  0x1b   :  { %s7955_s27 = sld [smem:[%s9614_s0 + %s7812_s22]]   ;;  %s7816_s22 = smov 24  }
  0x1c   :  { %9630 = sst [smem:[#allocation16_spill]] %s7950_s13 }
  0x1d   :  { %s7960_s4 = sld [smem:[%s9614_s0 + %s7813_s28]]   ;;  %s7817_s28 = smov 25  }
  0x1e   :  { %s7965_s20 = sld [smem:[%s9614_s0 + %s7814_s7]]   ;;  %s7818_s7 = smov 26  }
  0x1f   :  { %s7970_s13 = sld [smem:[%s9614_s0 + %s7815_s15]]  }
  0x20   :  { %s8003_s12 = sld [smem:[%s9614_s0 + %s7822_s10]]  }
  0x21   :  { %9631 = sst [smem:[#allocation17_spill]] %s7955_s27 }
  0x22   :  { %s7975_s27 = sld [smem:[%s9614_s0 + %s7816_s22]]  }
  0x23   :  { %9632 = sst [smem:[#allocation18_spill]] %s7960_s4 }
  0x24   :  { %9633 = sst [smem:[#allocation19_spill]] %s7965_s20 }
  0x25   :  { %9634 = sst [smem:[#allocation20_spill]] %s7970_s13 }
  0x26   :  { %s7980_s4 = sld [smem:[%s9614_s0 + %s7817_s28]]  }
  0x27   :  { %s6618_s20 = sld [smem:[%s9614_s0 + %s7818_s7]]  }
  0x28   :  { %9635 = sst [smem:[#allocation21_spill]] %s7975_s27 }
  0x29   :  { %s7988_s13 = sld [smem:[%s9614_s0 + %s7819_s16]]   ;;  %s7823_s16 = smov 31  }
  0x2a   :  { %s7993_s27 = sld [smem:[%s9614_s0 + %s7820_s23]]   ;;  %s7824_s23 = smov 32  }
  0x2c   :  { %9636 = sst [smem:[#allocation22_spill]] %s7980_s4 }
  0x2d   :  { %s7998_s4 = sld [smem:[%s9614_s0 + %s7821_s1]]   ;;  %v71_v0 = vstv %s6618_s20 }
  0x2e   :  { %72 = vst [vmem:[#allocation2] sm:$0x1] %v71_v0 }
  0x2f   :  { %9637 = sst [smem:[#allocation23_spill]] %s7988_s13 }
  0x30   :  { %9638 = sst [smem:[#allocation24_spill]] %s7993_s27 }
  0x31   :  { %s8008_s13 = sld [smem:[%s9614_s0 + %s7823_s16]]  }
  0x32   :  { %s8013_s27 = sld [smem:[%s9614_s0 + %s7824_s23]]  }
  0x33   :  { %73 = vsyncpa [#allocation4], 0  ;;  %v147_v1 = vld [vmem:[%s7875_s21 + $0x38] sm:$0xff]  ;;  %v146_v2 = vld [vmem:[%s7875_s21 + $0x30] sm:$0xff]  ;;  %vm155_vm0 = vcmask 523264  }
  0x34   :  { %7033 = vmatprep.subr.mxu0 %v147_v1  ;;  %v145_v3 = vld [vmem:[%s7875_s21 + $0x28] sm:$0xff]  ;;  %v136_v4 = vld [vmem:[%s7855_s5] sm:$0xff]  ;;  %v256_v6 = vld [vmem:[%s7885_s29 + $0x18] sm:$0xff] }
  0x35   :  { %7034 = vmatpush3.msra.mxu0 %v147_v1  ;;  %7049 = vmatprep.mubr.msk.f32.mxu0 %vm155_vm0, %v136_v4  ;;  %v144_v5 = vld [vmem:[%s7875_s21 + $0x20] sm:$0xff] }
  0x36   :  { %7035 = vmatprep.subr.mxu0 %v146_v2 }
  0x37   :  { %7036 = vmatpush3.msra.mxu0 %v146_v2 }
  0x38   :  { %74 = vsyncpa [#allocation6], 0  ;;  %7037 = vmatprep.subr.mxu0 %v145_v3  ;;  %7055 = vmatprep.subr.mxu1 %v256_v6  ;;  %v143_v7 = vld [vmem:[%s7875_s21 + $0x18] sm:$0xff]  ;;  %v142_v8 = vld [vmem:[%s7875_s21 + $0x10] sm:$0xff]  ;;  %vm257_vm1 = vcmask 261120   ;;  %v364_v34 = vlaneseq  ;;  %s7825_s0 = smov 32  }
  0x39   :  { %7038 = vmatpush3.msra.mxu0 %v145_v3  ;;  %7056 = vmatpush3.msra.mxu1 %v256_v6  ;;  %v141_v9 = vld [vmem:[%s7875_s21 + $0x8] sm:$0xff]  ;;  %v140_v10 = vld [vmem:[%s7875_s21] sm:$0xff]  ;;  %v138_v12 = vld [vmem:[%s7855_s5 + $0x10] sm:$0xff]  ;;  %vm856_vm2 = vcmask 1042432   ;;  %vm889_vm3 = vcmask 1046528   ;;  %vm909_vm4 = vcmask 1045504  }
  0x3a   :  { %7039 = vmatprep.subr.mxu0 %v144_v5  ;;  %v137_v11 = vld [vmem:[%s7855_s5 + $0x8] sm:$0xff]  ;;  %v139_v13 = vld [vmem:[%s7855_s5 + $0x18] sm:$0xff]  ;;  %v255_v14 = vld [vmem:[%s7885_s29 + $0x10] sm:$0xff]  ;;  %v8054_v35 = vshrl.u32 %v364_v34, 7  ;;  %s7826_s5 = smov 96   ;;  %vm929_vm5 = vcmask 1044480  }
  0x3b   :  { %7040 = vmatpush3.msra.mxu0 %v144_v5  ;;  %7057 = vmatprep.subr.mxu1 %v255_v14  ;;  %v254_v15 = vld [vmem:[%s7885_s29 + $0x8] sm:$0xff]  ;;  %v253_v16 = vld [vmem:[%s7885_s29] sm:$0xff]  ;;  %v358_v17 = vld [vmem:[%s7890_s3 + $0x18] sm:$0xff]  ;;  %vm949_vm6 = vcmask 1043456   ;;  %vm988_vm7 = vcmask 1041408   ;;  %s9646_s21 = sld [smem:[#allocation13_spill]] }
  0x3c   :  { %7041 = vmatprep.subr.mxu0 %v143_v7  ;;  %7058 = vmatpush3.msra.mxu1 %v255_v14  ;;  %v6625_v19 = vld [vmem:[%s7880_s25] ss:$0 sm:$0xff]  ;;  %v357_v24 = vld [vmem:[%s7890_s3 + $0x10] sm:$0xff]  ;;  %v356_v28 = vld [vmem:[%s7890_s3 + $0x8] sm:$0xff]  ;;  %v8057_v36 = vsub.s32 0, %v8054_v35  ;;  %v8078_v5 = vsub.s32 1, %v8054_v35 }
  0x3d   :  { %7042 = vmatpush3.msra.mxu0 %v143_v7  ;;  %7059 = vmatprep.subr.mxu1 %v254_v15  ;;  %v355_v29 = vld [vmem:[%s7890_s3] sm:$0xff]  ;;  %v362_v40 = vld [vmem:[%s7890_s3 + $0x38] sm:$0xff]  ;;  %v361_v41 = vld [vmem:[%s7890_s3 + $0x30] sm:$0xff]  ;;  %s7828_s25 = smov 120   ;;  %vm2639_vm8 = vcmask 64512   ;;  %s9647_s29 = sld [smem:[#allocation11_spill]] }
  0x3e   :  { %7043 = vmatprep.subr.mxu0 %v142_v8  ;;  %7060 = vmatpush3.msra.mxu1 %v254_v15  ;;  %v363_v37 = vld [vmem:[%s7895_s8] sm:$0x3]  ;;  %v360_v44 = vld [vmem:[%s7890_s3 + $0x28] sm:$0xff]  ;;  %vm2734_vm11 = vcmask 130048   ;;  %s7831_s8 = smov 56   ;;  %s7837_s20 = smov 40  }
  0x3f   :  { %7044 = vmatpush3.msra.mxu0 %v142_v8  ;;  %7061 = vmatprep.subr.mxu1 %v253_v16  ;;  %v8061_v38 = vrot.slane %v363_v37, %v8057_v36  ;;  %v359_v52 = vld [vmem:[%s7890_s3 + $0x20] sm:$0xff]  ;;  %v8081_v6 = vrot.slane %v363_v37, %v8078_v5  ;;  %s7830_s3 = smov 64   ;;  %s7838_s1 = smov 8   ;;  %vm3478_vm13 = vcmask 195584   ;;  %vm7842_vm14 = vmmov 0  }
  0x40   :  { %7045 = vmatprep.subr.mxu0 %v141_v9  ;;  %7062 = vmatpush3.msra.mxu1 %v253_v16  ;;  %s7839_s28 = smov 16   ;;  %s7840_s2 = smov 24   ;;  %vm5759_vm15 = vcmask 785408  }
  0x41   :  { %7046 = vmatpush3.msra.mxu0 %v141_v9  ;;  %7069 = vmatprep.subr.mxu1 %v358_v17  ;;  %s9652_s10 = sld [smem:[#allocation16_spill]] }
  0x42   :  { %7047 = vmatprep.subr.mxu0 %v140_v10  ;;  %s9653_s7 = sld [smem:[#allocation14_spill]] }
  0x43   :  { %7048 = vmatpush3.msra.mxu0 %v140_v10  ;;  %s9654_s11 = sld [smem:[#allocation15_spill]] }
  0x44   :  { %7050 = vmatmul.mubr.msk.f32.vlgmr.msra.gmra.mxu0 %vm155_vm0, %v137_v11  ;;  %7083 = vmatprep.subr.mxu0 %v362_v40  ;;  %v699_v11 = vld [vmem:[%s7870_s17 + $0x8] sm:$0xff]  ;;  %s9655_s16 = sld [smem:[#allocation18_spill]] }
  0x45   :  { %7052 = vmatprep.mubr.msk.f32.mxu0 %vm155_vm0, %v138_v12  ;;  %7084 = vmatpush3.msra.mxu0 %v362_v40  ;;  %v698_v12 = vld [vmem:[%s7870_s17] sm:$0xff]  ;;  %s9656_s15 = sld [smem:[#allocation23_spill]] }
  0x46   :  { %7085 = vmatprep.subr.mxu0 %v361_v41  ;;  %s9657_s18 = sld [smem:[#allocation17_spill]] }
  0x47   :  { %7086 = vmatpush3.msra.mxu0 %v361_v41  ;;  %s9658_s23 = sld [smem:[#allocation10_spill]] }
  0x48   :  { %7053 = vmatmul.mubr.msk.f32.gmra.mxu0 %vm155_vm0, %v139_v13  ;;  %7087 = vmatprep.subr.mxu0 %v360_v44  ;;  %s9659_s22 = sld [smem:[#allocation19_spill]] }
  0x49   :  { %7088 = vmatpush3.msra.mxu0 %v360_v44  ;;  %s9660_s26 = sld [smem:[#allocation21_spill]] }
  0x4a   :  { %7089 = vmatprep.subr.mxu0 %v359_v52 }
  0x4b   :  { %7090 = vmatpush3.msra.mxu0 %v359_v52 }
 0x104   :  { %v7051_v18 = vpop.f32.mrf.mxu0 }
 0x105   :  { %v240_v22 = vadd.f32 %v7051_v18, %v6625_v19 }
 0x106   :  { %v234_v20 = vpop.f32.mrf.mxu0 }
 0x107   :  { %v235_v21 = vadd.f32 %v6625_v19, %v234_v20 }
 0x108   :  { %v7054_v23 = vpop.f32.mrf.mxu0 }
 0x109   :  { %7063 = vmatprep.mubr.msk.f32.mxu1 %vm257_vm1, %v235_v21  ;;  %v250_v25 = vadd.f32 %v7054_v23, %v6625_v19 }
 0x10a   :  { %7064 = vmatmul.mubr.msk.f32.vlgmr.msra.gmra.mxu1 %vm257_vm1, %v240_v22  ;;  %v244_v26 = vpop.f32.mrf.mxu0 }
 0x10b   :  { %v245_v27 = vadd.f32 %v6625_v19, %v244_v26  ;;  %7070 = vmatpush3.msra.mxu1 %v358_v17 }
 0x10c   :  { %7071 = vmatprep.subr.mxu1 %v357_v24 }
 0x10d   :  { %7066 = vmatprep.mubr.msk.f32.mxu1 %vm257_vm1, %v245_v27  ;;  %7072 = vmatpush3.msra.mxu1 %v357_v24 }
 0x10e   :  { %7067 = vmatmul.mubr.msk.f32.gmra.mxu1 %vm257_vm1, %v250_v25  ;;  %7073 = vmatprep.subr.mxu1 %v356_v28 }
 0x10f   :  { %7074 = vmatpush3.msra.mxu1 %v356_v28 }
 0x110   :  { %7075 = vmatprep.subr.mxu1 %v355_v29 }
 0x111   :  { %7076 = vmatpush3.msra.mxu1 %v355_v29 }
 0x1ca   :  { %v7065_v30 = vpop.f32.mrf.mxu1 }
 0x1cc   :  { %v336_v31 = vpop.f32.mrf.mxu1 }
 0x1cd   :  { %7077 = vmatprep.mubr.msk.f32.mxu1 %vm257_vm1, %v336_v31 }
 0x1ce   :  { %7078 = vmatmul.mubr.msk.f32.vlgmr.msra.gmra.mxu1 %vm257_vm1, %v7065_v30  ;;  %v8046_v32 = vpop.f32.mrf.mxu1 }
 0x1d0   :  { %v8048_v33 = vpop.f32.mrf.mxu1 }
 0x1d1   :  { %7080 = vmatprep.mubr.msk.f32.mxu1 %vm257_vm1, %v8048_v33 }
 0x1d2   :  { %7081 = vmatmul.mubr.msk.f32.gmra.mxu1 %vm257_vm1, %v8046_v32 }
 0x28e   :  { %v7079_v39 = vpop.f32.mrf.mxu1 }
 0x28f   :  { %v452_v42 = vadd.f32 %v7079_v39, %v8061_v38 }
 0x290   :  { %v446_v43 = vpop.f32.mrf.mxu1 }
 0x291   :  { %v447_v45 = vadd.f32 %v446_v43, %v8061_v38  ;;  %495 = vrot.lane.b32.xlu1 %v452_v42, %s7825_s0  ;;  %v6639_v46 = vmul.f32 -1.442695, %v452_v42 }
 0x293   :  { %493 = vrot.lane.b32.xlu0 %v447_v45, %s7825_s0  ;;  %v6638_v47 = vmul.f32 -1.442695, %v447_v45  ;;  %7532 = vpow2.f32 %v6639_v46 }
 0x295   :  { %515 = vrot.lane.b32.xlu1 %v7065_v30, %s7825_s0  ;;  %7534 = vpow2.f32 %v6638_v47 }
 0x297   :  { %513 = vrot.lane.b32.xlu0 %v336_v31, %s7825_s0 }
 0x2a0   :  { %v7533_v48 = vpop.eup %7532 }
 0x2a1   :  { %v478_v50 = vadd.f32 1.0, %v7533_v48 }
 0x2a2   :  { %v7535_v49 = vpop.eup %7534 }
 0x2a3   :  { %v477_v51 = vadd.f32 1.0, %v7535_v49  ;;  %7536 = vrcp.f32 %v478_v50 }
 0x2a5   :  { %7538 = vrcp.f32 %v477_v51 }
 0x2b0   :  { %v7537_v53 = vpop.eup %7536 }
 0x2b1   :  { %v510_v57 = vsub.f32 1.0, %v7537_v53 }
 0x2b2   :  { %v7539_v55 = vpop.eup %7538 }
 0x2b3   :  { %v509_v61 = vsub.f32 1.0, %v7539_v55 }
 0x303   :  { %v496_v54 = vpop.permute.xlu1 %495 }
 0x304   :  { %v506_v59 = vmul.f32 %v7537_v53, %v496_v54 }
 0x305   :  { %v494_v56 = vpop.permute.xlu0 %493 }
 0x306   :  { %v505_v63 = vmul.f32 %v7539_v55, %v494_v56  ;;  %v8106_v56 = vld [vmem:[%s7905_s19] sm:$0xf] }
 0x307   :  { %v516_v58 = vpop.permute.xlu1 %515 }
 0x308   :  { %v526_v60 = vmul.f32 %v516_v58, %v510_v57  ;;  %v845_v57 = vrot.slane %v8106_v56, %v8057_v36  ;;  %v8112_v58 = vld [vmem:[%s7900_s14] sm:$0xf] }
 0x309   :  { %v514_v62 = vpop.permute.xlu0 %513 }
 0x30a   :  { %v530_v0 = vadd.f32 %v526_v60, %v506_v59  ;;  %v525_v1 = vmul.f32 %v514_v62, %v509_v61  ;;  %v7082_v59 = vpop.f32.mrf.mxu1  ;;  %v833_v60 = vrot.slane %v8112_v58, %v8057_v36 }
 0x30c   :  { %v529_v2 = vadd.f32 %v525_v1, %v505_v63  ;;  %543 = vrot.lane.b32.xlu1 %v530_v0, %s7826_s5  ;;  %v456_v61 = vpop.f32.mrf.mxu1  ;;  %v462_v63 = vadd.f32 %v7082_v59, %v8061_v38 }
 0x30d   :  { %v457_v62 = vadd.f32 %v456_v61, %v8061_v38 }
 0x30e   :  { %541 = vrot.lane.b32.xlu0 %v529_v2, %s7826_s5  ;;  %v6641_v1 = vmul.f32 -1.442695, %v462_v63 }
 0x37e   :  { %v544_v4 = vpop.permute.xlu1 %543 }
 0x380   :  { %v542_v3 = vpop.permute.xlu0 %541 }
 0x381   :  { %7091 = vmatprep.mubr.msk.f32.mxu0 %vm257_vm1, %v542_v3 }
 0x382   :  { %7092 = vmatmul.mubr.msk.f32.vlgmr.msra.gmra.mxu0 %vm257_vm1, %v544_v4 }
 0x442   :  { %v7093_v7 = vpop.f32.mrf.mxu0 }
 0x443   :  { %v629_v8 = vadd.f32 %v7093_v7, %v8081_v6 }
 0x444   :  { %v623_v9 = vpop.f32.mrf.mxu0 }
 0x445   :  { %v624_v10 = vadd.f32 %v623_v9, %v8081_v6  ;;  %672 = vrot.lane.b32.xlu1 %v629_v8, %s7825_s0  ;;  %v6647_v13 = vmul.f32 -1.442695, %v629_v8 }
 0x447   :  { %670 = vrot.lane.b32.xlu0 %v624_v10, %s7825_s0  ;;  %v6646_v14 = vmul.f32 -1.442695, %v624_v10  ;;  %7540 = vpow2.f32 %v6647_v13 }
 0x449   :  { %708 = vrot.lane.b32.xlu1 %v699_v11, %s7825_s0  ;;  %7542 = vpow2.f32 %v6646_v14 }
 0x44b   :  { %706 = vrot.lane.b32.xlu0 %v698_v12, %s7825_s0 }
 0x454   :  { %v7541_v15 = vpop.eup %7540 }
 0x455   :  { %v655_v17 = vadd.f32 1.0, %v7541_v15 }
 0x456   :  { %v7543_v16 = vpop.eup %7542 }
 0x457   :  { %v654_v18 = vadd.f32 1.0, %v7543_v16  ;;  %7544 = vrcp.f32 %v655_v17 }
 0x459   :  { %7546 = vrcp.f32 %v654_v18 }
 0x464   :  { %v7545_v19 = vpop.eup %7544 }
 0x465   :  { %v687_v21 = vsub.f32 1.0, %v7545_v19 }
 0x466   :  { %v7547_v20 = vpop.eup %7546 }
 0x467   :  { %v686_v22 = vsub.f32 1.0, %v7547_v20  ;;  %v691_v25 = vmul.f32 %v687_v21, %v530_v0  ;;  %v6640_v0 = vmul.f32 -1.442695, %v457_v62 }
 0x469   :  { %v690_v29 = vmul.f32 %v686_v22, %v529_v2  ;;  %7548 = vpow2.f32 %v6640_v0 }
 0x46a   :  { %7550 = vpow2.f32 %v6641_v1 }
 0x476   :  { %v7549_v8 = vpop.eup %7548 }
 0x477   :  { %v7551_v9 = vpop.eup %7550  ;;  %v479_v10 = vadd.f32 1.0, %v7549_v8 }
 0x478   :  { %v480_v11 = vadd.f32 1.0, %v7551_v9 }
 0x4b7   :  { %v673_v23 = vpop.permute.xlu1 %672 }
 0x4b8   :  { %v683_v24 = vmul.f32 %v7545_v19, %v673_v23 }
 0x4b9   :  { %v671_v26 = vpop.permute.xlu0 %670 }
 0x4ba   :  { %v682_v27 = vmul.f32 %v7547_v20, %v671_v26  ;;  %v695_v28 = vadd.f32 %v691_v25, %v683_v24 }
 0x4bb   :  { %v709_v30 = vpop.permute.xlu1 %708 }
 0x4bc   :  { %v719_v31 = vadd.f32 %v709_v30, %v695_v28  ;;  %v694_v34 = vadd.f32 %v690_v29, %v682_v27 }
 0x4bd   :  { %v707_v37 = vpop.permute.xlu0 %706 }
 0x4be   :  { %v718_v39 = vadd.f32 %v707_v37, %v694_v34  ;;  %751 = vrot.lane.b32.xlu1 %v719_v31, %s7826_s5 }
 0x4c0   :  { %749 = vrot.lane.b32.xlu0 %v718_v39, %s7826_s5 }
 0x530   :  { %v8093_v40 = vpop.permute.xlu1 %751 }
 0x531   :  { %v764_v41 = vsel %vm257_vm1, %v8093_v40, 0.0 }
 0x532   :  { %765 = vadd.xlane.f32.xlu1 %v764_v41  ;;  %v8097_v42 = vpop.permute.xlu0 %749 }
 0x533   :  { %v761_v43 = vsel %vm257_vm1, %v8097_v42, 0.0 }
 0x534   :  { %762 = vadd.xlane.f32.xlu0 %v761_v43  ;;  %v731_v43 = vld [vmem:[%s7915_s30 + $0x18] sm:$0xff] }
 0x535   :  { %7097 = vmatprep.subr.mxu1 %v731_v43 }
 0x536   :  { %7098 = vmatpush3.msra.mxu1 %v731_v43 }
 0x5bb   :  { %v766_v44 = vpop.xlane.xlu1 %765 }
 0x5bc   :  { %v775_v45 = vmul.f32 0.03125, %v766_v44 }
 0x5bd   :  { %v763_v46 = vpop.xlane.xlu0 %762 }
 0x5be   :  { %v779_v47 = vsub.f32 %v719_v31, %v775_v45  ;;  %v774_v48 = vmul.f32 0.03125, %v763_v46  ;;  %v730_v45 = vld [vmem:[%s7915_s30 + $0x10] sm:$0xff]  ;;  %v729_v46 = vld [vmem:[%s7915_s30 + $0x8] sm:$0xff] }
 0x5bf   :  { %7099 = vmatprep.subr.mxu1 %v730_v45 }
 0x5c0   :  { %v778_v49 = vsub.f32 %v718_v39, %v774_v48  ;;  %v783_v50 = vmul.f32 %v779_v47, %v779_v47  ;;  %7100 = vmatpush3.msra.mxu1 %v730_v45  ;;  %v728_v48 = vld [vmem:[%s7915_s30] sm:$0xff] }
 0x5c1   :  { %7101 = vmatprep.subr.mxu1 %v729_v46 }
 0x5c2   :  { %792 = vrot.lane.b32.xlu1 %v783_v50, %s7826_s5  ;;  %v782_v51 = vmul.f32 %v778_v49, %v778_v49  ;;  %7102 = vmatpush3.msra.mxu1 %v729_v46  ;;  %v8153_v50 = vsub.s32 3, %v8054_v35 }
 0x5c3   :  { %7103 = vmatprep.subr.mxu1 %v728_v48 }
 0x5c4   :  { %790 = vrot.lane.b32.xlu0 %v782_v51, %s7826_s5  ;;  %7104 = vmatpush3.msra.mxu1 %v728_v48  ;;  %v8156_v51 = vld [vmem:[%s7910_s24] sm:$0xff] }
 0x5c5   :  { %v8177_v59 = vrot.slane %v8156_v51, %v8153_v50 }
 0x634   :  { %v793_v52 = vpop.permute.xlu1 %792 }
 0x635   :  { %v805_v53 = vsel %vm257_vm1, %v793_v52, 0.0  ;;  %v8159_v52 = vsub.s32 4, %v8054_v35 }
 0x636   :  { %806 = vadd.xlane.f32.xlu1 %v805_v53  ;;  %v791_v54 = vpop.permute.xlu0 %790  ;;  %v8162_v53 = vsub.s32 5, %v8054_v35 }
 0x637   :  { %v802_v55 = vsel %vm257_vm1, %v791_v54, 0.0  ;;  %v8166_v54 = vrot.slane %v8156_v51, %v8078_v5 }
 0x638   :  { %803 = vadd.xlane.f32.xlu0 %v802_v55  ;;  %9639 = vst [vmem:[#allocation25_spill] sm:$0xff] %v8162_v53 }
 0x647   :  { %847 = vrot.lane.b32.xlu1 %v845_v57, %s7825_s0  ;;  %v8173_v57 = vsub.s32 6, %v8054_v35 }
 0x64b   :  { %517 = vrot.lane.b32.xlu1 %v8048_v33, %s7825_s0 }
 0x64e   :  { %835 = vrot.lane.b32.xlu0 %v833_v60, %s7825_s0  ;;  %v8181_v60 = vrot.slane %v8156_v51, %v8159_v52 }
 0x64f   :  { %519 = vrot.lane.b32.xlu1 %v8046_v32, %s7825_s0 }
 0x652   :  { %497 = vrot.lane.b32.xlu0 %v457_v62, %s7825_s0  ;;  %v8185_v62 = vrot.slane %v8156_v51, %v8057_v36 }
 0x656   :  { %499 = vrot.lane.b32.xlu0 %v462_v63, %s7825_s0  ;;  %v8189_v63 = vrot.slane %v8156_v51, %v8162_v53 }
 0x6bf   :  { %v807_v2 = vpop.xlane.xlu1 %806 }
 0x6c0   :  { %v815_v33 = vmul.f32 0.03125, %v807_v2 }
 0x6c1   :  { %v804_v3 = vpop.xlane.xlu0 %803 }
 0x6c2   :  { %v819_v4 = vadd.f32 1e-05, %v815_v33  ;;  %v814_v7 = vmul.f32 0.03125, %v804_v3  ;;  %v8196_v3 = vrot.slane %v8156_v51, %v8173_v57 }
 0x6c3   :  { %v8127_v13 = vpop.permute.xlu1 %847 }
 0x6c4   :  { %7552 = vrsqrt.f32 %v819_v4  ;;  %v818_v32 = vadd.f32 1e-05, %v814_v7 }
 0x6c5   :  { %v8125_v38 = vpop.permute.xlu0 %835 }
 0x6c6   :  { %7554 = vrsqrt.f32 %v818_v32 }
 0x6c7   :  { %7556 = vrcp.f32 %v479_v10  ;;  %v518_v21 = vpop.permute.xlu1 %517 }
 0x6c8   :  { %7558 = vrcp.f32 %v480_v11 }
 0x6c9   :  { %v498_v18 = vpop.permute.xlu0 %497 }
 0x6cb   :  { %v520_v34 = vpop.permute.xlu1 %519 }
 0x6cd   :  { %v500_v29 = vpop.permute.xlu0 %499 }
 0x6d1   :  { %v7553_v12 = vpop.eup %7552 }
 0x6d2   :  { %v827_v14 = vmul.f32 %v7553_v12, %v779_v47 }
 0x6d3   :  { %v7555_v15 = vpop.eup %7554 }
 0x6d4   :  { %v839_v16 = vmul.f32 %v8125_v38, %v827_v14  ;;  %v826_v17 = vmul.f32 %v7555_v15, %v778_v49  ;;  %v7557_v22 = vpop.eup %7556  ;;  %v8150_v49 = vsub.s32 2, %v8054_v35 }
 0x6d5   :  { %v7559_v26 = vpop.eup %7558  ;;  %v511_v27 = vsub.f32 1.0, %v7557_v22  ;;  %v507_v28 = vmul.f32 %v7557_v22, %v498_v18 }
 0x6d6   :  { %v838_v19 = vmul.f32 %v8125_v38, %v826_v17  ;;  %v851_v20 = vadd.f32 %v8127_v13, %v839_v16  ;;  %v512_v37 = vsub.f32 1.0, %v7559_v26  ;;  %v508_v39 = vmul.f32 %v7559_v26, %v500_v29 }
 0x6d7   :  { %v527_v31 = vmul.f32 %v518_v21, %v511_v27  ;;  %v8170_v55 = vrot.slane %v8156_v51, %v8150_v49 }
 0x6d8   :  { %v850_v23 = vadd.f32 %v8127_v13, %v838_v19  ;;  %v858_v25 = vrot.slane %v851_v20, 5  ;;  %v528_v44 = vmul.f32 %v520_v34, %v512_v37 }
 0x6d9   :  { %v8136_v41 = vadd.f32 %v527_v31, %v507_v28 }
 0x6da   :  { %v857_v24 = vrot.slane %v850_v23, 5  ;;  %v8144_v47 = vadd.f32 %v528_v44, %v508_v39 }
 0x6dc   :  { %860 = vrot.lane.b32.xlu0 %v857_v24, %s7826_s5  ;;  %v859_v30 = vsel %vm856_vm2, %v857_v24, %v858_v25 }
 0x6dd   :  { %862 = vrot.lane.b32.xlu1 %v859_v30, %s7826_s5 }
 0x6e0   :  { %864 = vrot.lane.b32.xlu0 %v858_v25, %s7826_s5 }
 0x6e1   :  { %545 = vrot.lane.b32.xlu1 %v8136_v41, %s7826_s5 }
 0x6e4   :  { %547 = vrot.lane.b32.xlu0 %v8144_v47, %s7826_s5 }
 0x74e   :  { %v861_v61 = vpop.permute.xlu0 %860 }
 0x74f   :  { %v869_v0 = vsel %vm856_vm2, 0.0, %v861_v61  ;;  %v863_v1 = vpop.permute.xlu1 %862 }
 0x750   :  { %v883_v2 = vmul.f32 %v8166_v54, %v869_v0  ;;  %v903_v33 = vmul.f32 %v8170_v55, %v869_v0  ;;  %v923_v4 = vmul.f32 %v8177_v59, %v869_v0  ;;  %v884_v7 = vmul.f32 %v8166_v54, %v863_v1 }
 0x751   :  { %v904_v8 = vmul.f32 %v8170_v55, %v863_v1  ;;  %v943_v9 = vmul.f32 %v8181_v60, %v869_v0  ;;  %v924_v10 = vmul.f32 %v8177_v59, %v863_v1  ;;  %v875_v12 = vmul.f32 %v8185_v62, %v869_v0 }
 0x752   :  { %v890_v32 = vrot.slane %v883_v2, 1  ;;  %v865_v11 = vpop.permute.xlu0 %864  ;;  %v910_v14 = vrot.slane %v903_v33, 2  ;;  %v963_v15 = vmul.f32 %v8189_v63, %v869_v0  ;;  %v944_v17 = vmul.f32 %v8181_v60, %v863_v1 }
 0x753   :  { %v546_v16 = vpop.permute.xlu1 %545  ;;  %v891_v18 = vrot.slane %v884_v7, 1  ;;  %v911_v19 = vrot.slane %v904_v8, 2  ;;  %v870_v20 = vsel %vm856_vm2, %v865_v11, 0.0  ;;  %v930_v21 = vrot.slane %v923_v4, 3 }
 0x754   :  { %7094 = vmatprep.mubr.msk.f32.mxu0 %vm257_vm1, %v546_v16  ;;  %v885_v22 = vmul.f32 %v8166_v54, %v870_v20  ;;  %v905_v23 = vmul.f32 %v8170_v55, %v870_v20  ;;  %v925_v24 = vmul.f32 %v8177_v59, %v870_v20  ;;  %v950_v25 = vrot.slane %v943_v9, 4 }
 0x755   :  { %v931_v26 = vrot.slane %v924_v10, 3  ;;  %v945_v27 = vmul.f32 %v8181_v60, %v870_v20  ;;  %v892_v29 = vsel %vm889_vm3, %v890_v32, %v891_v18  ;;  %v876_v30 = vmul.f32 %v8185_v62, %v863_v1 }
 0x756   :  { %v548_v28 = vpop.permute.xlu0 %547  ;;  %v893_v31 = vrot.slane %v885_v22, 1  ;;  %v913_v34 = vrot.slane %v905_v23, 2  ;;  %v897_v37 = vadd.f32 %v892_v29, %v875_v12  ;;  %v951_v39 = vrot.slane %v944_v17, 4 }
 0x757   :  { %7095 = vmatmul.mubr.msk.f32.gmra.mxu0 %vm257_vm1, %v548_v28  ;;  %v933_v43 = vrot.slane %v925_v24, 3  ;;  %v965_v44 = vmul.f32 %v8189_v63, %v870_v20  ;;  %v912_v45 = vsel %vm909_vm4, %v910_v14, %v911_v19  ;;  %v969_v46 = vrot.slane %v963_v15, 5 }
 0x758   :  { %v894_v48 = vsel %vm889_vm3, %v891_v18, %v893_v31  ;;  %v984_v61 = vmul.f32 %v8196_v3, %v870_v20  ;;  %v917_v2 = vadd.f32 %v912_v45, %v897_v37  ;;  %v914_v4 = vsel %vm909_vm4, %v911_v19, %v913_v34 }
 0x759   :  { %v898_v33 = vadd.f32 %v894_v48, %v876_v30  ;;  %v953_v7 = vrot.slane %v945_v27, 4  ;;  %v932_v8 = vsel %vm929_vm5, %v930_v21, %v931_v26  ;;  %v964_v9 = vmul.f32 %v8189_v63, %v863_v1 }
 0x75a   :  { %v937_v32 = vadd.f32 %v932_v8, %v917_v2  ;;  %v982_v10 = vmul.f32 %v8196_v3, %v869_v0  ;;  %v983_v11 = vmul.f32 %v8196_v3, %v863_v1  ;;  %v934_v14 = vsel %vm929_vm5, %v931_v26, %v933_v43  ;;  %v8238_v43 = vld [vmem:[%s7920_s6] sm:$0xf] }
 0x75b   :  { %v918_v12 = vadd.f32 %v914_v4, %v898_v33  ;;  %v972_v15 = vrot.slane %v965_v44, 5  ;;  %v952_v16 = vsel %vm949_vm6, %v950_v25, %v951_v39  ;;  %v970_v18 = vrot.slane %v964_v9, 5  ;;  %v701_v9 = vld [vmem:[%s7870_s17 + $0x18] sm:$0xff] }
 0x75c   :  { %v957_v17 = vadd.f32 %v952_v16, %v937_v32  ;;  %v989_v20 = vrot.slane %v982_v10, 6  ;;  %v990_v19 = vrot.slane %v983_v11, 6  ;;  %v954_v21 = vsel %vm949_vm6, %v951_v39, %v953_v7  ;;  %v700_v32 = vld [vmem:[%s7870_s17 + $0x10] sm:$0xff]  ;;  %s9645_s17 = sld [smem:[#allocation12_spill]] }
 0x75d   :  { %v938_v22 = vadd.f32 %v934_v14, %v918_v12  ;;  %v992_v23 = vrot.slane %v984_v61, 6  ;;  %v971_v24 = vsel %vm856_vm2, %v969_v46, %v970_v18  ;;  %v973_v27 = vsel %vm856_vm2, %v970_v18, %v972_v15 }
 0x75e   :  { %v976_v1 = vadd.f32 %v971_v24, %v957_v17  ;;  %v991_v26 = vsel %vm988_vm7, %v989_v20, %v990_v19  ;;  %v8242_v44 = vrot.slane %v8238_v43, %v8057_v36 }
 0x75f   :  { %v958_v0 = vadd.f32 %v954_v21, %v938_v22  ;;  %v993_v29 = vsel %vm988_vm7, %v990_v19, %v992_v23 }
 0x760   :  { %v996_v28 = vadd.f32 %v991_v26, %v976_v1 }
 0x761   :  { %v977_v25 = vadd.f32 %v973_v27, %v958_v0 }
 0x762   :  { %7105 = vmatprep.mubr.msk.f32.mxu1 %vm257_vm1, %v996_v28 }
 0x763   :  { %v997_v30 = vadd.f32 %v993_v29, %v977_v25 }
 0x765   :  { %7106 = vmatmul.mubr.msk.f32.vlgmr.msra.gmra.mxu1 %vm257_vm1, %v997_v30 }
 0x817   :  { %v7096_v31 = vpop.f32.mrf.mxu0 }
 0x818   :  { %v639_v34 = vadd.f32 %v7096_v31, %v8081_v6 }
 0x819   :  { %v633_v37 = vpop.f32.mrf.mxu0 }
 0x81a   :  { %v634_v39 = vadd.f32 %v633_v37, %v8081_v6  ;;  %676 = vrot.lane.b32.xlu0 %v639_v34, %s7825_s0  ;;  %v6649_v10 = vmul.f32 -1.442695, %v639_v34 }
 0x81c   :  { %674 = vrot.lane.b32.xlu1 %v634_v39, %s7825_s0 }
 0x825   :  { %v7107_v45 = vpop.f32.mrf.mxu1 }
 0x826   :  { %v1196_v46 = vadd.f32 %v7107_v45, %v8242_v44 }
 0x827   :  { %v1190_v61 = vpop.f32.mrf.mxu1 }
 0x828   :  { %v1210_v48 = vmax.f32 %v1196_v46, 0.0  ;;  %v1191_v2 = vadd.f32 %v1190_v61, %v8242_v44  ;;  %v734_v61 = vld [vmem:[%s7915_s30 + $0x30] sm:$0xff] }
 0x82a   :  { %v8247_v6 = vadd.f32 %v1210_v48, %v8093_v40  ;;  %v1209_v33 = vmax.f32 %v1191_v2, 0.0  ;;  %v6648_v40 = vmul.f32 -1.442695, %v634_v39  ;;  %v735_v48 = vld [vmem:[%s7915_s30 + $0x38] sm:$0xff]  ;;  %v733_v2 = vld [vmem:[%s7915_s30 + $0x28] sm:$0xff] }
 0x82b   :  { %7111 = vmatprep.subr.mxu0 %v735_v48 }
 0x82c   :  { %v1220_v4 = vsel %vm257_vm1, %v8247_v6, 0.0  ;;  %v8252_v7 = vadd.f32 %v1209_v33, %v8097_v42  ;;  %7560 = vpow2.f32 %v6648_v40  ;;  %7112 = vmatpush3.msra.mxu0 %v735_v48  ;;  %v732_v33 = vld [vmem:[%s7915_s30 + $0x20] sm:$0xff] }
 0x82d   :  { %7562 = vpow2.f32 %v6649_v10  ;;  %7113 = vmatprep.subr.mxu0 %v734_v61 }
 0x82e   :  { %v1217_v8 = vsel %vm257_vm1, %v8252_v7, 0.0  ;;  %7114 = vmatpush3.msra.mxu0 %v734_v61 }
 0x82f   :  { %7115 = vmatprep.subr.mxu0 %v733_v2 }
 0x830   :  { %7116 = vmatpush3.msra.mxu0 %v733_v2 }
 0x831   :  { %7117 = vmatprep.subr.mxu0 %v732_v33 }
 0x832   :  { %7118 = vmatpush3.msra.mxu0 %v732_v33 }
 0x839   :  { %1221 = vadd.xlane.f32.xlu0 %v1220_v4  ;;  %v7561_v11 = vpop.eup %7560 }
 0x83a   :  { %v656_v12 = vadd.f32 1.0, %v7561_v11  ;;  %v7563_v14 = vpop.eup %7562 }
 0x83b   :  { %v657_v42 = vadd.f32 1.0, %v7563_v14 }
 0x83c   :  { %7564 = vrcp.f32 %v656_v12 }
 0x83d   :  { %7566 = vrcp.f32 %v657_v42 }
 0x840   :  { %1218 = vadd.xlane.f32.xlu1 %v1217_v8 }
 0x849   :  { %v7565_v15 = vpop.eup %7564 }
 0x84a   :  { %v688_v18 = vsub.f32 1.0, %v7565_v15  ;;  %v7567_v22 = vpop.eup %7566 }
 0x84b   :  { %v689_v0 = vsub.f32 1.0, %v7567_v22 }
 0x84c   :  { %v692_v21 = vmul.f32 %v688_v18, %v8136_v41 }
 0x84d   :  { %v693_v28 = vmul.f32 %v689_v0, %v8144_v47 }
 0x84f   :  { %710 = vrot.lane.b32.xlu0 %v700_v32, %s7825_s0 }
 0x851   :  { %712 = vrot.lane.b32.xlu1 %v701_v9, %s7825_s0 }
 0x88c   :  { %v677_v16 = vpop.permute.xlu0 %676 }
 0x88d   :  { %v685_v27 = vmul.f32 %v7567_v22, %v677_v16  ;;  %v8296_v22 = vld [vmem:[%s7910_s24 + $0x8] sm:$0xff] }
 0x88e   :  { %v675_v17 = vpop.permute.xlu1 %674  ;;  %v8302_v0 = vrot.slane %v8296_v22, %v8057_v36  ;;  %v8329_v48 = vrot.slane %v8296_v22, %v8153_v50 }
 0x88f   :  { %v684_v20 = vmul.f32 %v7565_v15, %v675_v17  ;;  %v697_v25 = vadd.f32 %v693_v28, %v685_v27  ;;  %v8288_v15 = vrot.slane %v8112_v58, %v8078_v5  ;;  %v8292_v17 = vrot.slane %v8106_v56, %v8078_v5 }
 0x890   :  { %v8306_v28 = vsub.s32 7, %v8054_v35 }
 0x891   :  { %v696_v23 = vadd.f32 %v692_v21, %v684_v20 }
 0x892   :  { %v8322_v35 = vrot.slane %v8156_v51, %v8306_v28 }
 0x8c2   :  { %v1222_v19 = vpop.xlane.xlu0 %1221 }
 0x8c3   :  { %v1230_v31 = vmul.f32 0.03125, %v1222_v19 }
 0x8c5   :  { %v1234_v37 = vsub.f32 %v8247_v6, %v1230_v31  ;;  %v8315_v31 = vrot.slane %v8296_v22, %v8150_v49 }
 0x8c6   :  { %v711_v24 = vpop.permute.xlu0 %710 }
 0x8c7   :  { %v8261_v1 = vadd.f32 %v711_v24, %v696_v23  ;;  %v1238_v45 = vmul.f32 %v1234_v37, %v1234_v37  ;;  %9641 = vst [vmem:[#allocation27_spill] sm:$0xff] %v8315_v31 }
 0x8c9   :  { %v1219_v26 = vpop.xlane.xlu1 %1218  ;;  %753 = vrot.lane.b32.xlu1 %v8261_v1, %s7826_s5  ;;  %v1244_v46 = vsel %vm257_vm1, %v1238_v45, 0.0 }
 0x8ca   :  { %v1229_v41 = vmul.f32 0.03125, %v1219_v26 }
 0x8cc   :  { %v1233_v34 = vsub.f32 %v8252_v7, %v1229_v41 }
 0x8cd   :  { %v713_v29 = vpop.permute.xlu1 %712 }
 0x8ce   :  { %v8266_v30 = vadd.f32 %v713_v29, %v697_v25  ;;  %v1237_v39 = vmul.f32 %v1233_v34, %v1233_v34  ;;  %v8310_v25 = vrot.slane %v8296_v22, %v8078_v5 }
 0x8d0   :  { %755 = vrot.lane.b32.xlu0 %v8266_v30, %s7826_s5  ;;  %v1241_v47 = vsel %vm257_vm1, %v1237_v39, 0.0  ;;  %9640 = vst [vmem:[#allocation26_spill] sm:$0xff] %v8310_v25 }
 0x8ed   :  { %1242 = vadd.xlane.f32.xlu1 %v1241_v47 }
 0x8ef   :  { %1245 = vadd.xlane.f32.xlu0 %v1244_v46 }
 0x93b   :  { %v8278_v4 = vpop.permute.xlu1 %753 }
 0x93c   :  { %v767_v8 = vsel %vm257_vm1, %v8278_v4, 0.0 }
 0x93d   :  { %768 = vadd.xlane.f32.xlu0 %v767_v8 }
 0x942   :  { %v8282_v32 = vpop.permute.xlu0 %755 }
 0x943   :  { %v770_v9 = vsel %vm257_vm1, %v8282_v32, 0.0 }
 0x944   :  { %771 = vadd.xlane.f32.xlu1 %v770_v9 }
 0x976   :  { %v1243_v40 = vpop.xlane.xlu1 %1242 }
 0x977   :  { %v1253_v10 = vmul.f32 0.03125, %v1243_v40  ;;  %v8336_v40 = vrot.slane %v8296_v22, %v8159_v52 }
 0x978   :  { %v1246_v11 = vpop.xlane.xlu0 %1245 }
 0x979   :  { %v1257_v12 = vadd.f32 1e-05, %v1253_v10  ;;  %v1254_v14 = vmul.f32 0.03125, %v1246_v11 }
 0x97b   :  { %7568 = vrsqrt.f32 %v1257_v12  ;;  %v1258_v42 = vadd.f32 1e-05, %v1254_v14 }
 0x97d   :  { %7570 = vrsqrt.f32 %v1258_v42 }
 0x988   :  { %v7569_v16 = vpop.eup %7568 }
 0x989   :  { %v1265_v18 = vmul.f32 %v7569_v16, %v1233_v34 }
 0x98a   :  { %v7571_v20 = vpop.eup %7570 }
 0x98b   :  { %v1273_v19 = vmul.f32 %v8288_v15, %v1265_v18  ;;  %v1266_v21 = vmul.f32 %v7571_v20, %v1234_v37  ;;  %v8344_v18 = vrot.slane %v8296_v22, %v8162_v53 }
 0x98d   :  { %v1281_v23 = vadd.f32 %v8292_v17, %v1273_v19  ;;  %v1274_v24 = vmul.f32 %v8288_v15, %v1266_v21 }
 0x98f   :  { %v1287_v27 = vrot.slane %v1281_v23, 5  ;;  %v1282_v26 = vadd.f32 %v8292_v17, %v1274_v24 }
 0x991   :  { %v1293_v29 = vsel %vm856_vm2, 0.0, %v1287_v27  ;;  %v1288_v41 = vrot.slane %v1282_v26, 5 }
 0x992   :  { %v1307_v34 = vmul.f32 %v8302_v0, %v1293_v29  ;;  %v1326_v47 = vmul.f32 %v8310_v25, %v1293_v29  ;;  %v1345_v2 = vmul.f32 %v8315_v31, %v1293_v29  ;;  %v1299_v10 = vmul.f32 %v8322_v35, %v1293_v29 }
 0x993   :  { %v1294_v37 = vsel %vm856_vm2, %v1288_v41, 0.0  ;;  %v1289_v39 = vsel %vm856_vm2, %v1287_v27, %v1288_v41  ;;  %v1364_v16 = vmul.f32 %v8329_v48, %v1293_v29  ;;  %v1383_v26 = vmul.f32 %v8336_v40, %v1293_v29 }
 0x994   :  { %v1308_v45 = vmul.f32 %v8302_v0, %v1289_v39  ;;  %v1327_v46 = vmul.f32 %v8310_v25, %v1289_v39  ;;  %v1309_v61 = vmul.f32 %v8302_v0, %v1294_v37  ;;  %v1346_v33 = vmul.f32 %v8315_v31, %v1289_v39 }
 0x995   :  { %v1313_v8 = vrot.slane %v1307_v34, 1  ;;  %v1365_v12 = vmul.f32 %v8329_v48, %v1289_v39  ;;  %v1332_v42 = vrot.slane %v1326_v47, 2  ;;  %v1328_v21 = vmul.f32 %v8310_v25, %v1294_v37 }
 0x996   :  { %v1314_v9 = vrot.slane %v1308_v45, 1  ;;  %v1333_v51 = vrot.slane %v1327_v46, 2  ;;  %v1352_v11 = vrot.slane %v1346_v33, 3  ;;  %v1316_v20 = vrot.slane %v1309_v61, 1 }
 0x997   :  { %v1351_v23 = vrot.slane %v1345_v2, 3  ;;  %v1371_v27 = vrot.slane %v1365_v12, 4  ;;  %v1384_v41 = vmul.f32 %v8336_v40, %v1289_v39  ;;  %v1347_v45 = vmul.f32 %v8315_v31, %v1294_v37 }
 0x998   :  { %v1315_v14 = vsel %vm889_vm3, %v1313_v8, %v1314_v9  ;;  %v1334_v24 = vsel %vm909_vm4, %v1332_v42, %v1333_v51  ;;  %v1370_v46 = vrot.slane %v1364_v16, 4  ;;  %v1402_v61 = vmul.f32 %v8344_v18, %v1293_v29 }
 0x999   :  { %v1320_v19 = vadd.f32 %v1315_v14, %v1299_v10  ;;  %v1353_v47 = vsel %vm929_vm5, %v1351_v23, %v1352_v11  ;;  %v1390_v33 = vrot.slane %v1384_v41, 5  ;;  %v1403_v8 = vmul.f32 %v8344_v18, %v1289_v39 }
 0x99a   :  { %v1317_v2 = vsel %vm889_vm3, %v1314_v9, %v1316_v20  ;;  %v1335_v10 = vrot.slane %v1328_v21, 2  ;;  %v1366_v12 = vmul.f32 %v8329_v48, %v1294_v37  ;;  %v1372_v42 = vsel %vm949_vm6, %v1370_v46, %v1371_v27 }
 0x99b   :  { %v1339_v34 = vadd.f32 %v1334_v24, %v1320_v19  ;;  %v1389_v53 = vrot.slane %v1383_v26, 5  ;;  %v1409_v19 = vrot.slane %v1403_v8, 6  ;;  %v1300_v24 = vmul.f32 %v8322_v35, %v1289_v39 }
 0x99c   :  { %v1354_v31 = vrot.slane %v1347_v45, 3  ;;  %v1385_v16 = vmul.f32 %v8336_v40, %v1294_v37  ;;  %v1408_v41 = vrot.slane %v1402_v61, 6  ;;  %v1336_v9 = vsel %vm909_vm4, %v1333_v51, %v1335_v10 }
 0x99d   :  { %v1358_v14 = vadd.f32 %v1353_v47, %v1339_v34  ;;  %v1391_v29 = vsel %vm856_vm2, %v1389_v53, %v1390_v33  ;;  %v1321_v25 = vadd.f32 %v1317_v2, %v1300_v24  ;;  %v1373_v20 = vrot.slane %v1366_v12, 4 }
 0x99e   :  { %v1404_v34 = vmul.f32 %v8344_v18, %v1294_v37  ;;  %v1410_v47 = vsel %vm988_vm7, %v1408_v41, %v1409_v19  ;;  %v1355_v46 = vsel %vm929_vm5, %v1352_v11, %v1354_v31  ;;  %v1392_v39 = vrot.slane %v1385_v16, 5 }
 0x99f   :  { %v1377_v23 = vadd.f32 %v1372_v42, %v1358_v14  ;;  %v1340_v26 = vadd.f32 %v1336_v9, %v1321_v25  ;;  %v1374_v14 = vsel %vm949_vm6, %v1371_v27, %v1373_v20 }
 0x9a0   :  { %v1411_v42 = vrot.slane %v1404_v34, 6  ;;  %v1393_v51 = vsel %vm856_vm2, %v1390_v33, %v1392_v39 }
 0x9a1   :  { %v1396_v21 = vadd.f32 %v1391_v29, %v1377_v23  ;;  %v1359_v8 = vadd.f32 %v1355_v46, %v1340_v26 }
 0x9a2   :  { %v1412_v2 = vsel %vm988_vm7, %v1409_v19, %v1411_v42 }
 0x9a3   :  { %v1415_v45 = vadd.f32 %v1410_v47, %v1396_v21  ;;  %v1378_v53 = vadd.f32 %v1374_v14, %v1359_v8 }
 0x9a5   :  { %7119 = vmatprep.mubr.msk.f32.mxu0 %vm257_vm1, %v1415_v45  ;;  %v1397_v61 = vadd.f32 %v1393_v51, %v1378_v53 }
 0x9a7   :  { %v1416_v37 = vadd.f32 %v1412_v2, %v1397_v61 }
 0x9a9   :  { %7120 = vmatmul.mubr.msk.f32.vlgmr.msra.gmra.mxu0 %vm257_vm1, %v1416_v37  ;;  %v8385_v37 = vrot.slane %v8238_v43, %v8078_v5 }
 0x9c6   :  { %v769_v25 = vpop.xlane.xlu0 %768 }
 0x9c7   :  { %v776_v10 = vmul.f32 0.03125, %v769_v25 }
 0x9c9   :  { %v780_v31 = vsub.f32 %v8261_v1, %v776_v10 }
 0x9cb   :  { %v784_v11 = vmul.f32 %v780_v31, %v780_v31 }
 0x9cd   :  { %794 = vrot.lane.b32.xlu0 %v784_v11, %s7826_s5  ;;  %v772_v27 = vpop.xlane.xlu1 %771 }
 0x9ce   :  { %v777_v12 = vmul.f32 0.03125, %v772_v27 }
 0x9d0   :  { %v781_v24 = vsub.f32 %v8266_v30, %v777_v12 }
 0x9d2   :  { %v785_v23 = vmul.f32 %v781_v24, %v781_v24 }
 0x9d4   :  { %796 = vrot.lane.b32.xlu1 %v785_v23, %s7826_s5 }
 0xa3f   :  { %v795_v33 = vpop.permute.xlu0 %794 }
 0xa40   :  { %v808_v19 = vsel %vm257_vm1, %v795_v33, 0.0 }
 0xa41   :  { %809 = vadd.xlane.f32.xlu1 %v808_v19 }
 0xa46   :  { %v797_v16 = vpop.permute.xlu1 %796 }
 0xa47   :  { %v811_v29 = vsel %vm257_vm1, %v797_v16, 0.0 }
 0xa48   :  { %812 = vadd.xlane.f32.xlu0 %v811_v29 }
 0xa69   :  { %v7121_v61 = vpop.f32.mrf.mxu0 }
 0xa6b   :  { %v1603_v2 = vpop.f32.mrf.mxu0 }
 0xa6c   :  { %v1604_v25 = vadd.f32 %v1603_v2, %v8385_v37 }
 0xa6e   :  { %v1622_v10 = vmax.f32 %v1604_v25, 0.0 }
 0xaca   :  { %v810_v41 = vpop.xlane.xlu1 %809 }
 0xacb   :  { %v816_v1 = vmul.f32 0.03125, %v810_v41 }
 0xacd   :  { %v820_v9 = vadd.f32 1e-05, %v816_v1 }
 0xacf   :  { %7572 = vrsqrt.f32 %v820_v9 }
 0xad1   :  { %v813_v20 = vpop.xlane.xlu0 %812 }
 0xad2   :  { %v817_v21 = vmul.f32 0.03125, %v813_v20 }
 0xad4   :  { %v821_v34 = vadd.f32 1e-05, %v817_v21 }
 0xad6   :  { %7574 = vrsqrt.f32 %v821_v34 }
 0xadc   :  { %v7573_v30 = vpop.eup %7572 }
 0xadd   :  { %v828_v47 = vmul.f32 %v7573_v30, %v780_v31  ;;  %v1609_v31 = vadd.f32 %v7121_v61, %v8385_v37 }
 0xadf   :  { %v840_v26 = vmul.f32 %v8125_v38, %v828_v47  ;;  %v1623_v11 = vmax.f32 %v1609_v31, 0.0 }
 0xae1   :  { %v852_v46 = vadd.f32 %v8127_v13, %v840_v26  ;;  %v8395_v27 = vadd.f32 %v1623_v11, %v8247_v6 }
 0xae3   :  { %v7575_v39 = vpop.eup %7574  ;;  %v1000_v45 = vrot.slane %v852_v46, 5  ;;  %v1633_v12 = vsel %vm257_vm1, %v8395_v27, 0.0 }
 0xae4   :  { %v829_v8 = vmul.f32 %v7575_v39, %v781_v24 }
 0xae5   :  { %1003 = vrot.lane.b32.xlu0 %v1000_v45, %s7826_s5 }
 0xae6   :  { %v841_v14 = vmul.f32 %v8125_v38, %v829_v8  ;;  %v8389_v38 = vadd.f32 %v1622_v10, %v8252_v7 }
 0xae8   :  { %v853_v42 = vadd.f32 %v8127_v13, %v841_v14  ;;  %v1630_v13 = vsel %vm257_vm1, %v8389_v38, 0.0 }
 0xaea   :  { %v1001_v53 = vrot.slane %v853_v42, 5 }
 0xaec   :  { %v1002_v51 = vsel %vm856_vm2, %v1000_v45, %v1001_v53 }
 0xaed   :  { %1005 = vrot.lane.b32.xlu1 %v1002_v51, %s7826_s5 }
 0xaf1   :  { %1007 = vrot.lane.b32.xlu1 %v1001_v53, %s7826_s5 }
 0xb04   :  { %1631 = vadd.xlane.f32.xlu0 %v1630_v13 }
 0xb15   :  { %1634 = vadd.xlane.f32.xlu1 %v1633_v12 }
 0xb57   :  { %v1004_v24 = vpop.permute.xlu0 %1003 }
 0xb58   :  { %v1012_v23 = vsel %vm856_vm2, 0.0, %v1004_v24 }
 0xb59   :  { %v1018_v7 = vmul.f32 %v1012_v23, %v8166_v54  ;;  %v1033_v19 = vmul.f32 %v1012_v23, %v8170_v55  ;;  %v1014_v41 = vmul.f32 %v1012_v23, %v8185_v62  ;;  %v1048_v9 = vmul.f32 %v1012_v23, %v8177_v59 }
 0xb5a   :  { %v1063_v34 = vmul.f32 %v1012_v23, %v8181_v60  ;;  %v1078_v30 = vmul.f32 %v1012_v23, %v8189_v63  ;;  %v1093_v46 = vmul.f32 %v1012_v23, %v8196_v3 }
 0xb5b   :  { %v1024_v1 = vrot.slane %v1018_v7, 1  ;;  %v1039_v39 = vrot.slane %v1033_v19, 2  ;;  %v1054_v2 = vrot.slane %v1048_v9, 3 }
 0xb5c   :  { %v1069_v23 = vrot.slane %v1063_v34, 4 }
 0xb5f   :  { %v1006_v33 = vpop.permute.xlu1 %1005 }
 0xb60   :  { %v1019_v16 = vmul.f32 %v1006_v33, %v8166_v54  ;;  %v1034_v29 = vmul.f32 %v1006_v33, %v8170_v55  ;;  %v1049_v6 = vmul.f32 %v1006_v33, %v8177_v59  ;;  %v1064_v21 = vmul.f32 %v1006_v33, %v8181_v60 }
 0xb61   :  { %v1079_v14 = vmul.f32 %v1006_v33, %v8189_v63  ;;  %v1094_v13 = vmul.f32 %v1006_v33, %v8196_v3  ;;  %v1015_v7 = vmul.f32 %v1006_v33, %v8185_v62 }
 0xb62   :  { %v1025_v20 = vrot.slane %v1019_v16, 1  ;;  %v1040_v47 = vrot.slane %v1034_v29, 2  ;;  %v1055_v61 = vrot.slane %v1049_v6, 3  ;;  %v1070_v10 = vrot.slane %v1064_v21, 4 }
 0xb63   :  { %v1008_v26 = vpop.permute.xlu1 %1007  ;;  %v1085_v19 = vrot.slane %v1079_v14, 5  ;;  %v1100_v9 = vrot.slane %v1094_v13, 6 }
 0xb64   :  { %v1013_v45 = vsel %vm856_vm2, %v1008_v26, 0.0  ;;  %v1026_v8 = vsel %vm889_vm3, %v1024_v1, %v1025_v20  ;;  %v1041_v24 = vsel %vm909_vm4, %v1039_v39, %v1040_v47  ;;  %v1056_v29 = vsel %vm929_vm5, %v1054_v2, %v1055_v61 }
 0xb65   :  { %v1020_v42 = vmul.f32 %v1013_v45, %v8166_v54  ;;  %v1035_v53 = vmul.f32 %v1013_v45, %v8170_v55  ;;  %v1050_v51 = vmul.f32 %v1013_v45, %v8177_v59  ;;  %v1031_v25 = vadd.f32 %v1026_v8, %v1014_v41 }
 0xb66   :  { %v1065_v12 = vmul.f32 %v1013_v45, %v8181_v60  ;;  %v1080_v16 = vmul.f32 %v1013_v45, %v8189_v63  ;;  %v1084_v41 = vrot.slane %v1078_v30, 5  ;;  %v1095_v34 = vmul.f32 %v1013_v45, %v8196_v3 }
 0xb67   :  { %v1027_v31 = vrot.slane %v1020_v42, 1  ;;  %v1042_v11 = vrot.slane %v1035_v53, 2  ;;  %v1046_v54 = vadd.f32 %v1041_v24, %v1031_v25  ;;  %v1057_v59 = vrot.slane %v1050_v51, 3 }
 0xb68   :  { %v1072_v21 = vrot.slane %v1065_v12, 4  ;;  %v1071_v62 = vsel %vm949_vm6, %v1069_v23, %v1070_v10  ;;  %v1087_v39 = vrot.slane %v1080_v16, 5  ;;  %v1099_v8 = vrot.slane %v1093_v46, 6  ;;  %v736_v16 = vld [vmem:[%s7915_s30 + $0x40] sm:$0xff] }
 0xb69   :  { %v1028_v55 = vsel %vm889_vm3, %v1025_v20, %v1027_v31  ;;  %v1061_v1 = vadd.f32 %v1056_v29, %v1046_v54  ;;  %v1043_v60 = vsel %vm909_vm4, %v1040_v47, %v1042_v11  ;;  %v1086_v20 = vsel %vm856_vm2, %v1084_v41, %v1085_v19 }
 0xb6a   :  { %v1032_v6 = vadd.f32 %v1028_v55, %v1015_v7  ;;  %v1058_v63 = vsel %vm929_vm5, %v1055_v61, %v1057_v59  ;;  %v1102_v42 = vrot.slane %v1095_v34, 6  ;;  %v1101_v53 = vsel %vm988_vm7, %v1099_v8, %v1100_v9  ;;  %v738_v55 = vld [vmem:[%s7915_s30 + $0x50] sm:$0xff]  ;;  %v737_v59 = vld [vmem:[%s7915_s30 + $0x48] sm:$0xff] }
 0xb6b   :  { %v1076_v33 = vadd.f32 %v1071_v62, %v1061_v1  ;;  %v1073_v47 = vsel %vm949_vm6, %v1070_v10, %v1072_v21  ;;  %v1088_v3 = vsel %vm856_vm2, %v1085_v19, %v1087_v39  ;;  %v739_v19 = vld [vmem:[%s7915_s30 + $0x58] sm:$0xff]  ;;  %v8445_v34 = vrot.slane %v8112_v58, %v8150_v49 }
 0xb6c   :  { %v1047_v26 = vadd.f32 %v1043_v60, %v1032_v6  ;;  %v1103_v25 = vsel %vm988_vm7, %v1100_v9, %v1102_v42  ;;  %7125 = vmatprep.subr.mxu1 %v739_v19 }
 0xb6d   :  { %v1091_v14 = vadd.f32 %v1086_v20, %v1076_v33  ;;  %7126 = vmatpush3.msra.mxu1 %v739_v19 }
 0xb6e   :  { %v1062_v30 = vadd.f32 %v1058_v63, %v1047_v26  ;;  %7127 = vmatprep.subr.mxu1 %v738_v55  ;;  %v8451_v63 = vrot.slane %v8106_v56, %v8150_v49 }
 0xb6f   :  { %v1106_v51 = vadd.f32 %v1101_v53, %v1091_v14  ;;  %7128 = vmatpush3.msra.mxu1 %v738_v55 }
 0xb70   :  { %v1077_v2 = vadd.f32 %v1073_v47, %v1062_v30  ;;  %7129 = vmatprep.subr.mxu1 %v737_v59 }
 0xb71   :  { %7108 = vmatprep.mubr.msk.f32.mxu1 %vm257_vm1, %v1106_v51  ;;  %7130 = vmatpush3.msra.mxu1 %v737_v59 }
 0xb72   :  { %v1092_v45 = vadd.f32 %v1088_v3, %v1077_v2  ;;  %7131 = vmatprep.subr.mxu1 %v736_v16  ;;  %v8466_v3 = vld [vmem:[%s7910_s24 + $0x10] sm:$0xff] }
 0xb73   :  { %7132 = vmatpush3.msra.mxu1 %v736_v16 }
 0xb74   :  { %v1107_v46 = vadd.f32 %v1103_v25, %v1092_v45 }
 0xb76   :  { %7109 = vmatmul.mubr.msk.f32.gmra.mxu1 %vm257_vm1, %v1107_v46  ;;  %v8477_v46 = vrot.slane %v8466_v3, %v8057_v36 }
 0xb8d   :  { %v1632_v61 = vpop.xlane.xlu0 %1631 }
 0xb8e   :  { %v1642_v13 = vmul.f32 0.03125, %v1632_v61  ;;  %v8481_v61 = vrot.slane %v8466_v3, %v8078_v5 }
 0xb90   :  { %v1646_v31 = vsub.f32 %v8389_v38, %v1642_v13 }
 0xb92   :  { %v1650_v10 = vmul.f32 %v1646_v31, %v1646_v31 }
 0xb94   :  { %v1654_v11 = vsel %vm257_vm1, %v1650_v10, 0.0 }
 0xb95   :  { %1655 = vadd.xlane.f32.xlu0 %v1654_v11  ;;  %v8490_v11 = vrot.slane %v8466_v3, %v8150_v49 }
 0xb9e   :  { %v1635_v12 = vpop.xlane.xlu1 %1634 }
 0xb9f   :  { %v1643_v24 = vmul.f32 0.03125, %v1635_v12 }
 0xba1   :  { %v1647_v23 = vsub.f32 %v8395_v27, %v1643_v24 }
 0xba3   :  { %v1651_v7 = vmul.f32 %v1647_v23, %v1647_v23 }
 0xba5   :  { %v1657_v54 = vsel %vm257_vm1, %v1651_v7, 0.0  ;;  %v8497_v7 = vrot.slane %v8466_v3, %v8153_v50 }
 0xba6   :  { %1658 = vadd.xlane.f32.xlu0 %v1657_v54 }
 0xc1e   :  { %v1656_v29 = vpop.xlane.xlu0 %1655 }
 0xc1f   :  { %v1666_v41 = vmul.f32 0.03125, %v1656_v29 }
 0xc21   :  { %v1670_v6 = vadd.f32 1e-05, %v1666_v41  ;;  %v8508_v41 = vrot.slane %v8466_v3, %v8159_v52 }
 0xc23   :  { %7576 = vrsqrt.f32 %v1670_v6 }
 0xc2f   :  { %v1659_v1 = vpop.xlane.xlu0 %1658 }
 0xc30   :  { %v1667_v9 = vmul.f32 0.03125, %v1659_v1  ;;  %v7577_v21 = vpop.eup %7576 }
 0xc31   :  { %v1678_v62 = vmul.f32 %v7577_v21, %v1646_v31  ;;  %v8485_v31 = vrot.slane %v8296_v22, %v8173_v57 }
 0xc32   :  { %v1671_v60 = vadd.f32 1e-05, %v1667_v9 }
 0xc33   :  { %v1686_v14 = vmul.f32 %v8445_v34, %v1678_v62 }
 0xc34   :  { %7578 = vrsqrt.f32 %v1671_v60 }
 0xc35   :  { %v1694_v47 = vadd.f32 %v8451_v63, %v1686_v14 }
 0xc36   :  { %v7110_v33 = vpop.f32.mrf.mxu1 }
 0xc37   :  { %v1206_v26 = vadd.f32 %v7110_v33, %v8242_v44  ;;  %v1700_v51 = vrot.slane %v1694_v47, 5 }
 0xc38   :  { %v1200_v39 = vpop.f32.mrf.mxu1 }
 0xc39   :  { %v1212_v20 = vmax.f32 %v1206_v26, 0.0  ;;  %v1201_v8 = vadd.f32 %v1200_v39, %v8242_v44  ;;  %v1706_v45 = vsel %vm856_vm2, 0.0, %v1700_v51 }
 0xc3a   :  { %v1758_v55 = vmul.f32 %v8481_v61, %v1706_v45  ;;  %v1712_v21 = vmul.f32 %v8485_v31, %v1706_v45  ;;  %v1777_v33 = vmul.f32 %v8490_v11, %v1706_v45  ;;  %v1796_v26 = vmul.f32 %v8497_v7, %v1706_v45 }
 0xc3b   :  { %v8455_v30 = vadd.f32 %v1212_v20, %v8282_v32  ;;  %v1211_v58 = vmax.f32 %v1201_v8, 0.0 }
 0xc3c   :  { %v1764_v8 = vrot.slane %v1758_v55, 3 }
 0xc3d   :  { %v8458_v42 = vadd.f32 %v1211_v58, %v8278_v4  ;;  %v1226_v53 = vsel %vm257_vm1, %v8455_v30, 0.0  ;;  %v8471_v4 = vrot.slane %v8296_v22, %v8306_v28 }
 0xc3e   :  { %1227 = vadd.xlane.f32.xlu0 %v1226_v53 }
 0xc3f   :  { %v1223_v44 = vsel %vm257_vm1, %v8458_v42, 0.0  ;;  %v1720_v10 = vmul.f32 %v8471_v4, %v1706_v45 }
 0xc40   :  { %1224 = vadd.xlane.f32.xlu1 %v1223_v44 }
 0xc41   :  { %v7579_v56 = vpop.eup %7578  ;;  %v1726_v6 = vrot.slane %v1720_v10, 1 }
 0xc42   :  { %v1679_v2 = vmul.f32 %v7579_v56, %v1647_v23  ;;  %v1739_v23 = vmul.f32 %v8477_v46, %v1706_v45 }
 0xc44   :  { %v1687_v32 = vmul.f32 %v8445_v34, %v1679_v2  ;;  %v1745_v62 = vrot.slane %v1739_v23, 2 }
 0xc46   :  { %v1695_v25 = vadd.f32 %v8451_v63, %v1687_v32 }
 0xc48   :  { %v1701_v13 = vrot.slane %v1695_v25, 5  ;;  %v1783_v25 = vrot.slane %v1777_v33, 4 }
 0xc4a   :  { %v1707_v12 = vsel %vm856_vm2, %v1701_v13, 0.0  ;;  %v1702_v24 = vsel %vm856_vm2, %v1700_v51, %v1701_v13  ;;  %v1815_v13 = vmul.f32 %v8508_v41, %v1706_v45 }
 0xc4b   :  { %v1722_v54 = vmul.f32 %v8471_v4, %v1707_v12  ;;  %v1721_v22 = vmul.f32 %v8471_v4, %v1702_v24  ;;  %v1740_v19 = vmul.f32 %v8477_v46, %v1702_v24  ;;  %v1741_v59 = vmul.f32 %v8477_v46, %v1707_v12 }
 0xc4c   :  { %v1759_v16 = vmul.f32 %v8481_v61, %v1702_v24  ;;  %v1778_v29 = vmul.f32 %v8490_v11, %v1702_v24  ;;  %v1760_v20 = vmul.f32 %v8481_v61, %v1707_v12  ;;  %v1779_v53 = vmul.f32 %v8490_v11, %v1707_v12 }
 0xc4d   :  { %v1727_v1 = vrot.slane %v1721_v22, 1  ;;  %v1729_v9 = vrot.slane %v1722_v54, 1  ;;  %v1746_v60 = vrot.slane %v1740_v19, 2  ;;  %v1748_v52 = vrot.slane %v1741_v59, 2 }
 0xc4e   :  { %v1765_v14 = vrot.slane %v1759_v16, 3  ;;  %v1784_v47 = vrot.slane %v1778_v29, 4  ;;  %v1797_v51 = vmul.f32 %v8497_v7, %v1702_v24  ;;  %v1816_v2 = vmul.f32 %v8508_v41, %v1702_v24 }
 0xc4f   :  { %v1728_v39 = vsel %vm889_vm3, %v1726_v6, %v1727_v1  ;;  %v1730_v44 = vsel %vm889_vm3, %v1727_v1, %v1729_v9  ;;  %v1747_v56 = vsel %vm909_vm4, %v1745_v62, %v1746_v60  ;;  %v1713_v10 = vmul.f32 %v8485_v31, %v1702_v24 }
 0xc50   :  { %v1733_v58 = vadd.f32 %v1728_v39, %v1712_v21  ;;  %v1766_v23 = vsel %vm929_vm5, %v1764_v8, %v1765_v14  ;;  %v1767_v54 = vrot.slane %v1760_v20, 3  ;;  %v1798_v22 = vmul.f32 %v8497_v7, %v1707_v12 }
 0xc51   :  { %v1803_v19 = vrot.slane %v1797_v51, 5  ;;  %v1786_v59 = vrot.slane %v1779_v53, 4  ;;  %v1802_v16 = vrot.slane %v1796_v26, 5  ;;  %v1734_v29 = vadd.f32 %v1730_v44, %v1713_v10 }
 0xc52   :  { %v1752_v32 = vadd.f32 %v1747_v56, %v1733_v58  ;;  %v1749_v6 = vsel %vm909_vm4, %v1746_v60, %v1748_v52  ;;  %v1785_v1 = vsel %vm949_vm6, %v1783_v25, %v1784_v47  ;;  %v1817_v9 = vmul.f32 %v8508_v41, %v1707_v12 }
 0xc53   :  { %v1822_v21 = vrot.slane %v1816_v2, 6  ;;  %v1753_v62 = vadd.f32 %v1749_v6, %v1734_v29  ;;  %v1768_v24 = vsel %vm929_vm5, %v1765_v14, %v1767_v54  ;;  %v1804_v33 = vsel %vm856_vm2, %v1802_v16, %v1803_v19 }
 0xc54   :  { %v1771_v55 = vadd.f32 %v1766_v23, %v1752_v32  ;;  %v1805_v39 = vrot.slane %v1798_v22, 5  ;;  %v1821_v20 = vrot.slane %v1815_v13, 6  ;;  %v1787_v26 = vsel %vm949_vm6, %v1784_v47, %v1786_v59 }
 0xc55   :  { %v1772_v58 = vadd.f32 %v1768_v24, %v1753_v62  ;;  %v1824_v60 = vrot.slane %v1817_v9, 6 }
 0xc56   :  { %v1790_v45 = vadd.f32 %v1785_v1, %v1771_v55  ;;  %v1823_v53 = vsel %vm988_vm7, %v1821_v20, %v1822_v21  ;;  %v1806_v12 = vsel %vm856_vm2, %v1803_v19, %v1805_v39  ;;  %v8541_v55 = vrot.slane %v8238_v43, %v8150_v49 }
 0xc57   :  { %v1791_v44 = vadd.f32 %v1787_v26, %v1772_v58  ;;  %v1825_v14 = vsel %vm988_vm7, %v1822_v21, %v1824_v60 }
 0xc58   :  { %v1809_v8 = vadd.f32 %v1804_v33, %v1790_v45 }
 0xc59   :  { %v1810_v56 = vadd.f32 %v1806_v12, %v1791_v44 }
 0xc5a   :  { %v1828_v52 = vadd.f32 %v1823_v53, %v1809_v8 }
 0xc5b   :  { %v1829_v51 = vadd.f32 %v1825_v14, %v1810_v56 }
 0xc5c   :  { %7133 = vmatprep.mubr.msk.f32.mxu1 %vm257_vm1, %v1828_v52 }
 0xc5d   :  { %7134 = vmatmul.mubr.msk.f32.vlgmr.msra.gmra.mxu1 %vm257_vm1, %v1829_v51 }
 0xcc7   :  { %v1228_v2 = vpop.xlane.xlu0 %1227 }
 0xcc8   :  { %v1232_v32 = vmul.f32 0.03125, %v1228_v2 }
 0xcc9   :  { %v1225_v25 = vpop.xlane.xlu1 %1224 }
 0xcca   :  { %v1236_v47 = vsub.f32 %v8455_v30, %v1232_v32  ;;  %v1231_v13 = vmul.f32 0.03125, %v1225_v25 }
 0xccc   :  { %v1235_v10 = vsub.f32 %v8458_v42, %v1231_v13  ;;  %v1240_v23 = vmul.f32 %v1236_v47, %v1236_v47 }
 0xcce   :  { %v1250_v54 = vsel %vm257_vm1, %v1240_v23, 0.0  ;;  %v1239_v22 = vmul.f32 %v1235_v10, %v1235_v10 }
 0xccf   :  { %1251 = vadd.xlane.f32.xlu0 %v1250_v54  ;;  %v9643_v54 = vld [vmem:[#allocation27_spill] sm:$0xff] }
 0xcd0   :  { %v1247_v19 = vsel %vm257_vm1, %v1239_v22, 0.0 }
 0xcd1   :  { %1248 = vadd.xlane.f32.xlu1 %v1247_v19 }
 0xd1d   :  { %v7135_v59 = vpop.f32.mrf.mxu1 }
 0xd1e   :  { %v2022_v16 = vadd.f32 %v7135_v59, %v8541_v55 }
 0xd1f   :  { %v2016_v29 = vpop.f32.mrf.mxu1 }
 0xd20   :  { %v2036_v6 = vmax.f32 %v2022_v16, 0.0  ;;  %v2017_v1 = vadd.f32 %v2016_v29, %v8541_v55 }
 0xd22   :  { %v8546_v9 = vadd.f32 %v2036_v6, %v8395_v27  ;;  %v2035_v21 = vmax.f32 %v2017_v1, 0.0 }
 0xd24   :  { %v8549_v45 = vadd.f32 %v2035_v21, %v8389_v38  ;;  %v2046_v62 = vsel %vm257_vm1, %v8546_v9, 0.0 }
 0xd25   :  { %2047 = vadd.xlane.f32.xlu0 %v2046_v62 }
 0xd26   :  { %v2043_v43 = vsel %vm257_vm1, %v8549_v45, 0.0 }
 0xd27   :  { %2044 = vadd.xlane.f32.xlu1 %v2043_v43 }
 0xd58   :  { %v1252_v24 = vpop.xlane.xlu0 %1251 }
 0xd59   :  { %v1256_v33 = vmul.f32 0.03125, %v1252_v24 }
 0xd5a   :  { %v1249_v39 = vpop.xlane.xlu1 %1248 }
 0xd5b   :  { %v1260_v20 = vadd.f32 1e-05, %v1256_v33  ;;  %v1255_v8 = vmul.f32 0.03125, %v1249_v39 }
 0xd5d   :  { %7580 = vrsqrt.f32 %v1260_v20  ;;  %v1259_v27 = vadd.f32 1e-05, %v1255_v8 }
 0xd5f   :  { %7582 = vrsqrt.f32 %v1259_v27 }
 0xd6a   :  { %v7581_v58 = vpop.eup %7580 }
 0xd6b   :  { %v1268_v26 = vmul.f32 %v7581_v58, %v1236_v47  ;;  %v9642_v47 = vld [vmem:[#allocation26_spill] sm:$0xff] }
 0xd6c   :  { %v7583_v38 = vpop.eup %7582 }
 0xd6d   :  { %v1276_v53 = vmul.f32 %v8288_v15, %v1268_v26  ;;  %v1267_v60 = vmul.f32 %v7583_v38, %v1235_v10 }
 0xd6f   :  { %v1284_v52 = vadd.f32 %v8292_v17, %v1276_v53  ;;  %v1275_v44 = vmul.f32 %v8288_v15, %v1267_v60 }
 0xd71   :  { %v1283_v12 = vadd.f32 %v8292_v17, %v1275_v44  ;;  %v1420_v56 = vrot.slane %v1284_v52, 5 }
 0xd73   :  { %v1419_v14 = vrot.slane %v1283_v12, 5  ;;  %v1426_v10 = vsel %vm856_vm2, %v1420_v56, 0.0 }
 0xd74   :  { %v1433_v62 = vmul.f32 %v1426_v10, %v8302_v0  ;;  %v1448_v27 = vmul.f32 %v1426_v10, %v9642_v47  ;;  %v1463_v52 = vmul.f32 %v1426_v10, %v9643_v54 }
 0xd75   :  { %v1425_v51 = vsel %vm856_vm2, 0.0, %v1419_v14  ;;  %v1421_v2 = vsel %vm856_vm2, %v1419_v14, %v1420_v56 }
 0xd76   :  { %v1431_v32 = vmul.f32 %v1425_v51, %v8302_v0  ;;  %v1432_v25 = vmul.f32 %v1421_v2, %v8302_v0  ;;  %v1446_v13 = vmul.f32 %v1425_v51, %v9642_v47  ;;  %v1447_v23 = vmul.f32 %v1421_v2, %v9642_v47 }
 0xd77   :  { %v1461_v15 = vmul.f32 %v1425_v51, %v9643_v54  ;;  %v1462_v17 = vmul.f32 %v1421_v2, %v9643_v54  ;;  %v1476_v22 = vmul.f32 %v1425_v51, %v8329_v48  ;;  %v1477_v29 = vmul.f32 %v1421_v2, %v8329_v48 }
 0xd78   :  { %v1437_v19 = vrot.slane %v1431_v32, 1  ;;  %v1438_v59 = vrot.slane %v1432_v25, 1  ;;  %v1452_v16 = vrot.slane %v1446_v13, 2  ;;  %v1427_v6 = vmul.f32 %v1425_v51, %v8322_v35 }
 0xd79   :  { %v1453_v1 = vrot.slane %v1447_v23, 2  ;;  %v1467_v21 = vrot.slane %v1461_v15, 3  ;;  %v1468_v24 = vrot.slane %v1462_v17, 3  ;;  %v1491_v33 = vmul.f32 %v1425_v51, %v8336_v40 }
 0xd7a   :  { %v1439_v43 = vsel %vm889_vm3, %v1437_v19, %v1438_v59  ;;  %v1492_v39 = vmul.f32 %v1421_v2, %v8336_v40  ;;  %v1482_v8 = vrot.slane %v1476_v22, 4  ;;  %v1483_v26 = vrot.slane %v1477_v29, 4 }
 0xd7b   :  { %v1444_v20 = vadd.f32 %v1439_v43, %v1427_v6  ;;  %v1454_v58 = vsel %vm909_vm4, %v1452_v16, %v1453_v1  ;;  %v1506_v38 = vmul.f32 %v1425_v51, %v8344_v18  ;;  %v1507_v53 = vmul.f32 %v1421_v2, %v8344_v18 }
 0xd7c   :  { %v1440_v0 = vrot.slane %v1433_v62, 1  ;;  %v1469_v44 = vsel %vm929_vm5, %v1467_v21, %v1468_v24  ;;  %v1497_v12 = vrot.slane %v1491_v33, 5  ;;  %v1498_v56 = vrot.slane %v1492_v39, 5 }
 0xd7d   :  { %v1459_v60 = vadd.f32 %v1454_v58, %v1444_v20  ;;  %v1428_v14 = vmul.f32 %v1421_v2, %v8322_v35  ;;  %v1455_v47 = vrot.slane %v1448_v27, 2  ;;  %v1478_v13 = vmul.f32 %v1426_v10, %v8329_v48 }
 0xd7e   :  { %v1441_v25 = vsel %vm889_vm3, %v1438_v59, %v1440_v0  ;;  %v1484_v51 = vsel %vm949_vm6, %v1482_v8, %v1483_v26  ;;  %v1512_v23 = vrot.slane %v1506_v38, 6  ;;  %v1513_v15 = vrot.slane %v1507_v53, 6 }
 0xd7f   :  { %v1474_v32 = vadd.f32 %v1469_v44, %v1459_v60  ;;  %v1445_v17 = vadd.f32 %v1441_v25, %v1428_v14  ;;  %v1456_v54 = vsel %vm909_vm4, %v1453_v1, %v1455_v47  ;;  %v1470_v19 = vrot.slane %v1463_v52, 3  ;;  %v741_v14 = vld [vmem:[%s7915_s30 + $0x68] sm:$0xff] }
 0xd80   :  { %v1493_v16 = vmul.f32 %v1426_v10, %v8336_v40  ;;  %v1499_v29 = vsel %vm856_vm2, %v1497_v12, %v1498_v56  ;;  %v1485_v6 = vrot.slane %v1478_v13, 4  ;;  %v1508_v48 = vmul.f32 %v1426_v10, %v8344_v18  ;;  %v743_v12 = vld [vmem:[%s7915_s30 + $0x78] sm:$0xff] }
 0xd81   :  { %v1489_v22 = vadd.f32 %v1484_v51, %v1474_v32  ;;  %v1460_v35 = vadd.f32 %v1456_v54, %v1445_v17  ;;  %v1471_v59 = vsel %vm929_vm5, %v1468_v24, %v1470_v19  ;;  %v1514_v21 = vsel %vm988_vm7, %v1512_v23, %v1513_v15  ;;  %7139 = vmatprep.subr.mxu0 %v743_v12  ;;  %v740_v32 = vld [vmem:[%s7915_s30 + $0x60] sm:$0xff] }
 0xd82   :  { %v1486_v33 = vsel %vm949_vm6, %v1483_v26, %v1485_v6  ;;  %v1500_v39 = vrot.slane %v1493_v16, 5  ;;  %v1515_v20 = vrot.slane %v1508_v48, 6  ;;  %7140 = vmatpush3.msra.mxu0 %v743_v12 }
 0xd83   :  { %v1504_v2 = vadd.f32 %v1499_v29, %v1489_v22  ;;  %v1475_v62 = vadd.f32 %v1471_v59, %v1460_v35 }
 0xd84   :  { %v1501_v40 = vsel %vm856_vm2, %v1498_v56, %v1500_v39  ;;  %v1516_v24 = vsel %vm988_vm7, %v1513_v15, %v1515_v20  ;;  %v742_v56 = vld [vmem:[%s7915_s30 + $0x70] sm:$0xff]  ;;  %s7835_s30 = smov 72  }
 0xd85   :  { %v1519_v43 = vadd.f32 %v1514_v21, %v1504_v2  ;;  %v1490_v1 = vadd.f32 %v1486_v33, %v1475_v62  ;;  %7141 = vmatprep.subr.mxu0 %v742_v56  ;;  %v7726_v2 = vld [vmem:[%s7900_s14] sm:$0xf]  ;;  %s7832_s14 = smov 80  }
 0xd86   :  { %7142 = vmatpush3.msra.mxu0 %v742_v56  ;;  %v8611_v59 = vrot.slane %v7726_v2, %v8153_v50  ;;  %v7727_v62 = vld [vmem:[%s7905_s19] sm:$0xf]  ;;  %s7833_s19 = smov 112  }
 0xd87   :  { %7122 = vmatprep.mubr.msk.f32.mxu0 %vm257_vm1, %v1519_v43  ;;  %v1505_v8 = vadd.f32 %v1501_v40, %v1490_v1  ;;  %7143 = vmatprep.subr.mxu0 %v741_v14 }
 0xd88   :  { %7144 = vmatpush3.msra.mxu0 %v741_v14 }
 0xd89   :  { %v1520_v27 = vadd.f32 %v1516_v24, %v1505_v8  ;;  %7145 = vmatprep.subr.mxu0 %v740_v32  ;;  %v727_v24 = vld [vmem:[%s7910_s24 + $0x18] sm:$0xf]  ;;  %s7834_s24 = smov 48  }
 0xd8a   :  { %7146 = vmatpush3.msra.mxu0 %v740_v32  ;;  %v8653_v12 = vrot.slane %v727_v24, %v8078_v5 }
 0xd8b   :  { %7123 = vmatmul.mubr.msk.f32.gmra.mxu0 %vm257_vm1, %v1520_v27 }
 0xdae   :  { %v2048_v18 = vpop.xlane.xlu0 %2047 }
 0xdaf   :  { %v2056_v10 = vmul.f32 0.03125, %v2048_v18  ;;  %v8631_v18 = vrot.slane %v8466_v3, %v8173_v57 }
 0xdb0   :  { %v2045_v58 = vpop.xlane.xlu1 %2044 }
 0xdb1   :  { %v2060_v26 = vsub.f32 %v8546_v9, %v2056_v10  ;;  %v2055_v38 = vmul.f32 0.03125, %v2045_v58  ;;  %v8635_v10 = vrot.slane %v8466_v3, %v8306_v28  ;;  %v9644_v58 = vld [vmem:[#allocation25_spill] sm:$0xff] }
 0xdb3   :  { %v2059_v53 = vsub.f32 %v8549_v45, %v2055_v38  ;;  %v2064_v60 = vmul.f32 %v2060_v26, %v2060_v26 }
 0xdb5   :  { %v2070_v0 = vsel %vm257_vm1, %v2064_v60, 0.0  ;;  %v2063_v52 = vmul.f32 %v2059_v53, %v2059_v53 }
 0xdb6   :  { %2071 = vadd.xlane.f32.xlu0 %v2070_v0  ;;  %v8645_v0 = vrot.slane %v727_v24, %v8057_v36 }
 0xdb7   :  { %v2067_v44 = vsel %vm257_vm1, %v2063_v52, 0.0 }
 0xdb8   :  { %2068 = vadd.xlane.f32.xlu1 %v2067_v44 }
 0xe3f   :  { %v2072_v25 = vpop.xlane.xlu0 %2071 }
 0xe40   :  { %v2080_v47 = vmul.f32 0.03125, %v2072_v25 }
 0xe41   :  { %v2069_v13 = vpop.xlane.xlu1 %2068 }
 0xe42   :  { %v2084_v51 = vadd.f32 1e-05, %v2080_v47  ;;  %v2079_v23 = vmul.f32 0.03125, %v2069_v13 }
 0xe44   :  { %7584 = vrsqrt.f32 %v2084_v51  ;;  %v2083_v15 = vadd.f32 1e-05, %v2079_v23 }
 0xe46   :  { %7586 = vrsqrt.f32 %v2083_v15 }
 0xe4b   :  { %v7124_v17 = vpop.f32.mrf.mxu0 }
 0xe4c   :  { %v1619_v22 = vadd.f32 %v7124_v17, %v8385_v37 }
 0xe4d   :  { %v1613_v54 = vpop.f32.mrf.mxu0 }
 0xe4e   :  { %v1625_v19 = vmax.f32 %v1619_v22, 0.0  ;;  %v1614_v16 = vadd.f32 %v1613_v54, %v8385_v37  ;;  %v8620_v37 = vrot.slane %v7727_v62, %v8153_v50 }
 0xe50   :  { %v8607_v29 = vadd.f32 %v1625_v19, %v8455_v30  ;;  %v1624_v35 = vmax.f32 %v1614_v16, 0.0  ;;  %v8662_v16 = vrot.slane %v727_v24, %v8150_v49 }
 0xe51   :  { %v7585_v21 = vpop.eup %7584 }
 0xe52   :  { %v8614_v6 = vadd.f32 %v1624_v35, %v8458_v42  ;;  %v1639_v48 = vsel %vm257_vm1, %v8607_v29, 0.0  ;;  %v2092_v30 = vmul.f32 %v7585_v21, %v2060_v26  ;;  %v8639_v26 = vrot.slane %v8466_v3, %v9644_v58 }
 0xe53   :  { %1640 = vadd.xlane.f32.xlu0 %v1639_v48  ;;  %v7587_v33 = vpop.eup %7586  ;;  %v8665_v35 = vrot.slane %v727_v24, %v8153_v50 }
 0xe54   :  { %v1636_v43 = vsel %vm257_vm1, %v8614_v6, 0.0  ;;  %v2100_v39 = vmul.f32 %v8611_v59, %v2092_v30  ;;  %v2091_v42 = vmul.f32 %v7587_v33, %v2059_v53 }
 0xe55   :  { %1637 = vadd.xlane.f32.xlu1 %v1636_v43 }
 0xe56   :  { %v2108_v1 = vadd.f32 %v8620_v37, %v2100_v39  ;;  %v2099_v40 = vmul.f32 %v8611_v59, %v2091_v42 }
 0xe58   :  { %v2114_v20 = vrot.slane %v2108_v1, 5  ;;  %v2107_v8 = vadd.f32 %v8620_v37, %v2099_v40 }
 0xe5a   :  { %v2113_v27 = vrot.slane %v2107_v8, 5  ;;  %v2120_v38 = vsel %vm856_vm2, %v2114_v20, 0.0 }
 0xe5b   :  { %v2135_v56 = vmul.f32 %v8631_v18, %v2120_v38  ;;  %v2154_v2 = vmul.f32 %v8635_v10, %v2120_v38  ;;  %v2173_v42 = vmul.f32 %v8645_v0, %v2120_v38 }
 0xe5c   :  { %v2119_v53 = vsel %vm856_vm2, 0.0, %v2113_v27  ;;  %v2115_v60 = vsel %vm856_vm2, %v2113_v27, %v2114_v20 }
 0xe5d   :  { %v2133_v57 = vmul.f32 %v8631_v18, %v2119_v53  ;;  %v2134_v52 = vmul.f32 %v8631_v18, %v2115_v60  ;;  %v2152_v28 = vmul.f32 %v8635_v10, %v2119_v53  ;;  %v2153_v44 = vmul.f32 %v8635_v10, %v2115_v60 }
 0xe5e   :  { %v2171_v3 = vmul.f32 %v8645_v0, %v2119_v53  ;;  %v2172_v25 = vmul.f32 %v8645_v0, %v2115_v60  ;;  %v2125_v47 = vmul.f32 %v8639_v26, %v2119_v53  ;;  %v2190_v23 = vmul.f32 %v8653_v12, %v2119_v53 }
 0xe5f   :  { %v2139_v14 = vrot.slane %v2133_v57, 1  ;;  %v2140_v32 = vrot.slane %v2134_v52, 1  ;;  %v2158_v13 = vrot.slane %v2152_v28, 2  ;;  %v2159_v51 = vrot.slane %v2153_v44, 2 }
 0xe60   :  { %v2177_v17 = vrot.slane %v2171_v3, 3  ;;  %v2178_v22 = vrot.slane %v2172_v25, 3  ;;  %v2191_v54 = vmul.f32 %v8653_v12, %v2115_v60  ;;  %v2196_v21 = vrot.slane %v2190_v23, 4 }
 0xe61   :  { %v2141_v15 = vsel %vm889_vm3, %v2139_v14, %v2140_v32  ;;  %v2160_v48 = vsel %vm909_vm4, %v2158_v13, %v2159_v51  ;;  %v2142_v30 = vrot.slane %v2135_v56, 1  ;;  %v2209_v33 = vmul.f32 %v8662_v16, %v2119_v53 }
 0xe62   :  { %v2146_v19 = vadd.f32 %v2141_v15, %v2125_v47  ;;  %v2197_v62 = vrot.slane %v2191_v54, 4  ;;  %v2210_v39 = vmul.f32 %v8662_v16, %v2115_v60  ;;  %v2179_v49 = vsel %vm929_vm5, %v2177_v17, %v2178_v22 }
 0xe63   :  { %v2228_v1 = vmul.f32 %v8665_v35, %v2119_v53  ;;  %v2229_v40 = vmul.f32 %v8665_v35, %v2115_v60  ;;  %v2143_v20 = vsel %vm889_vm3, %v2140_v32, %v2142_v30  ;;  %v2215_v24 = vrot.slane %v2209_v33, 5 }
 0xe64   :  { %v2165_v43 = vadd.f32 %v2160_v48, %v2146_v19  ;;  %v2216_v27 = vrot.slane %v2210_v39, 5  ;;  %v2198_v58 = vsel %vm949_vm6, %v2196_v21, %v2197_v62  ;;  %v2126_v28 = vmul.f32 %v8639_v26, %v2115_v60 }
 0xe65   :  { %v2234_v57 = vrot.slane %v2228_v1, 6  ;;  %v2235_v52 = vrot.slane %v2229_v40, 6  ;;  %v2161_v44 = vrot.slane %v2154_v2, 2  ;;  %v2192_v3 = vmul.f32 %v8653_v12, %v2120_v38 }
 0xe66   :  { %v2184_v8 = vadd.f32 %v2179_v49, %v2165_v43  ;;  %v2217_v14 = vsel %vm856_vm2, %v2215_v24, %v2216_v27  ;;  %v2147_v53 = vadd.f32 %v2143_v20, %v2126_v28  ;;  %v2180_v47 = vrot.slane %v2173_v42, 3 }
 0xe67   :  { %v2162_v25 = vsel %vm909_vm4, %v2159_v51, %v2161_v44  ;;  %v2211_v32 = vmul.f32 %v8662_v16, %v2120_v38  ;;  %v2236_v23 = vsel %vm988_vm7, %v2234_v57, %v2235_v52  ;;  %v2199_v54 = vrot.slane %v2192_v3, 4 }
 0xe68   :  { %v2203_v56 = vadd.f32 %v2198_v58, %v2184_v8  ;;  %v2166_v15 = vadd.f32 %v2162_v25, %v2147_v53  ;;  %v2181_v17 = vsel %vm929_vm5, %v2178_v22, %v2180_v47  ;;  %v2230_v60 = vmul.f32 %v8665_v35, %v2120_v38  ;;  %v7728_v58 = vld [vmem:[%s7920_s6] sm:$0xf]  ;;  %s7836_s6 = smov 104  }
 0xe69   :  { %v2200_v48 = vsel %vm949_vm6, %v2197_v62, %v2199_v54  ;;  %v2218_v21 = vrot.slane %v2211_v32, 5  ;;  %v8696_v57 = vrot.slane %v7728_v58, %v8153_v50 }
 0xe6a   :  { %v2222_v13 = vadd.f32 %v2217_v14, %v2203_v56  ;;  %v2185_v2 = vadd.f32 %v2181_v17, %v2166_v15  ;;  %v2237_v43 = vrot.slane %v2230_v60, 6 }
 0xe6b   :  { %v2219_v30 = vsel %vm856_vm2, %v2216_v27, %v2218_v21 }
 0xe6c   :  { %v2241_v19 = vadd.f32 %v2236_v23, %v2222_v13  ;;  %v2204_v51 = vadd.f32 %v2200_v48, %v2185_v2  ;;  %v2238_v39 = vsel %vm988_vm7, %v2235_v52, %v2237_v43 }
 0xe6e   :  { %7147 = vmatprep.mubr.msk.f32.mxu0 %vm257_vm1, %v2241_v19  ;;  %v2223_v33 = vadd.f32 %v2219_v30, %v2204_v51 }
 0xe70   :  { %v2242_v42 = vadd.f32 %v2238_v39, %v2223_v33 }
 0xe72   :  { %7148 = vmatmul.mubr.msk.f32.vlgmr.msra.gmra.mxu0 %vm257_vm1, %v2242_v42 }
 0xedc   :  { %v1641_v22 = vpop.xlane.xlu0 %1640 }
 0xedd   :  { %v1645_v38 = vmul.f32 0.03125, %v1641_v22 }
 0xede   :  { %v1638_v49 = vpop.xlane.xlu1 %1637 }
 0xedf   :  { %v1649_v1 = vsub.f32 %v8607_v29, %v1645_v38  ;;  %v1644_v62 = vmul.f32 0.03125, %v1638_v49 }
 0xee1   :  { %v1648_v40 = vsub.f32 %v8614_v6, %v1644_v62  ;;  %v1653_v20 = vmul.f32 %v1649_v1, %v1649_v1 }
 0xee3   :  { %v1663_v8 = vsel %vm257_vm1, %v1653_v20, 0.0  ;;  %v1652_v24 = vmul.f32 %v1648_v40, %v1648_v40 }
 0xee4   :  { %1664 = vadd.xlane.f32.xlu0 %v1663_v8 }
 0xee5   :  { %v1660_v27 = vsel %vm257_vm1, %v1652_v24, 0.0 }
 0xee6   :  { %1661 = vadd.xlane.f32.xlu1 %v1660_v27 }
 0xf32   :  { %v7149_v52 = vpop.f32.mrf.mxu0 }
 0xf33   :  { %v2435_v28 = vadd.f32 %v7149_v52, %v8696_v57 }
 0xf34   :  { %v2429_v44 = vpop.f32.mrf.mxu0 }
 0xf35   :  { %v2449_v3 = vmax.f32 %v2435_v28, 0.0  ;;  %v2430_v56 = vadd.f32 %v2429_v44, %v8696_v57 }
 0xf37   :  { %v8701_v14 = vadd.f32 %v2449_v3, %v8546_v9  ;;  %v2448_v53 = vmax.f32 %v2430_v56, 0.0 }
 0xf39   :  { %v8704_v25 = vadd.f32 %v2448_v53, %v8549_v45  ;;  %v2461_v47 = vsel %vm257_vm1, %v8701_v14, 0.0 }
 0xf3a   :  { %2462 = vadd.xlane.f32.xlu0 %v2461_v47 }
 0xf3b   :  { %v2458_v50 = vsel %vm257_vm1, %v8704_v25, 0.0 }
 0xf3c   :  { %2459 = vadd.xlane.f32.xlu1 %v2458_v50 }
 0xf6d   :  { %v1665_v32 = vpop.xlane.xlu0 %1664 }
 0xf6e   :  { %v1669_v13 = vmul.f32 0.03125, %v1665_v32 }
 0xf6f   :  { %v1662_v23 = vpop.xlane.xlu1 %1661 }
 0xf70   :  { %v1673_v15 = vadd.f32 1e-05, %v1669_v13  ;;  %v1668_v17 = vmul.f32 0.03125, %v1662_v23 }
 0xf72   :  { %7588 = vrsqrt.f32 %v1673_v15  ;;  %v1672_v9 = vadd.f32 1e-05, %v1668_v17 }
 0xf74   :  { %7590 = vrsqrt.f32 %v1672_v9 }
 0xf7f   :  { %v7589_v54 = vpop.eup %7588 }
 0xf80   :  { %v1681_v60 = vmul.f32 %v7589_v54, %v1649_v1 }
 0xf81   :  { %v7591_v45 = vpop.eup %7590 }
 0xf82   :  { %v1689_v19 = vmul.f32 %v8445_v34, %v1681_v60  ;;  %v1680_v2 = vmul.f32 %v7591_v45, %v1648_v40 }
 0xf84   :  { %v1697_v48 = vadd.f32 %v8451_v63, %v1689_v19  ;;  %v1688_v21 = vmul.f32 %v8445_v34, %v1680_v2 }
 0xf86   :  { %v1696_v51 = vadd.f32 %v8451_v63, %v1688_v21  ;;  %v1833_v30 = vrot.slane %v1697_v48, 5 }
 0xf88   :  { %v1832_v43 = vrot.slane %v1696_v51, 5  ;;  %v1839_v49 = vsel %vm856_vm2, %v1833_v30, 0.0 }
 0xf89   :  { %v1846_v28 = vmul.f32 %v1839_v49, %v8471_v4  ;;  %v1861_v32 = vmul.f32 %v1839_v49, %v8477_v46  ;;  %v1876_v54 = vmul.f32 %v1839_v49, %v8481_v61  ;;  %v1891_v51 = vmul.f32 %v1839_v49, %v8490_v11 }
 0xf8a   :  { %v1838_v33 = vsel %vm856_vm2, 0.0, %v1832_v43  ;;  %v1834_v39 = vsel %vm856_vm2, %v1832_v43, %v1833_v30 }
 0xf8b   :  { %v1844_v42 = vmul.f32 %v1838_v33, %v8471_v4  ;;  %v1845_v22 = vmul.f32 %v1834_v39, %v8471_v4  ;;  %v1859_v38 = vmul.f32 %v1838_v33, %v8477_v46  ;;  %v1860_v1 = vmul.f32 %v1834_v39, %v8477_v46 }
 0xf8c   :  { %v1874_v34 = vmul.f32 %v1838_v33, %v8481_v61  ;;  %v1875_v63 = vmul.f32 %v1834_v39, %v8481_v61  ;;  %v1889_v62 = vmul.f32 %v1838_v33, %v8490_v11  ;;  %v1890_v24 = vmul.f32 %v1834_v39, %v8490_v11 }
 0xf8d   :  { %v1850_v40 = vrot.slane %v1844_v42, 1  ;;  %v1851_v20 = vrot.slane %v1845_v22, 1  ;;  %v1865_v8 = vrot.slane %v1859_v38, 2  ;;  %v1840_v27 = vmul.f32 %v1838_v33, %v8485_v31 }
 0xf8e   :  { %v1866_v58 = vrot.slane %v1860_v1, 2  ;;  %v1880_v52 = vrot.slane %v1874_v34, 3  ;;  %v1881_v3 = vrot.slane %v1875_v63, 3  ;;  %v1904_v56 = vmul.f32 %v1838_v33, %v8497_v7 }
 0xf8f   :  { %v1852_v44 = vsel %vm889_vm3, %v1850_v40, %v1851_v20  ;;  %v1905_v53 = vmul.f32 %v1834_v39, %v8497_v7  ;;  %v1895_v50 = vrot.slane %v1889_v62, 4  ;;  %v1896_v23 = vrot.slane %v1890_v24, 4 }
 0xf90   :  { %v1857_v47 = vadd.f32 %v1852_v44, %v1840_v27  ;;  %v1867_v13 = vsel %vm909_vm4, %v1865_v8, %v1866_v58  ;;  %v1919_v15 = vmul.f32 %v1838_v33, %v8508_v41  ;;  %v1920_v17 = vmul.f32 %v1834_v39, %v8508_v41 }
 0xf91   :  { %v1853_v4 = vrot.slane %v1846_v28, 1  ;;  %v1882_v60 = vsel %vm929_vm5, %v1880_v52, %v1881_v3  ;;  %v1910_v45 = vrot.slane %v1904_v56, 5  ;;  %v1911_v19 = vrot.slane %v1905_v53, 5 }
 0xf92   :  { %v1872_v9 = vadd.f32 %v1867_v13, %v1857_v47  ;;  %v1841_v2 = vmul.f32 %v1834_v39, %v8485_v31  ;;  %v1868_v21 = vrot.slane %v1861_v32, 2  ;;  %v1897_v30 = vsel %vm949_vm6, %v1895_v50, %v1896_v23 }
 0xf93   :  { %v1854_v46 = vsel %vm889_vm3, %v1851_v20, %v1853_v4  ;;  %v1925_v43 = vrot.slane %v1919_v15, 6  ;;  %v1926_v33 = vrot.slane %v1920_v17, 6  ;;  %v1883_v38 = vrot.slane %v1876_v54, 3  ;;  %v2533_v17 = vld [vmem:[%s7945_s9 + $0x18] sm:$0xff]  ;;  %v2531_v4 = vld [vmem:[%s7945_s9 + $0x8] sm:$0xff]  ;;  %v2530_v54 = vld [vmem:[%s7945_s9] sm:$0xff] }
 0xf94   :  { %v1887_v48 = vadd.f32 %v1882_v60, %v1872_v9  ;;  %v1858_v42 = vadd.f32 %v1854_v46, %v1841_v2  ;;  %v1869_v61 = vsel %vm909_vm4, %v1866_v58, %v1868_v21  ;;  %v1906_v1 = vmul.f32 %v1839_v49, %v8497_v7  ;;  %v2532_v9 = vld [vmem:[%s7945_s9 + $0x10] sm:$0xff]  ;;  %7153 = vmatprep.subr.mxu1 %v2533_v17  ;;  %s7827_s9 = smov 88  }
 0xf95   :  { %v1912_v34 = vsel %vm856_vm2, %v1910_v45, %v1911_v19  ;;  %v1884_v63 = vsel %vm929_vm5, %v1881_v3, %v1883_v38  ;;  %v1898_v62 = vrot.slane %v1891_v51, 4  ;;  %v1921_v11 = vmul.f32 %v1839_v49, %v8508_v41  ;;  %7154 = vmatpush3.msra.mxu1 %v2533_v17 }
 0xf96   :  { %v1902_v22 = vadd.f32 %v1897_v30, %v1887_v48  ;;  %v1873_v31 = vadd.f32 %v1869_v61, %v1858_v42  ;;  %v1927_v40 = vsel %vm988_vm7, %v1925_v43, %v1926_v33  ;;  %v1913_v27 = vrot.slane %v1906_v1, 5  ;;  %7155 = vmatprep.subr.mxu1 %v2532_v9 }
 0xf97   :  { %v1899_v24 = vsel %vm949_vm6, %v1896_v23, %v1898_v62  ;;  %v1928_v52 = vrot.slane %v1921_v11, 6  ;;  %7156 = vmatpush3.msra.mxu1 %v2532_v9  ;;  %v8776_v62 = vld [vmem:[%s9646_s21] ss:$0 sm:$0xff]  ;;  %s9662_s21 = sld [smem:[#allocation20_spill]] }
 0xf98   :  { %v1917_v39 = vadd.f32 %v1912_v34, %v1902_v22  ;;  %v1888_v20 = vadd.f32 %v1884_v63, %v1873_v31  ;;  %v1914_v7 = vsel %vm856_vm2, %v1911_v19, %v1913_v27  ;;  %7157 = vmatprep.subr.mxu1 %v2531_v4 }
 0xf99   :  { %v1929_v44 = vsel %vm988_vm7, %v1926_v33, %v1928_v52  ;;  %7158 = vmatpush3.msra.mxu1 %v2531_v4 }
 0xf9a   :  { %v1932_v8 = vadd.f32 %v1927_v40, %v1917_v39  ;;  %v1903_v58 = vadd.f32 %v1899_v24, %v1888_v20  ;;  %7159 = vmatprep.subr.mxu1 %v2530_v54  ;;  %v8772_v39 = vld [vmem:[%s9645_s17] ss:$0 sm:$0xff]  ;;  %s9661_s17 = sld [smem:[#allocation24_spill]] }
 0xf9b   :  { %7160 = vmatpush3.msra.mxu1 %v2530_v54 }
 0xf9c   :  { %7136 = vmatprep.mubr.msk.f32.mxu1 %vm257_vm1, %v1932_v8  ;;  %v1918_v28 = vadd.f32 %v1914_v7, %v1903_v58 }
 0xf9e   :  { %v1933_v3 = vadd.f32 %v1929_v44, %v1918_v28 }
 0xfa0   :  { %7137 = vmatmul.mubr.msk.f32.gmra.mxu1 %vm257_vm1, %v1933_v3 }
 0xfc3   :  { %v2463_v41 = vpop.xlane.xlu0 %2462 }
 0xfc4   :  { %v2471_v49 = vmul.f32 0.03125, %v2463_v41 }
 0xfc5   :  { %v2460_v56 = vpop.xlane.xlu1 %2459 }
 0xfc6   :  { %v2475_v53 = vsub.f32 %v8701_v14, %v2471_v49  ;;  %v2470_v47 = vmul.f32 0.03125, %v2460_v56 }
 0xfc8   :  { %v2474_v50 = vsub.f32 %v8704_v25, %v2470_v47  ;;  %v2479_v32 = vmul.f32 %v2475_v53, %v2475_v53 }
 0xfca   :  { %v2485_v13 = vsel %vm257_vm1, %v2479_v32, 0.0  ;;  %v2478_v23 = vmul.f32 %v2474_v50, %v2474_v50 }
 0xfcb   :  { %2486 = vadd.xlane.f32.xlu0 %v2485_v13 }
 0xfcc   :  { %v2482_v15 = vsel %vm257_vm1, %v2478_v23, 0.0 }
 0xfcd   :  { %2483 = vadd.xlane.f32.xlu1 %v2482_v15 }
0x1054   :  { %v2487_v60 = vpop.xlane.xlu0 %2486 }
0x1055   :  { %v2495_v45 = vmul.f32 0.03125, %v2487_v60 }
0x1056   :  { %v2484_v19 = vpop.xlane.xlu1 %2483 }
0x1057   :  { %v2499_v2 = vadd.f32 1e-05, %v2495_v45  ;;  %v2494_v48 = vmul.f32 0.03125, %v2484_v19 }
0x1059   :  { %7592 = vrsqrt.f32 %v2499_v2  ;;  %v2498_v46 = vadd.f32 1e-05, %v2494_v48 }
0x105b   :  { %7594 = vrsqrt.f32 %v2498_v46 }
0x1060   :  { %v7138_v21 = vpop.f32.mrf.mxu1 }
0x1061   :  { %v2032_v51 = vadd.f32 %v7138_v21, %v8541_v55 }
0x1062   :  { %v2026_v30 = vpop.f32.mrf.mxu1 }
0x1063   :  { %v2038_v43 = vmax.f32 %v2032_v51, 0.0  ;;  %v2027_v33 = vadd.f32 %v2026_v30, %v8541_v55 }
0x1065   :  { %v8762_v42 = vadd.f32 %v2038_v43, %v8607_v29  ;;  %v2037_v22 = vmax.f32 %v2027_v33, 0.0 }
0x1066   :  { %v7593_v34 = vpop.eup %7592 }
0x1067   :  { %v8765_v61 = vadd.f32 %v2037_v22, %v8614_v6  ;;  %v2052_v38 = vsel %vm257_vm1, %v8762_v42, 0.0  ;;  %v2507_v31 = vmul.f32 %v7593_v34, %v2475_v53 }
0x1068   :  { %2053 = vadd.xlane.f32.xlu0 %v2052_v38  ;;  %v7595_v55 = vpop.eup %7594 }
0x1069   :  { %v2049_v1 = vsel %vm257_vm1, %v8765_v61, 0.0  ;;  %v2506_v63 = vmul.f32 %v7595_v55, %v2474_v50  ;;  %v2517_v29 = vmul.f32 %v8772_v39, %v2507_v31 }
0x106a   :  { %2050 = vadd.xlane.f32.xlu1 %v2049_v1 }
0x106b   :  { %v2516_v6 = vmul.f32 %v8772_v39, %v2506_v63  ;;  %v2527_v40 = vadd.f32 %v8776_v62, %v2517_v29 }
0x106d   :  { %v2526_v11 = vadd.f32 %v8776_v62, %v2516_v6 }
0x106f   :  { %7161 = vmatprep.mubr.msk.f32.mxu1 %vm257_vm1, %v2526_v11 }
0x1070   :  { %7162 = vmatmul.mubr.msk.f32.vlgmr.msra.gmra.mxu1 %vm257_vm1, %v2527_v40 }
0x10f1   :  { %v2054_v20 = vpop.xlane.xlu0 %2053 }
0x10f2   :  { %v2058_v8 = vmul.f32 0.03125, %v2054_v20 }
0x10f3   :  { %v2051_v24 = vpop.xlane.xlu1 %2050 }
0x10f4   :  { %v2062_v27 = vsub.f32 %v8762_v42, %v2058_v8  ;;  %v2057_v58 = vmul.f32 0.03125, %v2051_v24 }
0x10f6   :  { %v2061_v7 = vsub.f32 %v8765_v61, %v2057_v58  ;;  %v2066_v52 = vmul.f32 %v2062_v27, %v2062_v27 }
0x10f8   :  { %v2076_v28 = vsel %vm257_vm1, %v2066_v52, 0.0  ;;  %v2065_v44 = vmul.f32 %v2061_v7, %v2061_v7 }
0x10f9   :  { %2077 = vadd.xlane.f32.xlu0 %v2076_v28 }
0x10fa   :  { %v2073_v3 = vsel %vm257_vm1, %v2065_v44, 0.0 }
0x10fb   :  { %2074 = vadd.xlane.f32.xlu1 %v2073_v3 }
0x1130   :  { %v8787_v41 = vpop.f32.mrf.mxu1 }
0x1131   :  { %2637 = vrot.lane.b32.xlu1 %v8787_v41, %s7826_s5  ;;  %v8805_v53 = vmul.f32 0.35355338, %v8787_v41 }
0x1132   :  { %v8791_v49 = vpop.f32.mrf.mxu1 }
0x1133   :  { %2635 = vrot.lane.b32.xlu0 %v8791_v49, %s7826_s5  ;;  %v8798_v56 = vmul.f32 0.35355338, %v8791_v49 }
0x1135   :  { %2850 = vrot.lane.b32.xlu1 %v8787_v41, %s7827_s9 }
0x1137   :  { %2844 = vrot.lane.b32.xlu0 %v8798_v56, %s7828_s25 }
0x1139   :  { %2848 = vrot.lane.b32.xlu1 %v8791_v49, %s7827_s9 }
0x113d   :  { %2846 = vrot.lane.b32.xlu1 %v8805_v53, %s7828_s25 }
0x1182   :  { %v2078_v47 = vpop.xlane.xlu0 %2077 }
0x1183   :  { %v2082_v50 = vmul.f32 0.03125, %v2078_v47 }
0x1184   :  { %v2075_v32 = vpop.xlane.xlu1 %2074 }
0x1185   :  { %v2086_v13 = vadd.f32 1e-05, %v2082_v50  ;;  %v2081_v23 = vmul.f32 0.03125, %v2075_v32 }
0x1187   :  { %7596 = vrsqrt.f32 %v2086_v13  ;;  %v2085_v15 = vadd.f32 1e-05, %v2081_v23 }
0x1189   :  { %7598 = vrsqrt.f32 %v2085_v15 }
0x1194   :  { %v7597_v17 = vpop.eup %7596 }
0x1195   :  { %v2094_v9 = vmul.f32 %v7597_v17, %v2062_v27 }
0x1196   :  { %v7599_v4 = vpop.eup %7598 }
0x1197   :  { %v2102_v54 = vmul.f32 %v8611_v59, %v2094_v9  ;;  %v2093_v60 = vmul.f32 %v7599_v4, %v2061_v7 }
0x1199   :  { %v2110_v45 = vadd.f32 %v8620_v37, %v2102_v54  ;;  %v2101_v19 = vmul.f32 %v8611_v59, %v2093_v60 }
0x119b   :  { %v2109_v2 = vadd.f32 %v8620_v37, %v2101_v19  ;;  %v2246_v48 = vrot.slane %v2110_v45, 5 }
0x119d   :  { %v2245_v46 = vrot.slane %v2109_v2, 5  ;;  %v2252_v22 = vsel %vm856_vm2, %v2246_v48, 0.0 }
0x119e   :  { %v2259_v40 = vmul.f32 %v2252_v22, %v8631_v18  ;;  %v2274_v52 = vmul.f32 %v2252_v22, %v8635_v10  ;;  %v2289_v13 = vmul.f32 %v2252_v22, %v8645_v0  ;;  %v2304_v45 = vmul.f32 %v2252_v22, %v8653_v12 }
0x119f   :  { %v2251_v21 = vsel %vm856_vm2, 0.0, %v2245_v46  ;;  %v2247_v51 = vsel %vm856_vm2, %v2245_v46, %v2246_v48 }
0x11a0   :  { %v2257_v30 = vmul.f32 %v2251_v21, %v8631_v18  ;;  %v2258_v43 = vmul.f32 %v2247_v51, %v8631_v18  ;;  %v2272_v33 = vmul.f32 %v2251_v21, %v8635_v10  ;;  %v2273_v38 = vmul.f32 %v2247_v51, %v8635_v10 }
0x11a1   :  { %v2287_v59 = vmul.f32 %v2251_v21, %v8645_v0  ;;  %v2288_v37 = vmul.f32 %v2247_v51, %v8645_v0  ;;  %v2302_v1 = vmul.f32 %v2251_v21, %v8653_v12  ;;  %v2303_v63 = vmul.f32 %v2247_v51, %v8653_v12 }
0x11a2   :  { %v2263_v34 = vrot.slane %v2257_v30, 1  ;;  %v2264_v31 = vrot.slane %v2258_v43, 1  ;;  %v2278_v55 = vrot.slane %v2272_v33, 2  ;;  %v2253_v29 = vmul.f32 %v2251_v21, %v8639_v26 }
0x11a3   :  { %v2279_v6 = vrot.slane %v2273_v38, 2  ;;  %v2293_v11 = vrot.slane %v2287_v59, 3  ;;  %v2294_v8 = vrot.slane %v2288_v37, 3  ;;  %v2317_v24 = vmul.f32 %v2251_v21, %v8662_v16  ;;  %v2638_v18 = vpop.permute.xlu1 %2637 }
0x11a4   :  { %v2265_v20 = vsel %vm889_vm3, %v2263_v34, %v2264_v31  ;;  %v2318_v27 = vmul.f32 %v2247_v51, %v8662_v16  ;;  %v2308_v7 = vrot.slane %v2302_v1, 4  ;;  %v2309_v44 = vrot.slane %v2303_v63, 4  ;;  %7167 = vmatprep.subr.msk.mxu0 %vm2639_vm8, %v2638_v18 }
0x11a5   :  { %v2270_v58 = vadd.f32 %v2265_v20, %v2253_v29  ;;  %v2280_v28 = vsel %vm909_vm4, %v2278_v55, %v2279_v6  ;;  %v2332_v3 = vmul.f32 %v2251_v21, %v8665_v35  ;;  %v2333_v47 = vmul.f32 %v2247_v51, %v8665_v35  ;;  %v2636_v9 = vpop.permute.xlu0 %2635  ;;  %7168 = vmatpush3.xpose.msk.msra.mxu0 %vm2639_vm8, %v2638_v18 }
0x11a6   :  { %v2266_v32 = vrot.slane %v2259_v40, 1  ;;  %v2295_v23 = vsel %vm929_vm5, %v2293_v11, %v2294_v8  ;;  %v2323_v15 = vrot.slane %v2317_v24, 5  ;;  %v2324_v17 = vrot.slane %v2318_v27, 5  ;;  %7169 = vmatprep.subr.msk.mxu0 %vm2639_vm8, %v2636_v9  ;;  %v135_v27 = vld [vmem:[%s9647_s29] sm:$0x3]  ;;  %s7845_s29 = smov [#allocation7]  }
0x11a7   :  { %v2285_v50 = vadd.f32 %v2280_v28, %v2270_v58  ;;  %v2254_v10 = vmul.f32 %v2247_v51, %v8639_v26  ;;  %v2281_v60 = vrot.slane %v2274_v52, 2  ;;  %v2310_v0 = vsel %vm949_vm6, %v2308_v7, %v2309_v44  ;;  %v2851_v33 = vpop.permute.xlu1 %2850 }
0x11a8   :  { %v2267_v54 = vsel %vm889_vm3, %v2264_v31, %v2266_v32  ;;  %v2338_v19 = vrot.slane %v2332_v3, 6  ;;  %v2339_v2 = vrot.slane %v2333_v47, 6  ;;  %v2296_v26 = vrot.slane %v2289_v13, 3 }
0x11a9   :  { %v2300_v4 = vadd.f32 %v2295_v23, %v2285_v50  ;;  %v2271_v48 = vadd.f32 %v2267_v54, %v2254_v10  ;;  %v2282_v21 = vsel %vm909_vm4, %v2279_v6, %v2281_v60  ;;  %v2319_v51 = vmul.f32 %v2252_v22, %v8662_v16  ;;  %7170 = vmatpush3.xpose.msk.msra.mxu0 %vm2639_vm8, %v2636_v9 }
0x11aa   :  { %v2325_v30 = vsel %vm856_vm2, %v2323_v15, %v2324_v17  ;;  %v2297_v38 = vsel %vm929_vm5, %v2294_v8, %v2296_v26  ;;  %v2311_v59 = vrot.slane %v2304_v45, 4  ;;  %v2334_v37 = vmul.f32 %v2252_v22, %v8665_v35  ;;  %7181 = vmatprep.subr.msk.mxu0 %vm2639_vm8, %v2851_v33  ;;  %v2845_v22 = vpop.permute.xlu0 %2844 }
0x11ab   :  { %v2315_v46 = vadd.f32 %v2310_v0, %v2300_v4  ;;  %v2286_v43 = vadd.f32 %v2282_v21, %v2271_v48  ;;  %v2340_v1 = vsel %vm988_vm7, %v2338_v19, %v2339_v2  ;;  %v2326_v55 = vrot.slane %v2319_v51, 5  ;;  %v2849_v20 = vpop.permute.xlu1 %2848 }
0x11ac   :  { %v2312_v16 = vsel %vm949_vm6, %v2309_v44, %v2311_v59  ;;  %v2341_v6 = vrot.slane %v2334_v37, 6  ;;  %v7829_v24 = vmov 0   ;;  %vm2725_vm9 = vcmp.gt.f32.partialorder %v135_v27, 0.0 }
0x11ad   :  { %v2330_v12 = vadd.f32 %v2325_v30, %v2315_v46  ;;  %v2301_v34 = vadd.f32 %v2297_v38, %v2286_v43  ;;  %v2327_v29 = vsel %vm856_vm2, %v2324_v17, %v2326_v55  ;;  %7530 = vset.pattern.permute.xlu1 %v7829_v24  ;;  %7531 = vset.pattern.permute.xlu0 %v7829_v24  ;;  %v8865_v58 = vsel %vm2725_vm9, 1, %v7829_v24 }
0x11ae   :  { %v2342_v40 = vsel %vm988_vm7, %v2339_v2, %v2341_v6  ;;  %v2730_v44 = vrot.slane %v8865_v58, %v8057_v36  ;;  %vm6546_vm3 = vcmask 254976  }
0x11af   :  { %v2345_v31 = vadd.f32 %v2340_v1, %v2330_v12  ;;  %v2316_v63 = vadd.f32 %v2312_v16, %v2301_v34  ;;  %v2847_v8 = vpop.permute.xlu1 %2846 }
0x11b0   :  { %vm8871_vm10 = vcmp.eq.s32.totalorder %v2730_v44, 1 }
0x11b1   :  { %7150 = vmatprep.mubr.msk.f32.mxu0 %vm257_vm1, %v2345_v31  ;;  %v2331_v11 = vadd.f32 %v2327_v29, %v2316_v63 }
0x11b3   :  { %v2346_v35 = vadd.f32 %v2342_v40, %v2331_v11 }
0x11b5   :  { %7151 = vmatmul.mubr.msk.f32.gmra.mxu0 %vm257_vm1, %v2346_v35 }
0x11b6   :  { %7171 = vmatprep.mubr.msk.f32.mxu0 %vm2639_vm8, %v8798_v56 }
0x11b9   :  { %7172 = vmatmul.mubr.msk.f32.vlgmr.msra.gmra.mxu0 %vm2639_vm8, %v8805_v53 }
0x11ba   :  { %7182 = vmatpush3.xpose.msk.msra.mxu0 %vm2639_vm8, %v2851_v33  ;;  %7185 = vmatprep.mubr.msk.f32.mxu0 %vm2639_vm8, %v2845_v22 }
0x11bb   :  { %7183 = vmatprep.subr.msk.mxu0 %vm2639_vm8, %v2849_v20 }
0x11be   :  { %7184 = vmatpush3.xpose.msk.msra.mxu0 %vm2639_vm8, %v2849_v20 }
0x11c1   :  { %7186 = vmatmul.mubr.msk.f32.vlgmr.msra.gmra.mxu0 %vm2639_vm8, %v2847_v8 }
0x1275   :  { %v7152_v7 = vpop.f32.mrf.mxu0 }
0x1276   :  { %v2445_v52 = vadd.f32 %v7152_v7, %v8696_v57 }
0x1277   :  { %v2439_v28 = vpop.f32.mrf.mxu0 }
0x1278   :  { %v2440_v3 = vadd.f32 %v2439_v28, %v8696_v57  ;;  %v2451_v18 = vmax.f32 %v2445_v52, 0.0 }
0x1279   :  { %v7173_v47 = vpop.f32.mrf.mxu0 }
0x127a   :  { %v2450_v50 = vmax.f32 %v2440_v3, 0.0  ;;  %v8882_v10 = vadd.f32 %v2451_v18, %v8762_v42 }
0x127b   :  { %v2716_v13 = vpop.f32.mrf.mxu0 }
0x127c   :  { %v8876_v23 = vadd.f32 %v2450_v50, %v8765_v61  ;;  %v2732_v15 = vsel %vm8871_vm10, %v2716_v13, -1e+30  ;;  %v2467_v9 = vsel %vm257_vm1, %v8882_v10, 0.0  ;;  %v2733_v61 = vsel %vm8871_vm10, %v7173_v47, -1e+30 }
0x127d   :  { %v2735_v17 = vsel %vm2734_vm11, %v2732_v15, -inf  ;;  %v2738_v54 = vsel %vm2734_vm11, %v2733_v61, -inf }
0x127e   :  { %2736 = vmax.xlane.f32.xlu1 %v2735_v17  ;;  %v2464_v57 = vsel %vm257_vm1, %v8876_v23, 0.0 }
0x127f   :  { %2465 = vadd.xlane.f32.xlu0 %v2464_v57 }
0x1281   :  { %v7187_v4 = vpop.f32.mrf.mxu0 }
0x1282   :  { %v2936_v60 = vsel %vm8871_vm10, %v7187_v4, -1e+30 }
0x1283   :  { %2468 = vadd.xlane.f32.xlu0 %v2467_v9  ;;  %v2940_v42 = vsel %vm2734_vm11, %v2936_v60, -inf  ;;  %v2926_v1 = vpop.f32.mrf.mxu0 }
0x1284   :  { %v2935_v31 = vsel %vm8871_vm10, %v2926_v1, -1e+30 }
0x1285   :  { %v2937_v55 = vsel %vm2734_vm11, %v2935_v31, -inf }
0x1287   :  { %2739 = vmax.xlane.f32.xlu0 %v2738_v54 }
0x128b   :  { %2941 = vmax.xlane.f32.xlu0 %v2940_v42 }
0x1307   :  { %v2737_v6 = vpop.xlane.xlu1 %2736 }
0x1308   :  { %v2466_v45 = vpop.xlane.xlu0 %2465  ;;  %v2741_v11 = vsub.f32 %v2732_v15, %v2737_v6 }
0x1309   :  { %v2472_v0 = vmul.f32 0.03125, %v2466_v45 }
0x130a   :  { %v2743_v40 = vmul.f32 1.442695, %v2741_v11 }
0x130b   :  { %v8895_v19 = vsub.f32 %v8876_v23, %v2472_v0 }
0x130c   :  { %v2469_v2 = vpop.xlane.xlu0 %2468 }
0x130d   :  { %v2473_v48 = vmul.f32 0.03125, %v2469_v2  ;;  %v2480_v46 = vmul.f32 %v8895_v19, %v8895_v19 }
0x130f   :  { %v8900_v21 = vsub.f32 %v8882_v10, %v2473_v48  ;;  %v2488_v26 = vsel %vm257_vm1, %v2480_v46, 0.0 }
0x1310   :  { %2489 = vadd.xlane.f32.xlu1 %v2488_v26  ;;  %v2740_v43 = vpop.xlane.xlu0 %2739 }
0x1311   :  { %v2481_v51 = vmul.f32 %v8900_v21, %v8900_v21  ;;  %v2742_v33 = vsub.f32 %v2733_v61, %v2740_v43 }
0x1313   :  { %v2491_v30 = vsel %vm257_vm1, %v2481_v51, 0.0  ;;  %v2745_v38 = vmul.f32 1.442695, %v2742_v33 }
0x1314   :  { %2492 = vadd.xlane.f32.xlu0 %v2491_v30  ;;  %v2942_v12 = vpop.xlane.xlu0 %2941 }
0x1315   :  { %v2944_v59 = vsub.f32 %v2936_v60, %v2942_v12  ;;  %7600 = vpow2.f32 %v2745_v38 }
0x1317   :  { %v2947_v37 = vmul.f32 1.442695, %v2944_v59 }
0x1319   :  { %7602 = vpow2.f32 %v2947_v37 }
0x131a   :  { %7604 = vpow2.f32 %v2743_v40 }
0x1321   :  { %2759 = vrot.lane.b32.xlu1 %v8787_v41, %s7830_s3 }
0x1322   :  { %v8912_v34 = vpop.eup %7600 }
0x1323   :  { %v2750_v16 = vsel %vm2734_vm11, %v8912_v34, 0.0 }
0x1325   :  { %2961 = vrot.lane.b32.xlu1 %v8787_v41, %s7831_s8 }
0x1326   :  { %v8919_v63 = vpop.eup %7602 }
0x1327   :  { %v2952_v29 = vsel %vm2734_vm11, %v8919_v63, 0.0  ;;  %v7605_v35 = vpop.eup %7604 }
0x1328   :  { %v2747_v22 = vsel %vm2734_vm11, %v7605_v35, 0.0 }
0x132a   :  { %2757 = vrot.lane.b32.xlu0 %v8791_v49, %s7830_s3 }
0x1349   :  { %2751 = vadd.xlane.f32.xlu0 %v2750_v16  ;;  %2938 = vmax.xlane.f32.xlu1 %v2937_v55 }
0x134d   :  { %2953 = vadd.xlane.f32.xlu0 %v2952_v29 }
0x135a   :  { %2959 = vrot.lane.b32.xlu1 %v8791_v49, %s7831_s8 }
0x1363   :  { %3052 = vrot.lane.b32.xlu0 %v8787_v41, %s7832_s14 }
0x1367   :  { %3046 = vrot.lane.b32.xlu0 %v8798_v56, %s7833_s19 }
0x137e   :  { %2748 = vadd.xlane.f32.xlu1 %v2747_v22 }
0x138f   :  { %3050 = vrot.lane.b32.xlu1 %v8791_v49, %s7832_s14 }
0x1399   :  { %v2490_v20 = vpop.xlane.xlu1 %2489 }
0x139a   :  { %v2496_v8 = vmul.f32 0.03125, %v2490_v20 }
0x139c   :  { %v2500_v24 = vadd.f32 1e-05, %v2496_v8 }
0x139d   :  { %v2493_v27 = vpop.xlane.xlu0 %2492  ;;  %v2760_v7 = vpop.permute.xlu1 %2759 }
0x139e   :  { %7606 = vrsqrt.f32 %v2500_v24  ;;  %v2497_v52 = vmul.f32 0.03125, %v2493_v27  ;;  %7174 = vmatprep.subr.mxu1 %v2760_v7 }
0x139f   :  { %7175 = vmatpush3.msra.mxu1 %v2760_v7 }
0x13a0   :  { %v2501_v28 = vadd.f32 1e-05, %v2497_v52 }
0x13a1   :  { %v2758_v44 = vpop.permute.xlu0 %2757  ;;  %v2962_v3 = vpop.permute.xlu1 %2961 }
0x13a2   :  { %7608 = vrsqrt.f32 %v2501_v28  ;;  %7176 = vmatprep.subr.mxu1 %v2758_v44 }
0x13a3   :  { %7177 = vmatpush3.msra.mxu1 %v2758_v44 }
0x13a4   :  { %7188 = vmatprep.subr.mxu1 %v2962_v3 }
0x13ab   :  { %v7607_v47 = vpop.eup %7606 }
0x13ac   :  { %v2508_v18 = vmul.f32 %v7607_v47, %v8895_v19 }
0x13ae   :  { %v2518_v50 = vmul.f32 %v8772_v39, %v2508_v18 }
0x13af   :  { %v7609_v13 = vpop.eup %7608 }
0x13b0   :  { %v2528_v15 = vadd.f32 %v8776_v62, %v2518_v50  ;;  %v2509_v17 = vmul.f32 %v7609_v13, %v8900_v21 }
0x13b2   :  { %7164 = vmatprep.mubr.msk.f32.mxu1 %vm257_vm1, %v2528_v15  ;;  %v2519_v57 = vmul.f32 %v8772_v39, %v2509_v17 }
0x13b4   :  { %v2529_v9 = vadd.f32 %v8776_v62, %v2519_v57 }
0x13b6   :  { %7165 = vmatmul.mubr.msk.f32.gmra.mxu1 %vm257_vm1, %v2529_v9 }
0x13d2   :  { %v2939_v61 = vpop.xlane.xlu1 %2938  ;;  %v2752_v0 = vpop.xlane.xlu0 %2751 }
0x13d3   :  { %v2943_v4 = vsub.f32 %v2935_v31, %v2939_v61 }
0x13d5   :  { %v2945_v54 = vmul.f32 1.442695, %v2943_v4 }
0x13d6   :  { %v2960_v45 = vpop.permute.xlu1 %2959  ;;  %v2954_v2 = vpop.xlane.xlu0 %2953 }
0x13d7   :  { %7610 = vpow2.f32 %v2945_v54 }
0x13d8   :  { %7612 = vrcp.f32 %v2752_v0 }
0x13da   :  { %v3053_v21 = vpop.permute.xlu0 %3052 }
0x13de   :  { %v3047_v38 = vpop.permute.xlu0 %3046 }
0x13e4   :  { %v7611_v60 = vpop.eup %7610 }
0x13e5   :  { %v2949_v42 = vsel %vm2734_vm11, %v7611_v60, 0.0  ;;  %v7613_v39 = vpop.eup %7612 }
0x13e6   :  { %2950 = vadd.xlane.f32.xlu1 %v2949_v42  ;;  %v2756_v46 = vmul.f32 %v7613_v39, %v8912_v34 }
0x13f7   :  { %3048 = vrot.lane.b32.xlu1 %v8805_v53, %s7833_s19 }
0x1407   :  { %v2749_v19 = vpop.xlane.xlu1 %2748 }
0x1408   :  { %7614 = vrcp.f32 %v2749_v19 }
0x1409   :  { %7616 = vrcp.f32 %v2954_v2 }
0x140b   :  { %v3051_v26 = vpop.permute.xlu1 %3050 }
0x1415   :  { %v7615_v62 = vpop.eup %7614 }
0x1416   :  { %v2755_v48 = vmul.f32 %v7615_v62, %v7605_v35  ;;  %v7617_v30 = vpop.eup %7616 }
0x1417   :  { %v2958_v12 = vmul.f32 %v7617_v30, %v8919_v63 }
0x1418   :  { %7178 = vmatprep.mubr.msk.f32.mxu1 %vm2734_vm11, %v2755_v48 }
0x1419   :  { %7179 = vmatmul.mubr.msk.f32.vlgmr.msra.gmra.mxu1 %vm2734_vm11, %v2756_v46 }
0x141a   :  { %7189 = vmatpush3.msra.mxu1 %v2962_v3 }
0x141b   :  { %7190 = vmatprep.subr.mxu1 %v2960_v45 }
0x141c   :  { %7191 = vmatpush3.msra.mxu1 %v2960_v45 }
0x141d   :  { %7195 = vmatprep.subr.msk.mxu1 %vm2639_vm8, %v3053_v21 }
0x146f   :  { %v2951_v51 = vpop.xlane.xlu1 %2950 }
0x1470   :  { %7618 = vrcp.f32 %v2951_v51 }
0x1473   :  { %v3049_v59 = vpop.permute.xlu1 %3048 }
0x1476   :  { %v8955_v37 = vpop.f32.mrf.mxu1 }
0x1478   :  { %v8957_v1 = vpop.f32.mrf.mxu1 }
0x147d   :  { %v7619_v43 = vpop.eup %7618 }
0x147e   :  { %v2957_v33 = vmul.f32 %v7619_v43, %v7611_v60 }
0x1480   :  { %7192 = vmatprep.mubr.msk.f32.mxu1 %vm2734_vm11, %v2957_v33 }
0x1481   :  { %7193 = vmatmul.mubr.msk.f32.vlgmr.msra.gmra.mxu1 %vm2734_vm11, %v2958_v12 }
0x1482   :  { %7196 = vmatpush3.xpose.msk.msra.mxu1 %vm2639_vm8, %v3053_v21  ;;  %7199 = vmatprep.mubr.msk.f32.mxu1 %vm2639_vm8, %v3047_v38 }
0x1483   :  { %7197 = vmatprep.subr.msk.mxu1 %vm2639_vm8, %v3051_v26 }
0x1486   :  { %7198 = vmatpush3.xpose.msk.msra.mxu1 %vm2639_vm8, %v3051_v26 }
0x1489   :  { %7200 = vmatmul.mubr.msk.f32.vlgmr.msra.gmra.mxu1 %vm2639_vm8, %v3049_v59 }
0x14d9   :  { %v8959_v34 = vpop.f32.mrf.mxu1 }
0x14db   :  { %v8961_v31 = vpop.f32.mrf.mxu1 }
0x1541   :  { %v8963_v16 = vpop.f32.mrf.mxu1 }
0x1543   :  { %v8965_v55 = vpop.f32.mrf.mxu1 }
0x1549   :  { %v7201_v63 = vpop.f32.mrf.mxu1 }
0x154a   :  { %v3138_v29 = vsel %vm8871_vm10, %v7201_v63, -1e+30 }
0x154b   :  { %v3142_v6 = vsel %vm2734_vm11, %v3138_v29, -inf  ;;  %v3128_v11 = vpop.f32.mrf.mxu1 }
0x154c   :  { %v3137_v40 = vsel %vm8871_vm10, %v3128_v11, -1e+30  ;;  %3143 = vmax.xlane.f32.xlu1 %v3142_v6 }
0x154d   :  { %v3139_v35 = vsel %vm2734_vm11, %v3137_v40, -inf }
0x154e   :  { %3140 = vmax.xlane.f32.xlu0 %v3139_v35 }
0x155d   :  { %3163 = vrot.lane.b32.xlu1 %v8787_v41, %s7834_s24 }
0x1561   :  { %3254 = vrot.lane.b32.xlu1 %v8787_v41, %s7835_s30 }
0x1565   :  { %3252 = vrot.lane.b32.xlu1 %v8791_v49, %s7835_s30 }
0x1569   :  { %3250 = vrot.lane.b32.xlu1 %v8805_v53, %s7836_s6 }
0x15d5   :  { %v3144_v22 = vpop.xlane.xlu1 %3143 }
0x15d6   :  { %v3146_v20 = vsub.f32 %v3138_v29, %v3144_v22  ;;  %v9018_v22 = vmul.f32 0.35355338, %v8957_v1 }
0x15d7   :  { %v3141_v8 = vpop.xlane.xlu0 %3140 }
0x15d8   :  { %v3149_v24 = vmul.f32 1.442695, %v3146_v20  ;;  %v3145_v27 = vsub.f32 %v3137_v40, %v3141_v8  ;;  %v9027_v20 = vmul.f32 0.35355338, %v8955_v37 }
0x15d9   :  { %v3164_v7 = vpop.permute.xlu1 %3163 }
0x15da   :  { %7620 = vpow2.f32 %v3149_v24  ;;  %v3147_v52 = vmul.f32 1.442695, %v3145_v27  ;;  %7202 = vmatprep.subr.mxu0 %v3164_v7  ;;  %v3577_v24 = vrot.slane %v8865_v58, %v8078_v5 }
0x15db   :  { %7203 = vmatpush3.msra.mxu0 %v3164_v7 }
0x15dc   :  { %7622 = vpow2.f32 %v3147_v52  ;;  %vm9037_vm12 = vcmp.eq.s32.totalorder %v3577_v24, 1 }
0x15dd   :  { %v3255_v13 = vpop.permute.xlu1 %3254 }
0x15e7   :  { %v7621_v28 = vpop.eup %7620 }
0x15e8   :  { %v3154_v44 = vsel %vm2734_vm11, %v7621_v28, 0.0 }
0x15e9   :  { %v7623_v3 = vpop.eup %7622  ;;  %3155 = vadd.xlane.f32.xlu0 %v3154_v44 }
0x15ea   :  { %v3151_v47 = vsel %vm2734_vm11, %v7623_v3, 0.0 }
0x15ed   :  { %3152 = vadd.xlane.f32.xlu0 %v3151_v47 }
0x1603   :  { %3161 = vrot.lane.b32.xlu0 %v8791_v49, %s7834_s24 }
0x1607   :  { %3248 = vrot.lane.b32.xlu0 %v8798_v56, %s7836_s6  ;;  %v3253_v56 = vpop.permute.xlu1 %3252 }
0x160b   :  { %v3251_v4 = vpop.permute.xlu1 %3250 }
0x1672   :  { %v3156_v53 = vpop.xlane.xlu0 %3155 }
0x1673   :  { %7624 = vrcp.f32 %v3156_v53 }
0x1676   :  { %v3153_v18 = vpop.xlane.xlu0 %3152 }
0x1677   :  { %7626 = vrcp.f32 %v3153_v18 }
0x167a   :  { %v3162_v50 = vpop.permute.xlu0 %3161 }
0x167b   :  { %7204 = vmatprep.subr.mxu0 %v3162_v50 }
0x167c   :  { %7205 = vmatpush3.msra.mxu0 %v3162_v50 }
0x167d   :  { %7209 = vmatprep.subr.msk.mxu0 %vm2639_vm8, %v3255_v13 }
0x167e   :  { %v3249_v61 = vpop.permute.xlu0 %3248 }
0x1680   :  { %v7625_v15 = vpop.eup %7624 }
0x1681   :  { %v3160_v9 = vmul.f32 %v7625_v15, %v7621_v28 }
0x1684   :  { %v7627_v17 = vpop.eup %7626 }
0x1685   :  { %v3159_v57 = vmul.f32 %v7627_v17, %v7623_v3 }
0x1687   :  { %7206 = vmatprep.mubr.msk.f32.mxu0 %vm2734_vm11, %v3159_v57 }
0x1688   :  { %7207 = vmatmul.mubr.msk.f32.vlgmr.msra.gmra.mxu0 %vm2734_vm11, %v3160_v9 }
0x1689   :  { %7210 = vmatpush3.xpose.msk.msra.mxu0 %vm2639_vm8, %v3255_v13  ;;  %7213 = vmatprep.mubr.msk.f32.mxu0 %vm2639_vm8, %v3249_v61 }
0x168a   :  { %7211 = vmatprep.subr.msk.mxu0 %vm2639_vm8, %v3253_v56 }
0x168d   :  { %7212 = vmatpush3.xpose.msk.msra.mxu0 %vm2639_vm8, %v3253_v56 }
0x1690   :  { %7214 = vmatmul.mubr.msk.f32.vlgmr.msra.gmra.mxu0 %vm2639_vm8, %v3251_v4 }
0x1748   :  { %v8995_v54 = vpop.f32.mrf.mxu0 }
0x174a   :  { %v8997_v60 = vpop.f32.mrf.mxu0 }
0x1750   :  { %v7215_v42 = vpop.f32.mrf.mxu0 }
0x1751   :  { %v3340_v45 = vsel %vm8871_vm10, %v7215_v42, -1e+30 }
0x1752   :  { %v3344_v0 = vsel %vm2734_vm11, %v3340_v45, -inf  ;;  %v3330_v19 = vpop.f32.mrf.mxu0 }
0x1753   :  { %v3339_v39 = vsel %vm8871_vm10, %v3330_v19, -1e+30  ;;  %3345 = vmax.xlane.f32.xlu1 %v3344_v0 }
0x1754   :  { %v3341_v62 = vsel %vm2734_vm11, %v3339_v39, -inf }
0x1755   :  { %3342 = vmax.xlane.f32.xlu0 %v3341_v62 }
0x1764   :  { %3365 = vrot.lane.b32.xlu1 %v8787_v41, %s7837_s20 }
0x1768   :  { %3487 = vrot.lane.b32.xlu1 %v8955_v37, %s7826_s5 }
0x176c   :  { %3485 = vrot.lane.b32.xlu1 %v8957_v1, %s7826_s5 }
0x17dc   :  { %v3346_v2 = vpop.xlane.xlu1 %3345 }
0x17dd   :  { %v3348_v48 = vsub.f32 %v3340_v45, %v3346_v2 }
0x17de   :  { %v3343_v46 = vpop.xlane.xlu0 %3342 }
0x17df   :  { %v3351_v21 = vmul.f32 1.442695, %v3348_v48  ;;  %v3347_v26 = vsub.f32 %v3339_v39, %v3343_v46 }
0x17e0   :  { %v3366_v51 = vpop.permute.xlu1 %3365 }
0x17e1   :  { %7628 = vpow2.f32 %v3351_v21  ;;  %v3349_v30 = vmul.f32 1.442695, %v3347_v26  ;;  %7216 = vmatprep.subr.mxu1 %v3366_v51 }
0x17e2   :  { %7217 = vmatpush3.msra.mxu1 %v3366_v51 }
0x17e3   :  { %7630 = vpow2.f32 %v3349_v30 }
0x17e4   :  { %v3488_v29 = vpop.permute.xlu1 %3487 }
0x17ee   :  { %v7629_v43 = vpop.eup %7628 }
0x17ef   :  { %v3356_v41 = vsel %vm2734_vm11, %v7629_v43, 0.0 }
0x17f0   :  { %v7631_v33 = vpop.eup %7630  ;;  %3357 = vadd.xlane.f32.xlu0 %v3356_v41 }
0x17f1   :  { %v3353_v12 = vsel %vm2734_vm11, %v7631_v33, 0.0 }
0x17f4   :  { %3354 = vadd.xlane.f32.xlu0 %v3353_v12 }
0x180a   :  { %3363 = vrot.lane.b32.xlu0 %v8791_v49, %s7837_s20  ;;  %v3486_v49 = vpop.permute.xlu1 %3485 }
0x1879   :  { %v3358_v38 = vpop.xlane.xlu0 %3357 }
0x187a   :  { %7632 = vrcp.f32 %v3358_v38 }
0x187d   :  { %v3355_v59 = vpop.xlane.xlu0 %3354 }
0x187e   :  { %7634 = vrcp.f32 %v3355_v59 }
0x1881   :  { %v3364_v63 = vpop.permute.xlu0 %3363 }
0x1882   :  { %7218 = vmatprep.subr.mxu1 %v3364_v63 }
0x1883   :  { %7219 = vmatpush3.msra.mxu1 %v3364_v63 }
0x1884   :  { %7223 = vmatprep.subr.msk.mxu1 %vm2639_vm8, %v3488_v29 }
0x1887   :  { %v7633_v6 = vpop.eup %7632 }
0x1888   :  { %v3362_v35 = vmul.f32 %v7633_v6, %v7629_v43 }
0x188b   :  { %v7635_v11 = vpop.eup %7634 }
0x188c   :  { %v3361_v40 = vmul.f32 %v7635_v11, %v7631_v33 }
0x188e   :  { %7220 = vmatprep.mubr.msk.f32.mxu1 %vm2734_vm11, %v3361_v40 }
0x188f   :  { %7221 = vmatmul.mubr.msk.f32.vlgmr.msra.gmra.mxu1 %vm2734_vm11, %v3362_v35 }
0x1890   :  { %7224 = vmatpush3.xpose.msk.msra.mxu1 %vm2639_vm8, %v3488_v29  ;;  %7227 = vmatprep.mubr.msk.f32.mxu1 %vm2639_vm8, %v9018_v22 }
0x1891   :  { %7225 = vmatprep.subr.msk.mxu1 %vm2639_vm8, %v3486_v49 }
0x1894   :  { %7226 = vmatpush3.xpose.msk.msra.mxu1 %vm2639_vm8, %v3486_v49 }
0x1897   :  { %7228 = vmatmul.mubr.msk.f32.vlgmr.msra.gmra.mxu1 %vm2639_vm8, %v9027_v20 }
0x194f   :  { %v9031_v8 = vpop.f32.mrf.mxu1 }
0x1951   :  { %v9035_v27 = vpop.f32.mrf.mxu1 }
0x1957   :  { %v7229_v52 = vpop.f32.mrf.mxu1 }
0x1958   :  { %v3580_v28 = vsel %vm9037_vm12, %v7229_v52, -1e+30 }
0x1959   :  { %v3584_v44 = vsel %vm2734_vm11, %v3580_v28, -inf  ;;  %v3565_v3 = vpop.f32.mrf.mxu1 }
0x195a   :  { %v3579_v47 = vsel %vm9037_vm12, %v3565_v3, -1e+30  ;;  %3585 = vmax.xlane.f32.xlu1 %v3584_v44 }
0x195b   :  { %v3581_v53 = vsel %vm2734_vm11, %v3579_v47, -inf }
0x195c   :  { %3582 = vmax.xlane.f32.xlu0 %v3581_v53 }
0x196b   :  { %3605 = vrot.lane.b32.xlu1 %v8955_v37, %s7830_s3 }
0x196f   :  { %3696 = vrot.lane.b32.xlu1 %v8955_v37, %s7827_s9 }
0x1973   :  { %3694 = vrot.lane.b32.xlu1 %v8957_v1, %s7827_s9  ;;  %s9663_s9 = sld [smem:[#allocation22_spill]] }
0x1977   :  { %3692 = vrot.lane.b32.xlu1 %v9027_v20, %s7828_s25 }
0x19e3   :  { %v3586_v5 = vpop.xlane.xlu1 %3585 }
0x19e4   :  { %v3588_v58 = vsub.f32 %v3580_v28, %v3586_v5 }
0x19e5   :  { %v3583_v18 = vpop.xlane.xlu0 %3582 }
0x19e6   :  { %v3591_v50 = vmul.f32 1.442695, %v3588_v58  ;;  %v3587_v13 = vsub.f32 %v3579_v47, %v3583_v18 }
0x19e7   :  { %v3606_v15 = vpop.permute.xlu1 %3605 }
0x19e8   :  { %7636 = vpow2.f32 %v3591_v50  ;;  %v3589_v17 = vmul.f32 1.442695, %v3587_v13  ;;  %7230 = vmatprep.subr.mxu0 %v3606_v15 }
0x19e9   :  { %7231 = vmatpush3.msra.mxu0 %v3606_v15 }
0x19ea   :  { %7638 = vpow2.f32 %v3589_v17 }
0x19eb   :  { %v3697_v0 = vpop.permute.xlu1 %3696 }
0x19ef   :  { %v3695_v46 = vpop.permute.xlu1 %3694 }
0x19f3   :  { %v3693_v21 = vpop.permute.xlu1 %3692 }
0x19f5   :  { %v7637_v57 = vpop.eup %7636 }
0x19f6   :  { %v3596_v9 = vsel %vm2734_vm11, %v7637_v57, 0.0 }
0x19f7   :  { %v7639_v61 = vpop.eup %7638  ;;  %3597 = vadd.xlane.f32.xlu0 %v3596_v9 }
0x19f8   :  { %v3593_v56 = vsel %vm2734_vm11, %v7639_v61, 0.0 }
0x19fb   :  { %3594 = vadd.xlane.f32.xlu0 %v3593_v56 }
0x1a11   :  { %3603 = vrot.lane.b32.xlu0 %v8957_v1, %s7830_s3 }
0x1a15   :  { %3690 = vrot.lane.b32.xlu0 %v9018_v22, %s7828_s25 }
0x1a80   :  { %v3598_v4 = vpop.xlane.xlu0 %3597 }
0x1a81   :  { %7640 = vrcp.f32 %v3598_v4 }
0x1a84   :  { %v3595_v42 = vpop.xlane.xlu0 %3594 }
0x1a85   :  { %7642 = vrcp.f32 %v3595_v42 }
0x1a88   :  { %v3604_v45 = vpop.permute.xlu0 %3603 }
0x1a89   :  { %7232 = vmatprep.subr.mxu0 %v3604_v45 }
0x1a8a   :  { %7233 = vmatpush3.msra.mxu0 %v3604_v45 }
0x1a8b   :  { %7237 = vmatprep.subr.msk.mxu0 %vm2639_vm8, %v3697_v0 }
0x1a8c   :  { %v3691_v48 = vpop.permute.xlu0 %3690 }
0x1a8e   :  { %v7641_v19 = vpop.eup %7640 }
0x1a8f   :  { %v3602_v2 = vmul.f32 %v7641_v19, %v7637_v57 }
0x1a92   :  { %v7643_v39 = vpop.eup %7642 }
0x1a93   :  { %v3601_v62 = vmul.f32 %v7643_v39, %v7639_v61 }
0x1a95   :  { %7234 = vmatprep.mubr.msk.f32.mxu0 %vm2734_vm11, %v3601_v62 }
0x1a96   :  { %7235 = vmatmul.mubr.msk.f32.vlgmr.msra.gmra.mxu0 %vm2734_vm11, %v3602_v2 }
0x1a97   :  { %7238 = vmatpush3.xpose.msk.msra.mxu0 %vm2639_vm8, %v3697_v0  ;;  %7241 = vmatprep.mubr.msk.f32.mxu0 %vm2639_vm8, %v3691_v48 }
0x1a98   :  { %7239 = vmatprep.subr.msk.mxu0 %vm2639_vm8, %v3695_v46 }
0x1a9b   :  { %7240 = vmatpush3.xpose.msk.msra.mxu0 %vm2639_vm8, %v3695_v46 }
0x1a9e   :  { %7242 = vmatmul.mubr.msk.f32.vlgmr.msra.gmra.mxu0 %vm2639_vm8, %v3693_v21 }
0x1b56   :  { %v9069_v26 = vpop.f32.mrf.mxu0 }
0x1b58   :  { %v9071_v51 = vpop.f32.mrf.mxu0 }
0x1b5e   :  { %v7243_v30 = vpop.f32.mrf.mxu0 }
0x1b5f   :  { %v3782_v43 = vsel %vm9037_vm12, %v7243_v30, -1e+30 }
0x1b60   :  { %v3786_v41 = vsel %vm2734_vm11, %v3782_v43, -inf  ;;  %v3772_v33 = vpop.f32.mrf.mxu0 }
0x1b61   :  { %v3781_v12 = vsel %vm9037_vm12, %v3772_v33, -1e+30  ;;  %3787 = vmax.xlane.f32.xlu1 %v3786_v41 }
0x1b62   :  { %v3783_v38 = vsel %vm2734_vm11, %v3781_v12, -inf }
0x1b63   :  { %3784 = vmax.xlane.f32.xlu0 %v3783_v38 }
0x1b72   :  { %3807 = vrot.lane.b32.xlu1 %v8955_v37, %s7831_s8 }
0x1b76   :  { %3898 = vrot.lane.b32.xlu1 %v8955_v37, %s7832_s14 }
0x1b7a   :  { %3896 = vrot.lane.b32.xlu1 %v8957_v1, %s7832_s14 }
0x1b7e   :  { %3894 = vrot.lane.b32.xlu1 %v9027_v20, %s7833_s19 }
0x1bea   :  { %v3788_v59 = vpop.xlane.xlu1 %3787 }
0x1beb   :  { %v3790_v63 = vsub.f32 %v3782_v43, %v3788_v59 }
0x1bec   :  { %v3785_v29 = vpop.xlane.xlu0 %3784 }
0x1bed   :  { %v3793_v6 = vmul.f32 1.442695, %v3790_v63  ;;  %v3789_v11 = vsub.f32 %v3781_v12, %v3785_v29 }
0x1bee   :  { %v3808_v40 = vpop.permute.xlu1 %3807 }
0x1bef   :  { %7644 = vpow2.f32 %v3793_v6  ;;  %v3791_v35 = vmul.f32 1.442695, %v3789_v11  ;;  %7244 = vmatprep.subr.mxu1 %v3808_v40 }
0x1bf0   :  { %7245 = vmatpush3.msra.mxu1 %v3808_v40 }
0x1bf1   :  { %7646 = vpow2.f32 %v3791_v35 }
0x1bf2   :  { %v3899_v53 = vpop.permute.xlu1 %3898 }
0x1bf6   :  { %v3897_v15 = vpop.permute.xlu1 %3896 }
0x1bfa   :  { %v3895_v17 = vpop.permute.xlu1 %3894 }
0x1bfc   :  { %v7645_v49 = vpop.eup %7644 }
0x1bfd   :  { %v3798_v24 = vsel %vm2734_vm11, %v7645_v49, 0.0 }
0x1bfe   :  { %v7647_v52 = vpop.eup %7646  ;;  %3799 = vadd.xlane.f32.xlu0 %v3798_v24 }
0x1bff   :  { %v3795_v28 = vsel %vm2734_vm11, %v7647_v52, 0.0 }
0x1c02   :  { %3796 = vadd.xlane.f32.xlu0 %v3795_v28 }
0x1c18   :  { %3805 = vrot.lane.b32.xlu0 %v8957_v1, %s7831_s8 }
0x1c1c   :  { %3892 = vrot.lane.b32.xlu0 %v9018_v22, %s7833_s19 }
0x1c87   :  { %v3800_v44 = vpop.xlane.xlu0 %3799 }
0x1c88   :  { %7648 = vrcp.f32 %v3800_v44 }
0x1c8b   :  { %v3797_v3 = vpop.xlane.xlu0 %3796 }
0x1c8c   :  { %7650 = vrcp.f32 %v3797_v3 }
0x1c8f   :  { %v3806_v47 = vpop.permute.xlu0 %3805 }
0x1c90   :  { %7246 = vmatprep.subr.mxu1 %v3806_v47 }
0x1c91   :  { %7247 = vmatpush3.msra.mxu1 %v3806_v47 }
0x1c92   :  { %7251 = vmatprep.subr.msk.mxu1 %vm2639_vm8, %v3899_v53 }
0x1c93   :  { %v3893_v13 = vpop.permute.xlu0 %3892 }
0x1c95   :  { %v7649_v5 = vpop.eup %7648 }
0x1c96   :  { %v3804_v50 = vmul.f32 %v7649_v5, %v7645_v49 }
0x1c99   :  { %v7651_v58 = vpop.eup %7650 }
0x1c9a   :  { %v3803_v18 = vmul.f32 %v7651_v58, %v7647_v52 }
0x1c9c   :  { %7248 = vmatprep.mubr.msk.f32.mxu1 %vm2734_vm11, %v3803_v18 }
0x1c9d   :  { %7249 = vmatmul.mubr.msk.f32.vlgmr.msra.gmra.mxu1 %vm2734_vm11, %v3804_v50 }
0x1c9e   :  { %7252 = vmatpush3.xpose.msk.msra.mxu1 %vm2639_vm8, %v3899_v53  ;;  %7255 = vmatprep.mubr.msk.f32.mxu1 %vm2639_vm8, %v3893_v13 }
0x1c9f   :  { %7253 = vmatprep.subr.msk.mxu1 %vm2639_vm8, %v3897_v15 }
0x1ca2   :  { %7254 = vmatpush3.xpose.msk.msra.mxu1 %vm2639_vm8, %v3897_v15 }
0x1ca5   :  { %7256 = vmatmul.mubr.msk.f32.vlgmr.msra.gmra.mxu1 %vm2639_vm8, %v3895_v17 }
0x1d5d   :  { %v9101_v57 = vpop.f32.mrf.mxu1 }
0x1d5f   :  { %v9103_v9 = vpop.f32.mrf.mxu1 }
0x1d65   :  { %v7257_v61 = vpop.f32.mrf.mxu1 }
0x1d66   :  { %v3984_v56 = vsel %vm9037_vm12, %v7257_v61, -1e+30 }
0x1d67   :  { %v3988_v4 = vsel %vm2734_vm11, %v3984_v56, -inf  ;;  %v3974_v42 = vpop.f32.mrf.mxu1 }
0x1d68   :  { %v3983_v45 = vsel %vm9037_vm12, %v3974_v42, -1e+30  ;;  %3989 = vmax.xlane.f32.xlu1 %v3988_v4 }
0x1d69   :  { %v3985_v0 = vsel %vm2734_vm11, %v3983_v45, -inf }
0x1d6a   :  { %3986 = vmax.xlane.f32.xlu0 %v3985_v0 }
0x1d79   :  { %4009 = vrot.lane.b32.xlu1 %v8955_v37, %s7834_s24 }
0x1d7d   :  { %4100 = vrot.lane.b32.xlu1 %v8955_v37, %s7835_s30 }
0x1d81   :  { %4098 = vrot.lane.b32.xlu1 %v8957_v1, %s7835_s30 }
0x1d85   :  { %4096 = vrot.lane.b32.xlu1 %v9027_v20, %s7836_s6 }
0x1df1   :  { %v3990_v19 = vpop.xlane.xlu1 %3989 }
0x1df2   :  { %v3992_v39 = vsub.f32 %v3984_v56, %v3990_v19 }
0x1df3   :  { %v3987_v62 = vpop.xlane.xlu0 %3986 }
0x1df4   :  { %v3995_v2 = vmul.f32 1.442695, %v3992_v39  ;;  %v3991_v48 = vsub.f32 %v3983_v45, %v3987_v62 }
0x1df5   :  { %v4010_v46 = vpop.permute.xlu1 %4009 }
0x1df6   :  { %7652 = vpow2.f32 %v3995_v2  ;;  %v3993_v21 = vmul.f32 1.442695, %v3991_v48  ;;  %7258 = vmatprep.subr.mxu0 %v4010_v46 }
0x1df7   :  { %7259 = vmatpush3.msra.mxu0 %v4010_v46 }
0x1df8   :  { %7654 = vpow2.f32 %v3993_v21 }
0x1df9   :  { %v4101_v59 = vpop.permute.xlu1 %4100 }
0x1e03   :  { %v7653_v30 = vpop.eup %7652 }
0x1e04   :  { %v4000_v43 = vsel %vm2734_vm11, %v7653_v30, 0.0 }
0x1e05   :  { %v7655_v41 = vpop.eup %7654  ;;  %4001 = vadd.xlane.f32.xlu0 %v4000_v43 }
0x1e06   :  { %v3997_v33 = vsel %vm2734_vm11, %v7655_v41, 0.0 }
0x1e09   :  { %3998 = vadd.xlane.f32.xlu0 %v3997_v33 }
0x1e1f   :  { %4007 = vrot.lane.b32.xlu0 %v8957_v1, %s7834_s24 }
0x1e23   :  { %4094 = vrot.lane.b32.xlu0 %v9018_v22, %s7836_s6  ;;  %v4099_v22 = vpop.permute.xlu1 %4098 }
0x1e27   :  { %v4097_v35 = vpop.permute.xlu1 %4096 }
0x1e8e   :  { %v4002_v20 = vpop.xlane.xlu0 %4001 }
0x1e8f   :  { %7656 = vrcp.f32 %v4002_v20 }
0x1e92   :  { %v3999_v12 = vpop.xlane.xlu0 %3998 }
0x1e93   :  { %7658 = vrcp.f32 %v3999_v12 }
0x1e96   :  { %v4008_v38 = vpop.permute.xlu0 %4007 }
0x1e97   :  { %7260 = vmatprep.subr.mxu0 %v4008_v38 }
0x1e98   :  { %7261 = vmatpush3.msra.mxu0 %v4008_v38 }
0x1e99   :  { %7265 = vmatprep.subr.msk.mxu0 %vm2639_vm8, %v4101_v59 }
0x1e9a   :  { %v4095_v40 = vpop.permute.xlu0 %4094 }
0x1e9c   :  { %v7657_v63 = vpop.eup %7656 }
0x1e9d   :  { %v4006_v11 = vmul.f32 %v7657_v63, %v7653_v30 }
0x1ea0   :  { %v7659_v29 = vpop.eup %7658 }
0x1ea1   :  { %v4005_v6 = vmul.f32 %v7659_v29, %v7655_v41 }
0x1ea3   :  { %7262 = vmatprep.mubr.msk.f32.mxu0 %vm2734_vm11, %v4005_v6 }
0x1ea4   :  { %7263 = vmatmul.mubr.msk.f32.vlgmr.msra.gmra.mxu0 %vm2734_vm11, %v4006_v11 }
0x1ea5   :  { %7266 = vmatpush3.xpose.msk.msra.mxu0 %vm2639_vm8, %v4101_v59  ;;  %7269 = vmatprep.mubr.msk.f32.mxu0 %vm2639_vm8, %v4095_v40 }
0x1ea6   :  { %7267 = vmatprep.subr.msk.mxu0 %vm2639_vm8, %v4099_v22 }
0x1ea9   :  { %7268 = vmatpush3.xpose.msk.msra.mxu0 %vm2639_vm8, %v4099_v22 }
0x1eac   :  { %7270 = vmatmul.mubr.msk.f32.vlgmr.msra.gmra.mxu0 %vm2639_vm8, %v4097_v35 }
0x1f64   :  { %v7264_v49 = vpop.f32.mrf.mxu0 }
0x1f66   :  { %v4085_v24 = vpop.f32.mrf.mxu0 }
0x1f6c   :  { %v7271_v52 = vpop.f32.mrf.mxu0 }
0x1f6d   :  { %v4186_v28 = vsel %vm9037_vm12, %v7271_v52, -1e+30 }
0x1f6e   :  { %v4190_v44 = vsel %vm2734_vm11, %v4186_v28, -inf  ;;  %v4176_v3 = vpop.f32.mrf.mxu0 }
0x1f6f   :  { %v4185_v47 = vsel %vm9037_vm12, %v4176_v3, -1e+30  ;;  %4191 = vmax.xlane.f32.xlu1 %v4190_v44 }
0x1f70   :  { %v4187_v53 = vsel %vm2734_vm11, %v4185_v47, -inf }
0x1f71   :  { %4188 = vmax.xlane.f32.xlu0 %v4187_v53 }
0x1f80   :  { %4211 = vrot.lane.b32.xlu1 %v8955_v37, %s7837_s20 }
0x1f84   :  { %3452 = vrot.lane.b32.xlu1 %v8965_v55, %s7838_s1 }
0x1f88   :  { %3454 = vrot.lane.b32.xlu1 %v8963_v16, %s7838_s1 }
0x1f8c   :  { %3462 = vrot.lane.b32.xlu1 %v8995_v54, %s7839_s28 }
0x1f90   :  { %3470 = vrot.lane.b32.xlu1 %v9031_v8, %s7840_s2 }
0x1f94   :  { %4300 = vrot.lane.b32.xlu1 %v9101_v57, %s7838_s1 }
0x1f98   :  { %4308 = vrot.lane.b32.xlu1 %v7264_v49, %s7839_s28 }
0x1ff8   :  { %v4192_v5 = vpop.xlane.xlu1 %4191 }
0x1ff9   :  { %v4194_v37 = vsub.f32 %v4186_v28, %v4192_v5 }
0x1ffa   :  { %v4189_v58 = vpop.xlane.xlu0 %4188 }
0x1ffb   :  { %v4197_v18 = vmul.f32 1.442695, %v4194_v37  ;;  %v4193_v50 = vsub.f32 %v4185_v47, %v4189_v58  ;;  %v4407_v37 = vld [vmem:[%s9652_s10 + $0x18] sm:$0xff]  ;;  %v4406_v58 = vld [vmem:[%s9652_s10 + $0x10] sm:$0xff] }
0x1ffc   :  { %v4212_v55 = vpop.permute.xlu1 %4211 }
0x1ffd   :  { %7660 = vpow2.f32 %v4197_v18  ;;  %v4195_v13 = vmul.f32 1.442695, %v4193_v50  ;;  %7272 = vmatprep.subr.mxu1 %v4212_v55  ;;  %v4405_v18 = vld [vmem:[%s9652_s10 + $0x8] sm:$0xff]  ;;  %v4404_v50 = vld [vmem:[%s9652_s10] sm:$0xff] }
0x1ffe   :  { %7273 = vmatpush3.msra.mxu1 %v4212_v55 }
0x1fff   :  { %7662 = vpow2.f32 %v4195_v13 }
0x200a   :  { %v7661_v16 = vpop.eup %7660 }
0x200b   :  { %v4202_v54 = vsel %vm2734_vm11, %v7661_v16, 0.0 }
0x200c   :  { %v7663_v15 = vpop.eup %7662  ;;  %4203 = vadd.xlane.f32.xlu0 %v4202_v54 }
0x200d   :  { %v4199_v8 = vsel %vm2734_vm11, %v7663_v15, 0.0 }
0x2010   :  { %4200 = vadd.xlane.f32.xlu0 %v4199_v8 }
0x2026   :  { %4209 = vrot.lane.b32.xlu0 %v8957_v1, %s7837_s20 }
0x202a   :  { %3460 = vrot.lane.b32.xlu0 %v8997_v60, %s7839_s28 }
0x202e   :  { %3468 = vrot.lane.b32.xlu0 %v9035_v27, %s7840_s2 }
0x2032   :  { %4298 = vrot.lane.b32.xlu0 %v9103_v9, %s7838_s1  ;;  %v3453_v9 = vpop.permute.xlu1 %3452 }
0x2033   :  { %v3474_v62 = vsel %vm2639_vm8, %v8961_v31, %v3453_v9 }
0x2036   :  { %4306 = vrot.lane.b32.xlu0 %v4085_v24, %s7839_s28  ;;  %v3455_v45 = vpop.permute.xlu1 %3454 }
0x2037   :  { %v3475_v21 = vsel %vm2639_vm8, %v8959_v34, %v3455_v45 }
0x203a   :  { %v3463_v19 = vpop.permute.xlu1 %3462 }
0x203b   :  { %v3477_v30 = vsel %vm2734_vm11, %v3475_v21, %v3463_v19 }
0x203e   :  { %v3471_v48 = vpop.permute.xlu1 %3470 }
0x203f   :  { %v3480_v43 = vsel %vm3478_vm13, %v3477_v30, %v3471_v48 }
0x2040   :  { %v9175_v33 = vadd.f32 %v3480_v43, %v8701_v14 }
0x2042   :  { %v4335_v20 = vsel %vm257_vm1, %v9175_v33, 0.0  ;;  %v4301_v12 = vpop.permute.xlu1 %4300 }
0x2046   :  { %v4309_v38 = vpop.permute.xlu1 %4308 }
0x2095   :  { %v4204_v17 = vpop.xlane.xlu0 %4203 }
0x2096   :  { %7664 = vrcp.f32 %v4204_v17 }
0x2099   :  { %v4201_v57 = vpop.xlane.xlu0 %4200 }
0x209a   :  { %7666 = vrcp.f32 %v4201_v57 }
0x209d   :  { %v4210_v61 = vpop.permute.xlu0 %4209 }
0x209e   :  { %7274 = vmatprep.subr.mxu1 %v4210_v61 }
0x209f   :  { %7275 = vmatpush3.msra.mxu1 %v4210_v61 }
0x20a0   :  { %7279 = vmatprep.subr.mxu1 %v4407_v37 }
0x20a1   :  { %v3461_v0 = vpop.permute.xlu0 %3460 }
0x20a2   :  { %v3476_v2 = vsel %vm2734_vm11, %v3474_v62, %v3461_v0  ;;  %v6720_v0 = vld [vmem:[%s9653_s7] ss:$0 sm:$0xff] }
0x20a3   :  { %v7665_v56 = vpop.eup %7664 }
0x20a4   :  { %v4208_v1 = vmul.f32 %v7665_v56, %v7661_v16 }
0x20a5   :  { %v3469_v39 = vpop.permute.xlu0 %3468 }
0x20a6   :  { %v3479_v46 = vsel %vm3478_vm13, %v3476_v2, %v3469_v39  ;;  %v6721_v39 = vld [vmem:[%s9654_s11] ss:$0 sm:$0xff] }
0x20a7   :  { %v7667_v4 = vpop.eup %7666  ;;  %v9172_v41 = vadd.f32 %v3479_v46, %v8704_v25  ;;  %v4321_v25 = vsel %vm2639_vm8, %v9069_v26, %v4301_v12 }
0x20a8   :  { %v4207_v42 = vmul.f32 %v7667_v4, %v7663_v15  ;;  %v4323_v29 = vsel %vm2734_vm11, %v4321_v25, %v4309_v38  ;;  %v4517_v25 = vld [vmem:[%s9655_s16 + $0x8] sm:$0xff] }
0x20a9   :  { %v4332_v31 = vsel %vm257_vm1, %v9172_v41, 0.0  ;;  %v4299_v34 = vpop.permute.xlu0 %4298 }
0x20aa   :  { %7276 = vmatprep.mubr.msk.f32.mxu1 %vm2734_vm11, %v4207_v42  ;;  %v4320_v14 = vsel %vm2639_vm8, %v9071_v51, %v4299_v34  ;;  %v4519_v34 = vld [vmem:[%s9655_s16 + $0x18] sm:$0xff] }
0x20ab   :  { %7277 = vmatmul.mubr.msk.f32.vlgmr.msra.gmra.mxu1 %vm2734_vm11, %v4208_v1  ;;  %7293 = vmatprep.subr.mxu0 %v4519_v34 }
0x20ac   :  { %7280 = vmatpush3.msra.mxu1 %v4407_v37  ;;  %7294 = vmatpush3.msra.mxu0 %v4519_v34  ;;  %v4642_v37 = vld [vmem:[%s9656_s15 + $0x28] sm:$0xff] }
0x20ad   :  { %v4307_v59 = vpop.permute.xlu0 %4306  ;;  %7281 = vmatprep.subr.mxu1 %v4406_v58 }
0x20ae   :  { %v4322_v6 = vsel %vm2734_vm11, %v4320_v14, %v4307_v59  ;;  %7282 = vmatpush3.msra.mxu1 %v4406_v58  ;;  %v4518_v59 = vld [vmem:[%s9655_s16 + $0x10] sm:$0xff]  ;;  %v4516_v14 = vld [vmem:[%s9655_s16] sm:$0xff] }
0x20af   :  { %7283 = vmatprep.subr.mxu1 %v4405_v18  ;;  %7295 = vmatprep.subr.mxu0 %v4518_v59  ;;  %v4641_v58 = vld [vmem:[%s9656_s15 + $0x20] sm:$0xff] }
0x20b0   :  { %7284 = vmatpush3.msra.mxu1 %v4405_v18  ;;  %7296 = vmatpush3.msra.mxu0 %v4518_v59  ;;  %v4640_v18 = vld [vmem:[%s9656_s15 + $0x18] sm:$0xff] }
0x20b1   :  { %7285 = vmatprep.subr.mxu1 %v4404_v50  ;;  %7297 = vmatprep.subr.mxu0 %v4517_v25 }
0x20b2   :  { %7286 = vmatpush3.msra.mxu1 %v4404_v50  ;;  %7298 = vmatpush3.msra.mxu0 %v4517_v25  ;;  %v4639_v50 = vld [vmem:[%s9656_s15 + $0x10] sm:$0xff] }
0x20b3   :  { %7299 = vmatprep.subr.mxu0 %v4516_v14 }
0x20b4   :  { %7300 = vmatpush3.msra.mxu0 %v4516_v14 }
0x216b   :  { %v7278_v60 = vpop.f32.mrf.mxu1 }
0x216c   :  { %4316 = vrot.lane.b32.xlu1 %v7278_v60, %s7840_s2 }
0x216d   :  { %v4287_v27 = vpop.f32.mrf.mxu1 }
0x216e   :  { %4314 = vrot.lane.b32.xlu0 %v4287_v27, %s7840_s2 }
0x218d   :  { %4333 = vadd.xlane.f32.xlu0 %v4332_v31 }
0x2190   :  { %4336 = vadd.xlane.f32.xlu1 %v4335_v20 }
0x21de   :  { %v4317_v63 = vpop.permute.xlu1 %4316 }
0x21df   :  { %v4325_v40 = vsel %vm3478_vm13, %v4323_v29, %v4317_v63  ;;  %v4644_v29 = vld [vmem:[%s9656_s15 + $0x38] sm:$0xff] }
0x21e0   :  { %v4315_v11 = vpop.permute.xlu0 %4314  ;;  %v9193_v49 = vadd.f32 %v4325_v40, %v8882_v10  ;;  %7307 = vmatprep.subr.mxu0 %v4644_v29 }
0x21e1   :  { %v4324_v22 = vsel %vm3478_vm13, %v4322_v6, %v4315_v11 }
0x21e2   :  { %v9190_v35 = vadd.f32 %v4324_v22, %v8876_v23  ;;  %v4341_v51 = vsel %vm257_vm1, %v9193_v49, 0.0 }
0x21e4   :  { %v4338_v26 = vsel %vm257_vm1, %v9190_v35, 0.0 }
0x21e5   :  { %4339 = vadd.xlane.f32.xlu0 %v4338_v26 }
0x21e9   :  { %4342 = vadd.xlane.f32.xlu0 %v4341_v51 }
0x2216   :  { %v4334_v24 = vpop.xlane.xlu0 %4333 }
0x2217   :  { %v4344_v52 = vmul.f32 0.03125, %v4334_v24 }
0x2219   :  { %v4348_v28 = vsub.f32 %v9172_v41, %v4344_v52  ;;  %v4337_v23 = vpop.xlane.xlu1 %4336 }
0x221a   :  { %v4345_v44 = vmul.f32 0.03125, %v4337_v23 }
0x221b   :  { %v4352_v10 = vmul.f32 %v4348_v28, %v4348_v28 }
0x221c   :  { %v4349_v3 = vsub.f32 %v9175_v33, %v4345_v44 }
0x221d   :  { %v4356_v47 = vsel %vm257_vm1, %v4352_v10, 0.0 }
0x221e   :  { %4357 = vadd.xlane.f32.xlu1 %v4356_v47  ;;  %v4353_v53 = vmul.f32 %v4349_v3, %v4349_v3 }
0x2220   :  { %v4359_v5 = vsel %vm257_vm1, %v4353_v53, 0.0 }
0x2221   :  { %4360 = vadd.xlane.f32.xlu0 %v4359_v5  ;;  %v4643_v5 = vld [vmem:[%s9656_s15 + $0x30] sm:$0xff] }
0x226e   :  { %v4340_v55 = vpop.xlane.xlu0 %4339 }
0x226f   :  { %v4346_v13 = vmul.f32 0.03125, %v4340_v55  ;;  %v4638_v55 = vld [vmem:[%s9656_s15 + $0x8] sm:$0xff] }
0x2271   :  { %v4350_v16 = vsub.f32 %v9190_v35, %v4346_v13  ;;  %v4637_v13 = vld [vmem:[%s9656_s15] sm:$0xff] }
0x2272   :  { %v4343_v54 = vpop.xlane.xlu0 %4342 }
0x2273   :  { %v4347_v15 = vmul.f32 0.03125, %v4343_v54  ;;  %v4354_v8 = vmul.f32 %v4350_v16, %v4350_v16 }
0x2275   :  { %v4351_v17 = vsub.f32 %v9193_v49, %v4347_v15  ;;  %v4362_v57 = vsel %vm257_vm1, %v4354_v8, 0.0 }
0x2276   :  { %4363 = vadd.xlane.f32.xlu1 %v4362_v57 }
0x2277   :  { %v4355_v61 = vmul.f32 %v4351_v17, %v4351_v17 }
0x2279   :  { %v4365_v56 = vsel %vm257_vm1, %v4355_v61, 0.0 }
0x227a   :  { %4366 = vadd.xlane.f32.xlu0 %v4365_v56  ;;  %v4633_v56 = vld [vmem:[%s9658_s23] sm:$0xff] }
0x22a7   :  { %v4358_v4 = vpop.xlane.xlu1 %4357 }
0x22a8   :  { %v4368_v42 = vmul.f32 0.03125, %v4358_v4  ;;  %v4634_v4 = vld [vmem:[%s9658_s23 + $0x8] sm:$0xff] }
0x22aa   :  { %v4372_v1 = vadd.f32 1e-05, %v4368_v42  ;;  %v4361_v60 = vpop.xlane.xlu0 %4360  ;;  %v4635_v42 = vld [vmem:[%s9658_s23 + $0x10] sm:$0xff] }
0x22ab   :  { %v4369_v27 = vmul.f32 0.03125, %v4361_v60  ;;  %v6727_v60 = vld [vmem:[%s9659_s22] ss:$0 sm:$0xff] }
0x22ac   :  { %7668 = vrsqrt.f32 %v4372_v1  ;;  %v4636_v1 = vld [vmem:[%s9658_s23 + $0x18] sm:$0xff] }
0x22ad   :  { %v4373_v9 = vadd.f32 1e-05, %v4369_v27 }
0x22af   :  { %7670 = vrsqrt.f32 %v4373_v9 }
0x22b9   :  { %v7669_v45 = vpop.eup %7668 }
0x22ba   :  { %v4380_v19 = vmul.f32 %v7669_v45, %v4348_v28  ;;  %v6722_v28 = vld [vmem:[%s9657_s18] ss:$0 sm:$0xff] }
0x22bc   :  { %v7671_v62 = vpop.eup %7670  ;;  %v4390_v2 = vmul.f32 %v6720_v0, %v4380_v19 }
0x22bd   :  { %v4381_v48 = vmul.f32 %v7671_v62, %v4349_v3 }
0x22be   :  { %v4400_v46 = vadd.f32 %v6721_v39, %v4390_v2 }
0x22bf   :  { %v4391_v21 = vmul.f32 %v6720_v0, %v4381_v48  ;;  %v6732_v48 = vld [vmem:[%s9661_s17] ss:$0 sm:$0xff] }
0x22c0   :  { %7287 = vmatprep.mubr.msk.f32.mxu1 %vm257_vm1, %v4400_v46 }
0x22c1   :  { %v4401_v30 = vadd.f32 %v6721_v39, %v4391_v21 }
0x22c3   :  { %7288 = vmatmul.mubr.msk.f32.vlgmr.msra.gmra.mxu1 %vm257_vm1, %v4401_v30 }
0x22ff   :  { %v4364_v43 = vpop.xlane.xlu1 %4363 }
0x2300   :  { %v4370_v31 = vmul.f32 0.03125, %v4364_v43  ;;  %v6737_v43 = vld [vmem:[%s9662_s21] ss:$0 sm:$0xff] }
0x2302   :  { %v4374_v20 = vadd.f32 1e-05, %v4370_v31 }
0x2303   :  { %v4367_v12 = vpop.xlane.xlu0 %4366 }
0x2304   :  { %7672 = vrsqrt.f32 %v4374_v20  ;;  %v4371_v38 = vmul.f32 0.03125, %v4367_v12 }
0x2306   :  { %v4375_v63 = vadd.f32 1e-05, %v4371_v38 }
0x2308   :  { %7674 = vrsqrt.f32 %v4375_v63 }
0x2311   :  { %v7673_v6 = vpop.eup %7672 }
0x2312   :  { %v4382_v11 = vmul.f32 %v7673_v6, %v4350_v16  ;;  %v7841_v16 = vmov 0.0  }
0x2313   :  { %7343 = vmatprep.subr.mxu1 %v7841_v16 }
0x2314   :  { %v4392_v40 = vmul.f32 %v6720_v0, %v4382_v11 }
0x2315   :  { %v7675_v22 = vpop.eup %7674 }
0x2316   :  { %v4402_v26 = vadd.f32 %v6721_v39, %v4392_v40  ;;  %v4383_v51 = vmul.f32 %v7675_v22, %v4351_v17 }
0x2318   :  { %7290 = vmatprep.mubr.msk.f32.mxu1 %vm257_vm1, %v4402_v26  ;;  %v4393_v24 = vmul.f32 %v6720_v0, %v4383_v51 }
0x231a   :  { %v4403_v52 = vadd.f32 %v6721_v39, %v4393_v24 }
0x231c   :  { %7291 = vmatmul.mubr.msk.f32.gmra.mxu1 %vm257_vm1, %v4403_v52 }
0x231d   :  { %7347 = vmatprep.mubr.msk.f32.mxu1 %vm7842_vm14, %v7841_v16 }
0x2383   :  { %v7289_v23 = vpop.f32.mrf.mxu1 }
0x2384   :  { %v4499_v44 = vadd.f32 %v7289_v23, %v6722_v28  ;;  %v6746_v23 = vld [vmem:[#allocation2] ss:$0 sm:$0xff] }
0x2385   :  { %v4493_v10 = vpop.f32.mrf.mxu1 }
0x2386   :  { %v4494_v3 = vadd.f32 %v6722_v28, %v4493_v10  ;;  %v4513_v53 = vmax.f32 %v4499_v44, 0.0 }
0x2388   :  { %v4512_v47 = vmax.f32 %v4494_v3, 0.0 }
0x238a   :  { %7301 = vmatprep.mubr.msk.f32.mxu0 %vm257_vm1, %v4512_v47 }
0x238b   :  { %7302 = vmatmul.mubr.msk.f32.vlgmr.msra.gmra.mxu0 %vm257_vm1, %v4513_v53 }
0x238c   :  { %7308 = vmatpush3.msra.mxu0 %v4644_v29 }
0x238d   :  { %7309 = vmatprep.subr.mxu0 %v4643_v5 }
0x238e   :  { %7310 = vmatpush3.msra.mxu0 %v4643_v5 }
0x238f   :  { %7311 = vmatprep.subr.mxu0 %v4642_v37 }
0x2390   :  { %7312 = vmatpush3.msra.mxu0 %v4642_v37 }
0x2391   :  { %7313 = vmatprep.subr.mxu0 %v4641_v58 }
0x2392   :  { %7314 = vmatpush3.msra.mxu0 %v4641_v58 }
0x2393   :  { %7315 = vmatprep.subr.mxu0 %v4640_v18 }
0x2394   :  { %7316 = vmatpush3.msra.mxu0 %v4640_v18 }
0x2395   :  { %7317 = vmatprep.subr.mxu0 %v4639_v50 }
0x2396   :  { %7318 = vmatpush3.msra.mxu0 %v4639_v50 }
0x2397   :  { %7319 = vmatprep.subr.mxu0 %v4638_v55 }
0x2398   :  { %7320 = vmatpush3.msra.mxu0 %v4638_v55 }
0x2399   :  { %7321 = vmatprep.subr.mxu0 %v4637_v13 }
0x239a   :  { %7322 = vmatpush3.msra.mxu0 %v4637_v13 }
0x239b   :  { %7329 = vmatprep.subr.mxu0 %v7841_v16 }
0x23dc   :  { %v7292_v54 = vpop.f32.mrf.mxu1 }
0x23dd   :  { %v4509_v15 = vadd.f32 %v7292_v54, %v6722_v28 }
0x23de   :  { %v4503_v8 = vpop.f32.mrf.mxu1 }
0x23df   :  { %v4504_v17 = vadd.f32 %v6722_v28, %v4503_v8  ;;  %v4515_v61 = vmax.f32 %v4509_v15, 0.0 }
0x23e1   :  { %v4514_v57 = vmax.f32 %v4504_v17, 0.0 }
0x23e3   :  { %7304 = vmatprep.mubr.msk.f32.mxu0 %vm257_vm1, %v4514_v57 }
0x23e4   :  { %7305 = vmatmul.mubr.msk.f32.gmra.mxu0 %vm257_vm1, %v4515_v61 }
0x23e5   :  { %7323 = vmatprep.mubr.msk.f32.mxu0 %vm155_vm0, %v4633_v56 }
0x23e8   :  { %7324 = vmatmul.mubr.msk.f32.vlgmr.msra.gmra.mxu0 %vm155_vm0, %v4634_v4 }
0x23e9   :  { %7326 = vmatprep.mubr.msk.f32.mxu0 %vm155_vm0, %v4635_v42 }
0x23ec   :  { %7327 = vmatmul.mubr.msk.f32.gmra.mxu0 %vm155_vm0, %v4636_v1 }
0x23ed   :  { %7333 = vmatprep.mubr.msk.f32.mxu0 %vm7842_vm14, %v7841_v16 }
0x244b   :  { %v7303_v27 = vpop.f32.mrf.mxu0 }
0x244c   :  { %v4611_v9 = vadd.f32 %v7303_v27, %v6727_v60 }
0x244d   :  { %v4605_v45 = vpop.f32.mrf.mxu0 }
0x244e   :  { %v9250_v0 = vadd.f32 %v4611_v9, %v9175_v33  ;;  %v4606_v19 = vadd.f32 %v6727_v60, %v4605_v45  ;;  %v4750_v33 = vld [vmem:[%s9660_s26] sm:$0x1] }
0x2450   :  { %4629 = vst.msk [vmem:[#allocation7 + $0x8] sm:$0xff] %vm257_vm1, %v9250_v0  ;;  %v9255_v39 = vadd.f32 %v4606_v19, %v9172_v41  ;;  %7330 = vmatpush3.xpose.msk.msra.mxu0 %vm257_vm1, %v9250_v0 }
0x2451   :  { %7331 = vmatprep.subr.mxu0 %v7841_v16 }
0x2452   :  { %4628 = vst.msk [vmem:[#allocation7] sm:$0xff] %vm257_vm1, %v9255_v39 }
0x2454   :  { %7332 = vmatpush3.xpose.msk.msra.mxu0 %vm257_vm1, %v9255_v39 }
0x2455   :  { %7336 = vmatprep.subr.msk.mxu0 %vm257_vm1, %v9250_v0 }
0x2457   :  { %7334 = vmatmul.mubr.msk.f32.vlgmr.msra.gmra.mxu0 %vm257_vm1, %v4750_v33 }
0x2458   :  { %7337 = vmatpush3.xpose.msk.msra.mxu0 %vm257_vm1, %v9250_v0 }
0x2459   :  { %7338 = vmatprep.subr.msk.mxu0 %vm257_vm1, %v9255_v39 }
0x245c   :  { %7339 = vmatpush3.xpose.msk.msra.mxu0 %vm257_vm1, %v9255_v39 }
0x24a4   :  { %v7306_v41 = vpop.f32.mrf.mxu0 }
0x24a5   :  { %v4621_v62 = vadd.f32 %v7306_v41, %v6727_v60 }
0x24a6   :  { %v4615_v2 = vpop.f32.mrf.mxu0 }
0x24a7   :  { %v9276_v46 = vadd.f32 %v4621_v62, %v9193_v49  ;;  %v4616_v21 = vadd.f32 %v6727_v60, %v4615_v2 }
0x24a8   :  { %v7325_v30 = vpop.f32.mrf.mxu0 }
0x24a9   :  { %4632 = vst.msk [vmem:[#allocation7 + $0x18] sm:$0xff] %vm257_vm1, %v9276_v46  ;;  %v9282_v31 = vadd.f32 %v4616_v21, %v9190_v35  ;;  %v9284_v20 = vadd.f32 %v7325_v30, %v6732_v48  ;;  %7344 = vmatpush3.xpose.msk.msra.mxu1 %vm257_vm1, %v9276_v46  ;;  %7350 = vmatprep.subr.msk.mxu0 %vm257_vm1, %v9276_v46  ;;  %v6741_v35 = vld [vmem:[%s9663_s9] ss:$0 sm:$0xff] }
0x24aa   :  { %v4730_v12 = vpop.f32.mrf.mxu0  ;;  %7345 = vmatprep.subr.mxu1 %v7841_v16 }
0x24ab   :  { %4631 = vst.msk [vmem:[#allocation7 + $0x10] sm:$0xff] %vm257_vm1, %v9282_v31  ;;  %v9293_v49 = vadd.f32 %v6732_v48, %v4730_v12  ;;  %v4760_v34 = vmul.f32 %v6737_v43, %v9284_v20  ;;  %v4853_v6 = vmul.f32 %v6741_v35, %v9284_v20 }
0x24ac   :  { %v7328_v38 = vpop.f32.mrf.mxu0 }
0x24ad   :  { %v9297_v59 = vadd.f32 %v7328_v38, %v6732_v48  ;;  %7346 = vmatpush3.xpose.msk.msra.mxu1 %vm257_vm1, %v9282_v31  ;;  %v4764_v63 = vsel %vm257_vm1, %v4760_v34, 0.0  ;;  %v4852_v25 = vmul.f32 %v6741_v35, %v9293_v49  ;;  %v4759_v14 = vmul.f32 %v6737_v43, %v9293_v49 }
0x24ae   :  { %4765 = vadd.xlane.f32.xlu0 %v4764_v63  ;;  %7357 = vmatprep.subr.mxu1 %v9250_v0  ;;  %v4740_v29 = vpop.f32.mrf.mxu0 }
0x24af   :  { %v9306_v11 = vadd.f32 %v6732_v48, %v4740_v29  ;;  %7340 = vmatprep.mubr.msk.f32.mxu0 %vm257_vm1, %v4852_v25  ;;  %v4761_v40 = vsel %vm257_vm1, %v4759_v14, 0.0  ;;  %v4955_v22 = vmul.f32 %v6737_v43, %v9297_v59  ;;  %v5039_v28 = vmul.f32 %v6741_v35, %v9297_v59 }
0x24b0   :  { %7341 = vmatmul.mubr.msk.f32.vlgmr.msra.gmra.mxu0 %vm257_vm1, %v4853_v6  ;;  %4762 = vadd.xlane.f32.xlu1 %v4761_v40 }
0x24b1   :  { %7351 = vmatpush3.xpose.msk.msra.mxu0 %vm257_vm1, %v9276_v46  ;;  %7348 = vmatmul.mubr.msk.f32.vlgmr.msra.gmra.mxu1 %vm257_vm1, %v4750_v33  ;;  %v5038_v26 = vmul.f32 %v6741_v35, %v9306_v11  ;;  %v4959_v51 = vsel %vm257_vm1, %v4955_v22, 0.0  ;;  %v4954_v24 = vmul.f32 %v6737_v43, %v9306_v11 }
0x24b2   :  { %7352 = vmatprep.subr.msk.mxu0 %vm257_vm1, %v9282_v31  ;;  %7358 = vmatpush3.msra.mxu1 %v9250_v0 }
0x24b3   :  { %7359 = vmatprep.subr.mxu1 %v9255_v39  ;;  %7354 = vmatprep.mubr.msk.f32.mxu0 %vm257_vm1, %v5038_v26  ;;  %v4956_v52 = vsel %vm257_vm1, %v4954_v24, 0.0 }
0x24b4   :  { %7360 = vmatpush3.msra.mxu1 %v9255_v39  ;;  %4960 = vadd.xlane.f32.xlu0 %v4959_v51 }
0x24b5   :  { %7353 = vmatpush3.xpose.msk.msra.mxu0 %vm257_vm1, %v9282_v31  ;;  %7371 = vmatprep.subr.mxu1 %v9284_v20 }
0x24b6   :  { %4957 = vadd.xlane.f32.xlu1 %v4956_v52 }
0x24b8   :  { %7355 = vmatmul.mubr.msk.f32.vlgmr.msra.gmra.mxu0 %vm257_vm1, %v5039_v28 }
0x24c7   :  { %4949 = vperm.xlu1 %7530, %v6746_v23  }
0x2517   :  { %v4842_v44 = vpop.f32.mrf.mxu0 }
0x2518   :  { %v4938_v47 = vrot.slane %v4842_v44, %v8057_v36 }
0x2519   :  { %v7335_v10 = vpop.f32.mrf.mxu0 }
0x2537   :  { %v4766_v53 = vpop.xlane.xlu0 %4765 }
0x2538   :  { %v4940_v37 = vadd.f32 %v4938_v47, %v4766_v53 }
0x2539   :  { %v4763_v3 = vpop.xlane.xlu1 %4762 }
0x253a   :  { %v4939_v50 = vadd.f32 %v4938_v47, %v4763_v3 }
0x253d   :  { %v4961_v56 = vpop.xlane.xlu0 %4960 }
0x253f   :  { %v4958_v5 = vpop.xlane.xlu1 %4957 }
0x2543   :  { %v4950_v18 = vpop.permute.xlu1 %4949 }
0x2570   :  { %v7342_v58 = vpop.f32.mrf.mxu0 }
0x2571   :  { %v4942_v55 = vadd.f32 %v7342_v58, %v4940_v37  ;;  %v5034_v13 = vpop.f32.mrf.mxu1 }
0x2572   :  { %v4926_v54 = vpop.f32.mrf.mxu0  ;;  %v5124_v15 = vrot.slane %v5034_v13, %v8057_v36 }
0x2573   :  { %v4941_v8 = vadd.f32 %v4939_v50, %v4926_v54  ;;  %v4953_v17 = vadd.f32 %v4950_v18, %v4942_v55  ;;  %v7349_v57 = vpop.f32.mrf.mxu1 }
0x2574   :  { %v5126_v1 = vadd.f32 %v5124_v15, %v4961_v56  ;;  %v5125_v19 = vadd.f32 %v5124_v15, %v4958_v5 }
0x2575   :  { %v4952_v61 = vadd.f32 %v4950_v18, %v4941_v8  ;;  %v5160_v42 = vsel %vm2734_vm11, %v4953_v17, -inf  ;;  %v9342_v33 = vsel %vm8871_vm10, %v4953_v17, -1e+30 }
0x2576   :  { %v5140_v30 = vsel %vm2734_vm11, %v9342_v33, -inf }
0x2577   :  { %v5159_v4 = vsel %vm2734_vm11, %v4952_v61, -inf  ;;  %v9336_v60 = vsel %vm8871_vm10, %v4952_v61, -1e+30 }
0x2578   :  { %v5161_v27 = vmax.f32 %v5159_v4, %v5160_v42  ;;  %v7356_v9 = vpop.f32.mrf.mxu0  ;;  %v5137_v45 = vsel %vm2734_vm11, %v9336_v60, -inf }
0x2579   :  { %v5128_v36 = vadd.f32 %v7356_v9, %v5126_v1  ;;  %5138 = vmax.xlane.f32.xlu0 %v5137_v45 }
0x257a   :  { %v5162_v41 = vrot.slane %v5161_v27, 4  ;;  %v5112_v62 = vpop.f32.mrf.mxu0 }
0x257b   :  { %v5130_v2 = vadd.f32 %v5128_v36, %v4950_v18  ;;  %v5127_v48 = vadd.f32 %v5125_v19, %v5112_v62 }
0x257c   :  { %v5163_v21 = vmax.f32 %v5161_v27, %v5162_v41 }
0x257d   :  { %v5132_v43 = vadd.f32 %v5130_v2, %v4953_v17  ;;  %v5129_v12 = vadd.f32 %v5127_v48, %v4950_v18  ;;  %5141 = vmax.xlane.f32.xlu0 %v5140_v30  ;;  %v5838_v35 = vsel %vm2734_vm11, %v5130_v2, -inf  ;;  %v9370_v54 = vsel %vm9037_vm12, %v5130_v2, -1e+30 }
0x257e   :  { %v5164_v34 = vrot.slane %v5163_v21, 2 }
0x257f   :  { %v5131_v38 = vadd.f32 %v5129_v12, %v4952_v61  ;;  %v5837_v63 = vsel %vm2734_vm11, %v5129_v12, -inf  ;;  %v9350_v25 = vsel %vm9037_vm12, %v5129_v12, -1e+30  ;;  %v5134_v14 = vmul.f32 0.5, %v5132_v43 }
0x2580   :  { %v5165_v29 = vmax.f32 %v5163_v21, %v5164_v34  ;;  %v5839_v6 = vmax.f32 %v5837_v63, %v5838_v35  ;;  %v5815_v40 = vsel %vm2734_vm11, %v9350_v25, -inf }
0x2581   :  { %5816 = vmax.xlane.f32.xlu1 %v5815_v40  ;;  %v5133_v22 = vmul.f32 0.5, %v5131_v38  ;;  %v9361_v28 = vsel %vm8871_vm10, %v5134_v14, -1e+30  ;;  %v5454_v23 = vsel %vm2734_vm11, %v5134_v14, -inf  ;;  %v9382_v19 = vsel %vm9037_vm12, %v5134_v14, -1e+30 }
0x2582   :  { %v5166_v26 = vrot.slane %v5165_v29, 1  ;;  %v5840_v51 = vrot.slane %v5839_v6, 4  ;;  %v5434_v18 = vsel %vm2734_vm11, %v9361_v28, -inf }
0x2583   :  { %v9356_v24 = vsel %vm8871_vm10, %v5133_v22, -1e+30  ;;  %v5453_v52 = vsel %vm2734_vm11, %v5133_v22, -inf  ;;  %v9376_v56 = vsel %vm9037_vm12, %v5133_v22, -1e+30 }
0x2584   :  { %v5167_v44 = vmax.f32 %v5165_v29, %v5166_v26  ;;  %v5841_v10 = vmax.f32 %v5839_v6, %v5840_v51  ;;  %v5431_v3 = vsel %vm2734_vm11, %v9356_v24, -inf  ;;  %v5455_v47 = vmax.f32 %v5453_v52, %v5454_v23 }
0x2585   :  { %5432 = vmax.xlane.f32.xlu0 %v5431_v3  ;;  %v6109_v36 = vsel %vm2734_vm11, %v9376_v56, -inf }
0x2586   :  { %v5168_v53 = vsub.f32 %v4952_v61, %v5167_v44  ;;  %v5169_v5 = vsub.f32 %v4953_v17, %v5167_v44  ;;  %v5842_v37 = vrot.slane %v5841_v10, 2  ;;  %v5456_v58 = vrot.slane %v5455_v47, 4 }
0x2587   :  { %v5818_v61 = vsel %vm2734_vm11, %v9370_v54, -inf }
0x2588   :  { %v5170_v50 = vmul.f32 1.442695, %v5168_v53  ;;  %v5172_v32 = vmul.f32 1.442695, %v5169_v5  ;;  %v5843_v55 = vmax.f32 %v5841_v10, %v5842_v37  ;;  %v5457_v13 = vmax.f32 %v5455_v47, %v5456_v58 }
0x2589   :  { %5435 = vmax.xlane.f32.xlu0 %v5434_v18 }
0x258a   :  { %7676 = vpow2.f32 %v5170_v50  ;;  %v5844_v15 = vrot.slane %v5843_v55, 1  ;;  %v5458_v8 = vrot.slane %v5457_v13, 2 }
0x258b   :  { %7678 = vpow2.f32 %v5172_v32 }
0x258c   :  { %v5845_v57 = vmax.f32 %v5843_v55, %v5844_v15  ;;  %v5459_v17 = vmax.f32 %v5457_v13, %v5458_v8 }
0x258d   :  { %5819 = vmax.xlane.f32.xlu0 %v5818_v61 }
0x258e   :  { %v5846_v4 = vsub.f32 %v5129_v12, %v5845_v57  ;;  %v5847_v42 = vsub.f32 %v5130_v2, %v5845_v57  ;;  %v5460_v1 = vrot.slane %v5459_v17, 1  ;;  %v6112_v2 = vsel %vm2734_vm11, %v9382_v19, -inf }
0x2590   :  { %v5848_v27 = vmul.f32 1.442695, %v5846_v4  ;;  %v5850_v9 = vmul.f32 1.442695, %v5847_v42  ;;  %v5461_v45 = vmax.f32 %v5459_v17, %v5460_v1 }
0x2591   :  { %6110 = vmax.xlane.f32.xlu0 %v6109_v36 }
0x2592   :  { %7680 = vpow2.f32 %v5848_v27  ;;  %v5462_v41 = vsub.f32 %v5133_v22, %v5461_v45  ;;  %v5463_v62 = vsub.f32 %v5134_v14, %v5461_v45 }
0x2593   :  { %7682 = vpow2.f32 %v5850_v9 }
0x2594   :  { %v5464_v48 = vmul.f32 1.442695, %v5462_v41  ;;  %v5466_v21 = vmul.f32 1.442695, %v5463_v62 }
0x2595   :  { %6113 = vmax.xlane.f32.xlu0 %v6112_v2 }
0x2596   :  { %7684 = vpow2.f32 %v5464_v48 }
0x2597   :  { %v7677_v30 = vpop.eup %7676  ;;  %7686 = vpow2.f32 %v5466_v21 }
0x2598   :  { %v7679_v43 = vpop.eup %7678  ;;  %v5174_v12 = vsel %vm2734_vm11, %v7677_v30, 0.0 }
0x2599   :  { %v5175_v7 = vsel %vm2734_vm11, %v7679_v43, 0.0 }
0x259a   :  { %v5176_v34 = vadd.f32 %v5175_v7, %v5174_v12 }
0x259c   :  { %v5177_v35 = vrot.slane %v5176_v34, 4 }
0x259e   :  { %v5178_v38 = vadd.f32 %v5177_v35, %v5176_v34 }
0x259f   :  { %v7681_v63 = vpop.eup %7680 }
0x25a0   :  { %v7683_v14 = vpop.eup %7682  ;;  %v5852_v29 = vsel %vm2734_vm11, %v7681_v63, 0.0  ;;  %v5179_v6 = vrot.slane %v5178_v38, 2 }
0x25a1   :  { %v5853_v40 = vsel %vm2734_vm11, %v7683_v14, 0.0 }
0x25a2   :  { %v5854_v22 = vadd.f32 %v5853_v40, %v5852_v29  ;;  %v5180_v26 = vadd.f32 %v5179_v6, %v5178_v38 }
0x25a3   :  { %v7685_v51 = vpop.eup %7684 }
0x25a4   :  { %v7687_v52 = vpop.eup %7686  ;;  %v5181_v23 = vrot.slane %v5180_v26, 1  ;;  %v5468_v44 = vsel %vm2734_vm11, %v7685_v51, 0.0  ;;  %v5855_v10 = vrot.slane %v5854_v22, 4 }
0x25a5   :  { %v5469_v3 = vsel %vm2734_vm11, %v7687_v52, 0.0 }
0x25a6   :  { %v5182_v47 = vadd.f32 %v5181_v23, %v5180_v26  ;;  %v5470_v53 = vadd.f32 %v5469_v3, %v5468_v44  ;;  %v5856_v5 = vadd.f32 %v5855_v10, %v5854_v22 }
0x25a8   :  { %7688 = vrcp.f32 %v5182_v47  ;;  %v5471_v37 = vrot.slane %v5470_v53, 4  ;;  %v5857_v58 = vrot.slane %v5856_v5, 2 }
0x25aa   :  { %v5472_v18 = vadd.f32 %v5471_v37, %v5470_v53  ;;  %v5858_v50 = vadd.f32 %v5857_v58, %v5856_v5 }
0x25ac   :  { %v5473_v32 = vrot.slane %v5472_v18, 2  ;;  %v5859_v55 = vrot.slane %v5858_v50, 1 }
0x25ae   :  { %v5474_v13 = vadd.f32 %v5473_v32, %v5472_v18  ;;  %v5860_v15 = vadd.f32 %v5859_v55, %v5858_v50 }
0x25b0   :  { %v5475_v8 = vrot.slane %v5474_v13, 1  ;;  %7690 = vrcp.f32 %v5860_v15 }
0x25b2   :  { %v5476_v57 = vadd.f32 %v5475_v8, %v5474_v13 }
0x25b4   :  { %7692 = vrcp.f32 %v5476_v57 }
0x25b5   :  { %v7689_v17 = vpop.eup %7688 }
0x25b6   :  { %v5185_v61 = vmul.f32 %v7689_v17, %v7679_v43  ;;  %v5184_v4 = vmul.f32 %v7689_v17, %v7677_v30 }
0x25b8   :  { %7364 = vmatprep.subr.msk.mxu0 %vm2734_vm11, %v5185_v61 }
0x25b9   :  { %7365 = vmatpush3.xpose.msk.msra.mxu0 %vm2734_vm11, %v5185_v61 }
0x25ba   :  { %7366 = vmatprep.subr.msk.mxu0 %vm2734_vm11, %v5184_v4 }
0x25bd   :  { %v7691_v42 = vpop.eup %7690  ;;  %7367 = vmatpush3.xpose.msk.msra.mxu0 %vm2734_vm11, %v5184_v4 }
0x25be   :  { %v9396_v1 = vmul.f32 %v7691_v42, %v7683_v14  ;;  %v9398_v27 = vmul.f32 %v7691_v42, %v7681_v63 }
0x25c1   :  { %v7693_v9 = vpop.eup %7692 }
0x25c2   :  { %v9400_v45 = vmul.f32 %v7693_v9, %v7687_v52  ;;  %v9402_v36 = vmul.f32 %v7693_v9, %v7685_v51 }
0x25c4   :  { %7385 = vmatprep.subr.msk.mxu0 %vm2734_vm11, %v9400_v45 }
0x2602   :  { %v5139_v41 = vpop.xlane.xlu0 %5138 }
0x2603   :  { %v5143_v62 = vsub.f32 %v9336_v60, %v5139_v41 }
0x2605   :  { %v5145_v48 = vmul.f32 1.442695, %v5143_v62 }
0x2606   :  { %v5142_v21 = vpop.xlane.xlu0 %5141 }
0x2607   :  { %7694 = vpow2.f32 %v5145_v48  ;;  %v5144_v2 = vsub.f32 %v9342_v33, %v5142_v21 }
0x2609   :  { %v5147_v30 = vmul.f32 1.442695, %v5144_v2 }
0x260a   :  { %v5817_v43 = vpop.xlane.xlu1 %5816 }
0x260b   :  { %7696 = vpow2.f32 %v5147_v30  ;;  %v5821_v34 = vsub.f32 %v9350_v25, %v5817_v43 }
0x260d   :  { %v5823_v60 = vmul.f32 1.442695, %v5821_v34 }
0x260e   :  { %v5433_v12 = vpop.xlane.xlu0 %5432 }
0x260f   :  { %v5437_v7 = vsub.f32 %v9356_v24, %v5433_v12 }
0x2611   :  { %v5439_v35 = vmul.f32 1.442695, %v5437_v7 }
0x2612   :  { %v5436_v38 = vpop.xlane.xlu0 %5435 }
0x2613   :  { %7698 = vpow2.f32 %v5439_v35  ;;  %v5438_v63 = vsub.f32 %v9361_v28, %v5436_v38 }
0x2614   :  { %v7695_v14 = vpop.eup %7694 }
0x2615   :  { %v5441_v29 = vmul.f32 1.442695, %v5438_v63  ;;  %v5149_v6 = vsel %vm2734_vm11, %v7695_v14, 0.0 }
0x2616   :  { %v5820_v40 = vpop.xlane.xlu0 %5819  ;;  %5150 = vadd.xlane.f32.xlu0 %v5149_v6 }
0x2617   :  { %7700 = vpow2.f32 %v5441_v29  ;;  %v5822_v33 = vsub.f32 %v9370_v54, %v5820_v40 }
0x2618   :  { %v7697_v22 = vpop.eup %7696  ;;  %7702 = vpow2.f32 %v5823_v60 }
0x2619   :  { %v5825_v24 = vmul.f32 1.442695, %v5822_v33  ;;  %v5152_v25 = vsel %vm2734_vm11, %v7697_v22, 0.0 }
0x261a   :  { %v6111_v26 = vpop.xlane.xlu0 %6110  ;;  %5153 = vadd.xlane.f32.xlu0 %v5152_v25 }
0x261b   :  { %v6115_v51 = vsub.f32 %v9376_v56, %v6111_v26  ;;  %7704 = vpow2.f32 %v5825_v24 }
0x261d   :  { %v6117_v28 = vmul.f32 1.442695, %v6115_v51 }
0x261e   :  { %v6114_v52 = vpop.xlane.xlu0 %6113 }
0x261f   :  { %7706 = vpow2.f32 %v6117_v28  ;;  %v6116_v23 = vsub.f32 %v9382_v19, %v6114_v52 }
0x2620   :  { %v7699_v44 = vpop.eup %7698 }
0x2621   :  { %v6119_v10 = vmul.f32 1.442695, %v6116_v23  ;;  %v5443_v3 = vsel %vm2734_vm11, %v7699_v44, 0.0 }
0x2622   :  { %5444 = vadd.xlane.f32.xlu0 %v5443_v3 }
0x2623   :  { %7708 = vpow2.f32 %v6119_v10 }
0x2624   :  { %v7701_v54 = vpop.eup %7700 }
0x2625   :  { %v5446_v47 = vsel %vm2734_vm11, %v7701_v54, 0.0  ;;  %v7703_v53 = vpop.eup %7702 }
0x2626   :  { %5447 = vadd.xlane.f32.xlu0 %v5446_v47  ;;  %v5827_v5 = vsel %vm2734_vm11, %v7703_v53, 0.0 }
0x2628   :  { %v7705_v56 = vpop.eup %7704 }
0x2629   :  { %v5830_v58 = vsel %vm2734_vm11, %v7705_v56, 0.0 }
0x262a   :  { %5828 = vadd.xlane.f32.xlu0 %v5827_v5 }
0x262c   :  { %v7707_v37 = vpop.eup %7706 }
0x262d   :  { %v6121_v19 = vsel %vm2734_vm11, %v7707_v37, 0.0 }
0x262e   :  { %5831 = vadd.xlane.f32.xlu0 %v5830_v58  ;;  %6122 = vadd.xlane.f32.xlu1 %v6121_v19 }
0x2630   :  { %v7709_v18 = vpop.eup %7708 }
0x2631   :  { %v6124_v50 = vsel %vm2734_vm11, %v7709_v18, 0.0 }
0x2632   :  { %6125 = vadd.xlane.f32.xlu0 %v6124_v50 }
0x269f   :  { %v5151_v32 = vpop.xlane.xlu0 %5150 }
0x26a0   :  { %7710 = vrcp.f32 %v5151_v32  ;;  %v6473_v32 = vld [vmem:[%s7998_s4 + $0x68] sm:$0xff] }
0x26a3   :  { %v5154_v55 = vpop.xlane.xlu0 %5153 }
0x26a4   :  { %7712 = vrcp.f32 %v5154_v55 }
0x26ab   :  { %v5445_v13 = vpop.xlane.xlu0 %5444 }
0x26ac   :  { %7714 = vrcp.f32 %v5445_v13 }
0x26ad   :  { %v7711_v15 = vpop.eup %7710 }
0x26ae   :  { %v5157_v8 = vmul.f32 %v7711_v15, %v7695_v14  ;;  %v6472_v15 = vld [vmem:[%s7998_s4 + $0x60] sm:$0xff] }
0x26af   :  { %v5448_v57 = vpop.xlane.xlu0 %5447 }
0x26b0   :  { %7716 = vrcp.f32 %v5448_v57  ;;  %7361 = vmatprep.mubr.msk.f32.mxu1 %vm2734_vm11, %v5157_v8  ;;  %7368 = vmatprep.mubr.msk.f32.mxu0 %vm2734_vm11, %v5157_v8 }
0x26b1   :  { %v7713_v17 = vpop.eup %7712 }
0x26b2   :  { %v5158_v61 = vmul.f32 %v7713_v17, %v7697_v22  ;;  %v6471_v17 = vld [vmem:[%s7998_s4 + $0x58] sm:$0xff] }
0x26b3   :  { %v5829_v4 = vpop.xlane.xlu0 %5828 }
0x26b4   :  { %7718 = vrcp.f32 %v5829_v4  ;;  %7362 = vmatmul.mubr.msk.f32.vlgmr.msra.gmra.mxu1 %vm2734_vm11, %v5158_v61  ;;  %7369 = vmatmul.mubr.msk.f32.vlgmr.msra.gmra.mxu0 %vm2734_vm11, %v5158_v61 }
0x26b5   :  { %7372 = vmatpush3.msra.mxu1 %v9284_v20  ;;  %7386 = vmatpush3.xpose.msk.msra.mxu0 %vm2734_vm11, %v9400_v45 }
0x26b6   :  { %7373 = vmatprep.subr.mxu1 %v9293_v49  ;;  %7387 = vmatprep.subr.msk.mxu0 %vm2734_vm11, %v9402_v36 }
0x26b7   :  { %v6123_v42 = vpop.xlane.xlu1 %6122  ;;  %7374 = vmatpush3.msra.mxu1 %v9293_v49  ;;  %v5832_v9 = vpop.xlane.xlu0 %5831 }
0x26b8   :  { %7720 = vrcp.f32 %v6123_v42  ;;  %7378 = vmatprep.subr.mxu1 %v9250_v0  ;;  %v6470_v42 = vld [vmem:[%s7998_s4 + $0x50] sm:$0xff] }
0x26b9   :  { %v7715_v41 = vpop.eup %7714  ;;  %7722 = vrcp.f32 %v5832_v9  ;;  %7388 = vmatpush3.xpose.msk.msra.mxu0 %vm2734_vm11, %v9402_v36 }
0x26ba   :  { %7406 = vmatprep.subr.msk.mxu0 %vm2734_vm11, %v9396_v1  ;;  %v5451_v62 = vmul.f32 %v7715_v41, %v7699_v44 }
0x26bb   :  { %v6126_v48 = vpop.xlane.xlu0 %6125 }
0x26bc   :  { %7389 = vmatprep.mubr.msk.f32.mxu0 %vm2734_vm11, %v5451_v62  ;;  %7724 = vrcp.f32 %v6126_v48 }
0x26bd   :  { %v7717_v21 = vpop.eup %7716 }
0x26be   :  { %v5452_v2 = vmul.f32 %v7717_v21, %v7701_v54 }
0x26c0   :  { %7390 = vmatmul.mubr.msk.f32.vlgmr.msra.gmra.mxu0 %vm2734_vm11, %v5452_v2 }
0x26c1   :  { %v7719_v30 = vpop.eup %7718  ;;  %7407 = vmatpush3.xpose.msk.msra.mxu0 %vm2734_vm11, %v9396_v1 }
0x26c2   :  { %7408 = vmatprep.subr.msk.mxu0 %vm2734_vm11, %v9398_v27  ;;  %v5835_v43 = vmul.f32 %v7719_v30, %v7703_v53 }
0x26c4   :  { %7410 = vmatprep.mubr.msk.f32.mxu0 %vm2734_vm11, %v5835_v43 }
0x26c5   :  { %v7721_v12 = vpop.eup %7720  ;;  %7409 = vmatpush3.xpose.msk.msra.mxu0 %vm2734_vm11, %v9398_v27 }
0x26c6   :  { %v7723_v7 = vpop.eup %7722  ;;  %7427 = vmatprep.subr.msk.mxu0 %vm2734_vm11, %v9400_v45  ;;  %v6129_v34 = vmul.f32 %v7721_v12, %v7707_v37  ;;  %v6475_v37 = vld [vmem:[%s7998_s4 + $0x78] sm:$0xff] }
0x26c7   :  { %v5836_v35 = vmul.f32 %v7723_v7, %v7705_v56  ;;  %v6466_v7 = vld [vmem:[%s7998_s4 + $0x30] sm:$0xff] }
0x26c9   :  { %7411 = vmatmul.mubr.msk.f32.vlgmr.msra.gmra.mxu0 %vm2734_vm11, %v5836_v35  ;;  %v7725_v1 = vpop.eup %7724 }
0x26ca   :  { %7428 = vmatpush3.xpose.msk.msra.mxu0 %vm2734_vm11, %v9400_v45  ;;  %7431 = vmatprep.mubr.msk.f32.mxu0 %vm2734_vm11, %v6129_v34  ;;  %v6130_v27 = vmul.f32 %v7725_v1, %v7709_v18  ;;  %v6474_v18 = vld [vmem:[%s7998_s4 + $0x70] sm:$0xff]  ;;  %v6465_v1 = vld [vmem:[%s7998_s4 + $0x28] sm:$0xff] }
0x26cb   :  { %7429 = vmatprep.subr.msk.mxu0 %vm2734_vm11, %v9402_v36 }
0x26ce   :  { %7430 = vmatpush3.xpose.msk.msra.mxu0 %vm2734_vm11, %v9402_v36 }
0x26d1   :  { %7432 = vmatmul.mubr.msk.f32.vlgmr.msra.gmra.mxu0 %vm2734_vm11, %v6130_v27 }
0x2774   :  { %v7363_v38 = vpop.f32.mrf.mxu1  ;;  %v7370_v63 = vpop.f32.mrf.mxu0 }
0x2775   :  { %5735 = vrot.lane.b32.xlu0 %v7363_v38, %s7825_s0  ;;  %v5728_v29 = vmul.f32 %v7363_v38, %v9284_v20 }
0x2776   :  { %v5258_v14 = vpop.f32.mrf.mxu1  ;;  %v5339_v60 = vpop.f32.mrf.mxu0 }
0x2777   :  { %v5727_v45 = vmul.f32 %v5258_v14, %v9293_v49  ;;  %7375 = vmatprep.mubr.msk.f32.mxu1 %vm2734_vm11, %v5339_v60  ;;  %5733 = vrot.lane.b32.xlu1 %v5258_v14, %s7825_s0  ;;  %v6461_v60 = vld [vmem:[%s7998_s4 + $0x8] sm:$0xff] }
0x2778   :  { %7376 = vmatmul.mubr.msk.f32.vlgmr.msra.gmra.mxu1 %vm2734_vm11, %v7370_v63  ;;  %v6463_v63 = vld [vmem:[%s7998_s4 + $0x18] sm:$0xff] }
0x2779   :  { %7379 = vmatpush3.msra.mxu1 %v9250_v0  ;;  %7382 = vmatprep.mubr.msk.f32.mxu1 %vm2734_vm11, %v5451_v62  ;;  %v6469_v62 = vld [vmem:[%s7998_s4 + $0x48] sm:$0xff] }
0x277a   :  { %7380 = vmatprep.subr.mxu1 %v9255_v39  ;;  %5741 = vrot.lane.b32.xlu0 %v5727_v45, %s7830_s3  ;;  %v6460_v45 = vld [vmem:[%s7998_s4] sm:$0xff] }
0x277b   :  { %7381 = vmatpush3.msra.mxu1 %v9255_v39  ;;  %5743 = vrot.lane.b32.xlu1 %v5728_v29, %s7830_s3 }
0x277c   :  { %7392 = vmatprep.subr.mxu1 %v9284_v20  ;;  %7383 = vmatmul.mubr.msk.f32.vlgmr.msra.gmra.mxu1 %vm2734_vm11, %v5452_v2  ;;  %v6468_v2 = vld [vmem:[%s7998_s4 + $0x40] sm:$0xff] }
0x277d   :  { %7393 = vmatpush3.msra.mxu1 %v9284_v20 }
0x277e   :  { %7394 = vmatprep.subr.mxu1 %v9293_v49 }
0x277f   :  { %7395 = vmatpush3.msra.mxu1 %v9293_v49 }
0x2780   :  { %v7391_v0 = vpop.f32.mrf.mxu0  ;;  %7399 = vmatprep.subr.mxu1 %v9276_v46 }
0x2782   :  { %v5633_v36 = vpop.f32.mrf.mxu0 }
0x2783   :  { %7396 = vmatprep.mubr.msk.f32.mxu1 %vm2734_vm11, %v5633_v36 }
0x2784   :  { %7397 = vmatmul.mubr.msk.f32.vlgmr.msra.gmra.mxu1 %vm2734_vm11, %v7391_v0 }
0x2785   :  { %7400 = vmatpush3.msra.mxu1 %v9276_v46  ;;  %7403 = vmatprep.mubr.msk.f32.mxu1 %vm2734_vm11, %v5835_v43  ;;  %v6467_v43 = vld [vmem:[%s7998_s4 + $0x38] sm:$0xff] }
0x2786   :  { %7401 = vmatprep.subr.mxu1 %v9282_v31 }
0x2787   :  { %7402 = vmatpush3.msra.mxu1 %v9282_v31 }
0x2788   :  { %7413 = vmatprep.subr.mxu1 %v9297_v59  ;;  %7404 = vmatmul.mubr.msk.f32.vlgmr.msra.gmra.mxu1 %vm2734_vm11, %v5836_v35 }
0x2789   :  { %v7412_v39 = vpop.f32.mrf.mxu0  ;;  %7414 = vmatpush3.msra.mxu1 %v9297_v59 }
0x278a   :  { %7415 = vmatprep.subr.mxu1 %v9306_v11 }
0x278b   :  { %v6017_v6 = vpop.f32.mrf.mxu0  ;;  %7416 = vmatpush3.msra.mxu1 %v9306_v11 }
0x278c   :  { %7417 = vmatprep.mubr.msk.f32.mxu1 %vm2734_vm11, %v6017_v6  ;;  %7420 = vmatprep.subr.mxu1 %v9276_v46 }
0x278d   :  { %7418 = vmatmul.mubr.msk.f32.vlgmr.msra.gmra.mxu1 %vm2734_vm11, %v7412_v39 }
0x278e   :  { %7421 = vmatpush3.msra.mxu1 %v9276_v46  ;;  %7424 = vmatprep.mubr.msk.f32.mxu1 %vm2734_vm11, %v6129_v34 }
0x278f   :  { %7422 = vmatprep.subr.mxu1 %v9282_v31 }
0x2790   :  { %7423 = vmatpush3.msra.mxu1 %v9282_v31 }
0x2791   :  { %v7433_v40 = vpop.f32.mrf.mxu0  ;;  %7434 = vmatprep.subr.mxu1 %v9297_v59  ;;  %7425 = vmatmul.mubr.msk.f32.vlgmr.msra.gmra.mxu1 %vm2734_vm11, %v6130_v27  ;;  %v6464_v27 = vld [vmem:[%s7998_s4 + $0x20] sm:$0xff] }
0x2792   :  { %7435 = vmatpush3.msra.mxu1 %v9297_v59 }
0x2793   :  { %v6278_v33 = vpop.f32.mrf.mxu0  ;;  %7436 = vmatprep.subr.mxu1 %v9306_v11 }
0x2794   :  { %7437 = vmatpush3.msra.mxu1 %v9306_v11  ;;  %7438 = vmatprep.mubr.msk.f32.mxu1 %vm2734_vm11, %v6278_v33 }
0x2795   :  { %7439 = vmatmul.mubr.msk.f32.vlgmr.msra.gmra.mxu1 %vm2734_vm11, %v7433_v40  ;;  %7441 = vmatprep.subr.mxu1 %v7841_v16 }
0x2796   :  { %7473 = vmatprep.mubr.msk.f32.mxu1 %vm7842_vm14, %v7841_v16  ;;  %7442 = vmatpush3.msra.mxu1 %v6475_v37 }
0x2797   :  { %7443 = vmatprep.subr.mxu1 %v7841_v16 }
0x2798   :  { %7444 = vmatpush3.msra.mxu1 %v6474_v18 }
0x2799   :  { %7445 = vmatprep.subr.mxu1 %v7841_v16 }
0x279a   :  { %7446 = vmatpush3.msra.mxu1 %v6473_v32 }
0x279b   :  { %7447 = vmatprep.subr.mxu1 %v7841_v16 }
0x279c   :  { %7448 = vmatpush3.msra.mxu1 %v6472_v15 }
0x279d   :  { %7449 = vmatprep.subr.mxu1 %v7841_v16 }
0x279e   :  { %7450 = vmatpush3.msra.mxu1 %v6471_v17 }
0x279f   :  { %7451 = vmatprep.subr.mxu1 %v7841_v16 }
0x27a0   :  { %7452 = vmatpush3.msra.mxu1 %v6470_v42 }
0x27a1   :  { %7453 = vmatprep.subr.mxu1 %v7841_v16 }
0x27a2   :  { %7454 = vmatpush3.msra.mxu1 %v6469_v62 }
0x27a3   :  { %7455 = vmatprep.subr.mxu1 %v7841_v16 }
0x27a4   :  { %7456 = vmatpush3.msra.mxu1 %v6468_v2 }
0x27a5   :  { %7457 = vmatprep.subr.mxu1 %v7841_v16 }
0x27a6   :  { %7458 = vmatpush3.msra.mxu1 %v6467_v43 }
0x27a7   :  { %7459 = vmatprep.subr.mxu1 %v7841_v16 }
0x27a8   :  { %7460 = vmatpush3.msra.mxu1 %v6466_v7 }
0x27a9   :  { %7461 = vmatprep.subr.mxu1 %v7841_v16 }
0x27aa   :  { %7462 = vmatpush3.msra.mxu1 %v6465_v1 }
0x27ab   :  { %7463 = vmatprep.subr.mxu1 %v7841_v16 }
0x27ac   :  { %7464 = vmatpush3.msra.mxu1 %v6464_v27 }
0x27ad   :  { %7465 = vmatprep.subr.mxu1 %v7841_v16 }
0x27ae   :  { %7466 = vmatpush3.msra.mxu1 %v6463_v63 }
0x27af   :  { %7467 = vmatprep.subr.mxu1 %v7841_v16 }
0x27e7   :  { %v5736_v0 = vpop.permute.xlu0 %5735 }
0x27e9   :  { %v5734_v29 = vpop.permute.xlu1 %5733 }
0x27ec   :  { %v5742_v39 = vpop.permute.xlu0 %5741 }
0x27ed   :  { %v5744_v36 = vpop.permute.xlu1 %5743 }
0x2838   :  { %v7377_v46 = vpop.f32.mrf.mxu1 }
0x2839   :  { %v5730_v31 = vmul.f32 %v7377_v46, %v9284_v20 }
0x283a   :  { %v5420_v22 = vpop.f32.mrf.mxu1 }
0x283b   :  { %v5729_v24 = vmul.f32 %v5420_v22, %v9293_v49  ;;  %5751 = vrot.lane.b32.xlu1 %v5730_v31, %s7826_s5 }
0x283c   :  { %v7384_v25 = vpop.f32.mrf.mxu1 }
0x283d   :  { %v5724_v26 = vsub.f32 %v7363_v38, %v7384_v25  ;;  %5749 = vrot.lane.b32.xlu0 %v5729_v24, %s7826_s5 }
0x283e   :  { %v5552_v51 = vpop.f32.mrf.mxu1 }
0x283f   :  { %v5723_v28 = vsub.f32 %v5258_v14, %v5552_v51  ;;  %5770 = vrot.lane.b32.xlu1 %v5724_v26, %s7825_s0  ;;  %v5763_v52 = vmul.f32 %v5724_v26, %v9284_v20  ;;  %v6462_v14 = vld [vmem:[%s7998_s4 + $0x10] sm:$0xff]  ;;  %v5755_v51 = vsel %vm257_vm1, %v9293_v49, %v5734_v29  ;;  %s7843_s4 = smov [#allocation5]  }
0x2840   :  { %7468 = vmatpush3.msra.mxu1 %v6462_v14 }
0x2841   :  { %5768 = vrot.lane.b32.xlu0 %v5723_v28, %s7825_s0  ;;  %v5762_v23 = vmul.f32 %v5723_v28, %v9293_v49  ;;  %7469 = vmatprep.subr.mxu1 %v7841_v16 }
0x2842   :  { %7470 = vmatpush3.msra.mxu1 %v6461_v60 }
0x2843   :  { %5778 = vrot.lane.b32.xlu1 %v5763_v52, %s7830_s3  ;;  %7471 = vmatprep.subr.mxu1 %v7841_v16  ;;  %v5757_v16 = vsel %vm155_vm0, %v5755_v51, %v5742_v39 }
0x2844   :  { %v7398_v44 = vpop.f32.mrf.mxu1  ;;  %7472 = vmatpush3.msra.mxu1 %v6460_v45 }
0x2845   :  { %5776 = vrot.lane.b32.xlu0 %v5762_v23, %s7830_s3  ;;  %v5726_v3 = vsub.f32 %v7377_v46, %v7398_v44  ;;  %v5756_v23 = vsel %vm257_vm1, %v9284_v20, %v5736_v0 }
0x2846   :  { %v5714_v10 = vpop.f32.mrf.mxu1 }
0x2847   :  { %v5725_v54 = vsub.f32 %v5420_v22, %v5714_v10  ;;  %v5765_v56 = vmul.f32 %v5726_v3, %v9284_v20  ;;  %v5758_v10 = vsel %vm155_vm0, %v5756_v23, %v5744_v36 }
0x2848   :  { %v7405_v47 = vpop.f32.mrf.mxu1 }
0x2849   :  { %v5764_v53 = vmul.f32 %v5725_v54, %v9293_v49  ;;  %6380 = vrot.lane.b32.xlu1 %v7405_v47, %s7825_s0  ;;  %v6373_v8 = vmul.f32 %v7405_v47, %v9297_v59 }
0x284a   :  { %v5936_v5 = vpop.f32.mrf.mxu1 }
0x284b   :  { %5784 = vrot.lane.b32.xlu0 %v5764_v53, %s7826_s5  ;;  %v6372_v58 = vmul.f32 %v5936_v5, %v9306_v11 }
0x284d   :  { %v7419_v19 = vpop.f32.mrf.mxu1  ;;  %5786 = vrot.lane.b32.xlu1 %v5765_v56, %s7826_s5 }
0x284e   :  { %v6375_v9 = vmul.f32 %v7419_v19, %v9297_v59 }
0x284f   :  { %v6098_v50 = vpop.f32.mrf.mxu1  ;;  %6386 = vrot.lane.b32.xlu0 %v6372_v58, %s7830_s3 }
0x2850   :  { %v6374_v55 = vmul.f32 %v6098_v50, %v9306_v11 }
0x2851   :  { %v7426_v13 = vpop.f32.mrf.mxu1  ;;  %6378 = vrot.lane.b32.xlu1 %v5936_v5, %s7825_s0 }
0x2852   :  { %v6369_v30 = vsub.f32 %v7405_v47, %v7426_v13 }
0x2853   :  { %v6203_v57 = vpop.f32.mrf.mxu1  ;;  %6394 = vrot.lane.b32.xlu0 %v6374_v55, %s7826_s5 }
0x2854   :  { %v6368_v61 = vsub.f32 %v5936_v5, %v6203_v57  ;;  %v6407_v34 = vmul.f32 %v6369_v30, %v9297_v59 }
0x2855   :  { %v7440_v4 = vpop.f32.mrf.mxu1  ;;  %6388 = vrot.lane.b32.xlu1 %v6373_v8, %s7830_s3 }
0x2856   :  { %v6406_v48 = vmul.f32 %v6368_v61, %v9306_v11  ;;  %v6371_v35 = vsub.f32 %v7419_v19, %v7440_v4 }
0x2857   :  { %v6359_v41 = vpop.f32.mrf.mxu1  ;;  %6412 = vrot.lane.b32.xlu0 %v6368_v61, %s7825_s0 }
0x2858   :  { %v6370_v21 = vsub.f32 %v6098_v50, %v6359_v41  ;;  %v6409_v38 = vmul.f32 %v6371_v35, %v9297_v59 }
0x2859   :  { %6396 = vrot.lane.b32.xlu1 %v6375_v9, %s7826_s5 }
0x285a   :  { %v6408_v12 = vmul.f32 %v6370_v21, %v9306_v11 }
0x285b   :  { %6420 = vrot.lane.b32.xlu0 %v6406_v48, %s7830_s3 }
0x285d   :  { %6414 = vrot.lane.b32.xlu1 %v6369_v30, %s7825_s0  ;;  %s6566_s0 = sshll.u32 %s7843_s4, 4  ;;  %s6567_s0 = int_to_ptr.vmem [resolvable:$true] %s6566_s0 }
0x285e   :  { %s7729_s8 = scalar_lea.vmem %s6567_s0, 32  ;;  %p7734_p1 = scmp.lt.s32.totalorder %s6567_s0, %s6567_s0 }
0x285f   :  { %6428 = vrot.lane.b32.xlu0 %v6408_v12, %s7826_s5  ;;  %p7730_p0 = scmp.ne.s32.totalorder %s6567_s0, %s7729_s8  ;;  %p7735_p2 = scmp.lt.s32.totalorder %s7729_s8, %s7729_s8 }
0x2861   :  { %6422 = vrot.lane.b32.xlu1 %v6407_v34, %s7830_s3  ;;  %s6575_s3 = sshll.u32 %s7845_s29, 4  ;;  %p7736_p3 = por %p7735_p2, %p7734_p1  ;;  %s9603_s3 = int_to_ptr.vmem [resolvable:$true] %s6575_s3 }
0x2863   :  { %p7737_p4 = pnand %p7736_p3, %p7730_p0 }
0x2865   :  { %6430 = vrot.lane.b32.xlu1 %v6409_v38, %s7826_s5  ;;  %s7844_s5 = smov [#allocation3]  }
0x2866   :  { %s6556_s25 = sshll.u32 %s7844_s5, 4  ;;  %s6557_s25 = int_to_ptr.vmem [resolvable:$true] %s6556_s25 }
0x28ad   :  { %v5752_v6 = vpop.permute.xlu1 %5751 }
0x28ae   :  { %v5761_v47 = vsel %vm5759_vm15, %v5758_v10, %v5752_v6 }
0x28af   :  { %v5750_v40 = vpop.permute.xlu0 %5749 }
0x28b0   :  { %v5760_v44 = vsel %vm5759_vm15, %v5757_v16, %v5750_v40 }
0x28b1   :  { %v5771_v33 = vpop.permute.xlu1 %5770  ;;  %v5796_v56 = vadd.f32 %v5761_v47, %v5760_v44 }
0x28b2   :  { %v5791_v3 = vsel %vm257_vm1, %v9284_v20, %v5771_v33 }
0x28b3   :  { %v5769_v46 = vpop.permute.xlu0 %5768  ;;  %v5797_v15 = vrot.slane %v5796_v56, 4 }
0x28b4   :  { %v5790_v37 = vsel %vm257_vm1, %v9293_v49, %v5769_v46 }
0x28b5   :  { %v5779_v31 = vpop.permute.xlu1 %5778  ;;  %v5798_v42 = vadd.f32 %v5797_v15, %v5796_v56 }
0x28b6   :  { %v5793_v53 = vsel %vm155_vm0, %v5791_v3, %v5779_v31 }
0x28b7   :  { %v5777_v22 = vpop.permute.xlu0 %5776  ;;  %v5799_v2 = vrot.slane %v5798_v42, 2 }
0x28b8   :  { %v5792_v18 = vsel %vm155_vm0, %v5790_v37, %v5777_v22 }
0x28b9   :  { %v5800_v27 = vadd.f32 %v5799_v2, %v5798_v42 }
0x28bb   :  { %v6381_v24 = vpop.permute.xlu1 %6380  ;;  %v5801_v39 = vrot.slane %v5800_v27, 1 }
0x28bc   :  { %v6401_v55 = vsel %vm257_vm1, %v9297_v59, %v6381_v24 }
0x28bd   :  { %v5785_v25 = vpop.permute.xlu0 %5784  ;;  %v5802_v46 = vadd.f32 %v5801_v39, %v5800_v27 }
0x28be   :  { %v5794_v50 = vsel %vm5759_vm15, %v5792_v18, %v5785_v25 }
0x28bf   :  { %v5787_v26 = vpop.permute.xlu1 %5786  ;;  %v5804_v25 = vmul.f32 0.0625, %v5802_v46 }
0x28c0   :  { %v5795_v58 = vsel %vm5759_vm15, %v5793_v53, %v5787_v26 }
0x28c1   :  { %v6387_v28 = vpop.permute.xlu0 %6386  ;;  %v5805_v13 = vadd.f32 %v5795_v58, %v5794_v50 }
0x28c3   :  { %v6379_v52 = vpop.permute.xlu1 %6378  ;;  %v5806_v4 = vrot.slane %v5805_v13, 4 }
0x28c4   :  { %v6400_v5 = vsel %vm257_vm1, %v9306_v11, %v6379_v52 }
0x28c5   :  { %v6395_v54 = vpop.permute.xlu0 %6394  ;;  %v6402_v20 = vsel %vm155_vm0, %v6400_v5, %v6387_v28  ;;  %v5807_v21 = vadd.f32 %v5806_v4, %v5805_v13 }
0x28c6   :  { %v6404_v49 = vsel %vm5759_vm15, %v6402_v20, %v6395_v54 }
0x28c7   :  { %v6389_v19 = vpop.permute.xlu1 %6388  ;;  %v5808_v34 = vrot.slane %v5807_v21, 2 }
0x28c8   :  { %v6403_v8 = vsel %vm155_vm0, %v6401_v55, %v6389_v19 }
0x28c9   :  { %v6413_v32 = vpop.permute.xlu0 %6412  ;;  %v5809_v36 = vadd.f32 %v5808_v34, %v5807_v21 }
0x28ca   :  { %v6434_v35 = vsel %vm257_vm1, %v9306_v11, %v6413_v32 }
0x28cb   :  { %v6397_v57 = vpop.permute.xlu1 %6396  ;;  %v5810_v33 = vrot.slane %v5809_v36, 1 }
0x28cc   :  { %v6405_v17 = vsel %vm5759_vm15, %v6403_v8, %v6397_v57 }
0x28cd   :  { %v6440_v61 = vadd.f32 %v6405_v17, %v6404_v49  ;;  %v6421_v41 = vpop.permute.xlu0 %6420  ;;  %v5811_v24 = vadd.f32 %v5810_v33, %v5809_v36 }
0x28ce   :  { %v6436_v38 = vsel %vm155_vm0, %v6434_v35, %v6421_v41 }
0x28cf   :  { %v6441_v9 = vrot.slane %v6440_v61, 4  ;;  %v6415_v62 = vpop.permute.xlu1 %6414  ;;  %v5812_v16 = vmul.f32 0.0625, %v5811_v24 }
0x28d0   :  { %v6435_v1 = vsel %vm257_vm1, %v9297_v59, %v6415_v62  ;;  %vm6456_vm1 = vcmask 1040384  }
0x28d1   :  { %v6442_v48 = vadd.f32 %v6441_v9, %v6440_v61  ;;  %v6429_v7 = vpop.permute.xlu0 %6428 }
0x28d2   :  { %v6438_v60 = vsel %vm5759_vm15, %v6436_v38, %v6429_v7 }
0x28d3   :  { %v6443_v30 = vrot.slane %v6442_v48, 2  ;;  %v6423_v43 = vpop.permute.xlu1 %6422 }
0x28d4   :  { %v6437_v63 = vsel %vm155_vm0, %v6435_v1, %v6423_v43  ;;  %vm6548_vm0 = vcmask 257026  }
0x28d5   :  { %v6444_v12 = vadd.f32 %v6443_v30, %v6442_v48 }
0x28d7   :  { %v6431_v14 = vpop.permute.xlu1 %6430  ;;  %v6445_v29 = vrot.slane %v6444_v12, 1 }
0x28d8   :  { %v6439_v45 = vsel %vm5759_vm15, %v6437_v63, %v6431_v14 }
0x28d9   :  { %v6448_v0 = vadd.f32 %v6439_v45, %v6438_v60  ;;  %v6446_v40 = vadd.f32 %v6445_v29, %v6444_v12 }
0x28db   :  { %v6449_v6 = vrot.slane %v6448_v0, 4  ;;  %v6447_v31 = vmul.f32 0.0625, %v6446_v40 }
0x28dd   :  { %v6450_v11 = vadd.f32 %v6449_v6, %v6448_v0  ;;  %v6457_v28 = vsel %vm6456_vm1, %v5804_v25, %v6447_v31 }
0x28de   :  { %v6458_v23 = vsel %vm988_vm7, %v6457_v28, %v5812_v16 }
0x28df   :  { %v6451_v59 = vrot.slane %v6450_v11, 2 }
0x28e1   :  { %v6452_v22 = vadd.f32 %v6451_v59, %v6450_v11 }
0x28e3   :  { %v6453_v26 = vrot.slane %v6452_v22, 1 }
0x28e5   :  { %v6454_v51 = vadd.f32 %v6453_v26, %v6452_v22 }
0x28e7   :  { %v6455_v52 = vmul.f32 0.0625, %v6454_v51 }
0x28e9   :  { %v6459_v44 = vsel %vm856_vm2, %v6458_v23, %v6455_v52 }
0x28ea   :  { %7474 = vmatmul.mubr.f32.vlgmr.msra.gmra.mxu1 %v6459_v44 }
0x29aa   :  { %v6542_v10 = vpop.f32.mrf.mxu1 }
0x29ab   :  { %6549 = vst.msk [vmem:[#allocation5 - $0x2] sm:$0xc] %vm6548_vm0, %v6542_v10 }
0x29ac   :  { %6547 = vst.msk [vmem:[#allocation3] sm:$0x3] %vm6546_vm3, %v6542_v10  ;;  %v7475_v3 = vpop.f32.mrf.mxu1 }
0x29ad   :  { %7740 = shalt.err (!%p7737_p4)
}
0x29ae   :  { %6569 = dma.vmem_to_hbm [thread:$0]  %s6567_s0, 32, %s8008_s13, [#allocation6]  }
0x29af   :  { %s7749_s14 = scalar_lea.vmem %s6557_s25, 32  ;;  %p7754_p6 = scmp.lt.s32.totalorder %s6557_s25, %s6557_s25 }
0x29b0   :  { %p7750_p5 = scmp.ne.s32.totalorder %s6557_s25, %s7749_s14  ;;  %p7755_p7 = scmp.lt.s32.totalorder %s7749_s14, %s7749_s14 }
0x29b2   :  { %p7756_p8 = por %p7755_p7, %p7754_p6 }
0x29b4   :  { %p7757_p9 = pnand %p7756_p8, %p7750_p5 }
0x29b6   :  { %7760 = shalt.err (!%p7757_p9)
}
0x29b7   :  { %6559 = dma.vmem_to_hbm [thread:$0]  %s6557_s25, 32, %s8003_s12, [#allocation4]  }
0x29b8   :  { %s7769_s19 = scalar_lea.vmem %s9603_s3, 512  ;;  %p7774_p11 = scmp.lt.s32.totalorder %s9603_s3, %s9603_s3 }
0x29b9   :  { %p7770_p10 = scmp.ne.s32.totalorder %s9603_s3, %s7769_s19  ;;  %p7775_p12 = scmp.lt.s32.totalorder %s7769_s19, %s7769_s19 }
0x29bb   :  { %p7776_p13 = por %p7775_p12, %p7774_p11 }
0x29bd   :  { %p7777_p0 = pnand %p7776_p13, %p7770_p10 }
0x29bf   :  { %7780 = shalt.err (!%p7777_p0)
}
0x29c0   :  { %s7846_s13 = smov 128  }
0x29c1   :  { %6581 = dma.vmem_to_hbm [thread:$0]  %s9603_s3, 512, %s8013_s27, [#allocation6], %s7846_s13, %s7846_s13, %s7838_s1  }
0x29c2   :  { %7789 = dma.done.wait [#allocation4], 32  }
0x29c3   :  { %7790 = vsyncadd [#allocation4], 4294967264 }
0x29c4   :  { %7791 = dma.done.wait [#allocation6], 544  }
0x29c5   :  { %7792 = vsyncadd [#allocation6], 4294966752 }
0x29c6   :  { %6591 = vsyncpa [#allocation4], 1 }
0x29c7   :  { %6592 = vsyncpa [#allocation6], 1 }

</bundles_post_ra>
